<compile_context>
chip_gen: v7x
topology: tpu7x:2x2x1
jax: 0.10.0
libtpu: 0.0.40
codegen_flags: <defaults>
</compile_context>

<pallas_src>
import jax
import jax.numpy as jnp
from jax.experimental import pallas as pl
from jax.experimental.pallas import tpu as pltpu

# ---- static problem sizes (small, consistent with the module) ----
N        = 2                       # batch
C_IN     = 20                      # input channels
W_IN     = 13                      # input width (H = 1)
C1       = 512                     # conv channels
K1       = 2                       # conv1 kernel width
K2       = 3                       # conv2 kernel width
W1       = W_IN - (K1 - 1)         # 12 after conv1
W2       = (W1 - 2) // 2 + 1       # 6  after maxpool (1,2) stride 2
W3       = W2 - (K2 - 1)           # 4  after conv2
FC1_IN   = C1 * W3                 # 2048
FC1_OUT  = 400
FC1_PAD  = 512                     # lane-dense (4 x 128) padding of fc1/fc2-in dim
FC2_OUT  = 1

W_PAD    = 16                      # per-sample padded width inside the kernel
R1       = N * W_PAD               # 32 rows of the flat batched layout

# Deepest within-sample row offset any *consumed* output pulls through the in-kernel
# shifted-operand chain: fc1 lattice 2*(W3-1)=6, conv2 taps 2*(K2-1)=4, maxpool +1.
# Must stay inside the per-sample padding or shifted reads leak across samples.
_MAX_ROW_REACH = 2 * (W3 - 1) + 2 * (K2 - 1) + 1
assert _MAX_ROW_REACH <= W_PAD - 1, "W_PAD too small: shifted reads would cross samples"
assert W_IN <= W_PAD


def _row_shift_up(v, k):
    """result[r, :] = v[(r + k) % R1, :] — a single XLU sublane rotate (pltpu.roll,
    jnp.roll semantics, positive-equivalent shift).  Circularly wrapped rows land
    only in per-sample padding rows that are never consumed (see _MAX_ROW_REACH)."""
    return pltpu.roll(v, shift=R1 - k, axis=0)


def shallow_net_kernel(x_ref, w1c_ref, w2c_ref, fc1w_hbm, fc1b_ref,
                       fc2w_ref, fc2b_ref, out_ref, fc1w_vmem, fc1w_sem):
    # x_ref     : (R1, K1*C_IN)        f32  flat input, conv1 taps pre-concatenated
    # w1c_ref   : (K1*C_IN, C1)        f32  fused conv1 taps (tiny, kept f32)
    # w2c_ref   : (K2*C1, C1)          bf16 fused conv2 taps
    # fc1w_hbm  : (W3, C1, FC1_PAD)    bf16 per-width fc1 blocks, HBM (manual DMA)
    # fc1b_ref  : (1, FC1_PAD)         f32  (cols 400..511 zero)
    # fc2w_ref  : (1, FC1_PAD)         f32  fc2 weight row, zero-padded
    # fc2b_ref  : (1, 1)               f32
    # out_ref   : (N, 1)               f32
    # fc1w_vmem : (W3, C1, FC1_PAD)    bf16 VMEM landing buffer for fc1 weights
    # fc1w_sem  : DMA semaphore

    # Overlap the largest weight load (fc1, ~2 MB bf16) with the conv compute.
    fc1w_copy = pltpu.make_async_copy(fc1w_hbm, fc1w_vmem, fc1w_sem)
    fc1w_copy.start()

    x = x_ref[...]                                               # (R1, 2*C_IN) f32

    # ---- conv1 (1,K1), no bias: ONE fused-tap MXU matmul (taps concatenated along
    #      lanes in the wrapper, per-tap weights stacked in w1c). ----
    out1 = jnp.dot(x, w1c_ref[...], preferred_element_type=jnp.float32)   # (R1, C1)

    # ---- maxpool (1,2) stride 2: single shifted VPU max.  Pooled value q of sample
    #      n lives at row n*W_PAD + 2*q (no compaction needed). ----
    m = jnp.maximum(out1, _row_shift_up(out1, 1))                # (R1, C1) f32

    # ---- conv2 (1,K2), no bias: ONE fused-tap matmul on the even-row lattice.
    #      Operands cast to bf16 at the MXU only (f32 accumulation). ----
    mc = jnp.concatenate([m, _row_shift_up(m, 2), _row_shift_up(m, 4)], axis=1)
    out2 = jnp.dot(mc.astype(jnp.bfloat16), w2c_ref[...],
                   preferred_element_type=jnp.float32)           # (R1, C1) f32

    t = jnp.tanh(out2)                                           # (R1, C1) f32
    # TODO(synk): Dropout(p=0.5) is inference-mode identity (no masking / scaling).

    # ---- fc1 as W3 per-width-tap matmuls over the full row lattice: no row gather.
    #      Row n*W_PAD of the accumulator is exactly sample n's fc1 pre-activation,
    #      because roll-by-2w places t[sample n, width w] on row n*W_PAD. ----
    fc1w_copy.wait()                                             # fc1 weights landed
    acc = jnp.dot(t.astype(jnp.bfloat16), fc1w_vmem[0],
                  preferred_element_type=jnp.float32)            # (R1, FC1_PAD) f32
    for w in range(1, W3):
        acc += jnp.dot(_row_shift_up(t, 2 * w).astype(jnp.bfloat16), fc1w_vmem[w],
                       preferred_element_type=jnp.float32)

    # Pick the N valid rows (row n*W_PAD), then bias + tanh on (N, FC1_PAD).
    sel = jnp.concatenate([acc[n * W_PAD:n * W_PAD + 1, :] for n in range(N)], axis=0)
    h1 = jnp.tanh(sel + fc1b_ref[...])        # (N, FC1_PAD); padded lanes tanh(0)=0

    # ---- fc2 (400 -> 1) on the VPU/XLU: multiply + cross-lane reduce (padded lanes
    #      of both h1 and fc2w contribute nothing). ----
    out_ref[...] = (jnp.sum(h1 * fc2w_ref[...], axis=-1, keepdims=True)
                    + fc2b_ref[...])


def prepare_params(w1_t, w2_t, fc1w, fc1b, fc2w, fc2b):
    """One-time re-layout of PyTorch-shaped parameters into kernel layouts
    (hoisted out of the per-forward path)."""
    # Fused-tap conv weights: rows [tap0 in-channels ; tap1 ; ...] -> out-channels.
    w1c = jnp.concatenate([w1_t[:, :, 0, k].T for k in range(K1)],
                          axis=0)                                  # (K1*C_IN, C1) f32
    w2c = jnp.concatenate([w2_t[:, :, 0, k].T for k in range(K2)],
                          axis=0).astype(jnp.bfloat16)             # (K2*C1, C1) bf16
    # fc1 weight is (400, 2048); PyTorch NCHW flat index is c*W3 + w.  Split into
    # per-width blocks (W3, C1, FC1_OUT), pad the output dim 400 -> 512 (lane-dense),
    # store bf16 (halves the dominant HBM->VMEM transfer).
    fc1w_blk = jnp.transpose(fc1w.T.reshape(C1, W3, FC1_OUT), (1, 0, 2))
    fc1w_blk = jnp.pad(fc1w_blk, ((0, 0), (0, 0), (0, FC1_PAD - FC1_OUT))
                       ).astype(jnp.bfloat16)                      # (W3, C1, 512)
    fc1b_p = jnp.pad(fc1b.reshape(1, FC1_OUT),
                     ((0, 0), (0, FC1_PAD - FC1_OUT)))             # (1, 512) f32
    fc2w_p = jnp.pad(fc2w.reshape(1, FC1_OUT),
                     ((0, 0), (0, FC1_PAD - FC1_OUT)))             # (1, 512) f32
    fc2b_p = fc2b.reshape(1, 1)
    return w1c, w2c, fc1w_blk, fc1b_p, fc2w_p, fc2b_p


@jax.jit
def shallow_net_forward(x_nchw, w1c, w2c, fc1w_blk, fc1b_p, fc2w_p, fc2b_p):
    """Forward pass.  Params must already be in kernel layout (prepare_params)."""
    # Tiny per-call input re-layout (~5 KB): NCHW -> flat channels-last rows with the
    # two conv1 taps pre-concatenated along lanes, width zero-padded to W_PAD.
    x_nwc = jnp.transpose(x_nchw[:, :, 0, :], (0, 2, 1))              # (N, W_IN, C_IN)
    x_sh  = jnp.pad(x_nwc[:, 1:, :], ((0, 0), (0, 1), (0, 0)))        # x[w+1] tap
    x_tap = jnp.concatenate([x_nwc, x_sh], axis=-1)                   # (N, W_IN, 2*C_IN)
    x_tap = jnp.pad(x_tap, ((0, 0), (0, W_PAD - W_IN), (0, 0))
                    ).reshape(R1, K1 * C_IN)                          # (32, 40)

    return pl.pallas_call(
        shallow_net_kernel,
        out_shape=jax.ShapeDtypeStruct((N, 1), jnp.float32),
        in_specs=[
            pl.BlockSpec(memory_space=pltpu.MemorySpace.VMEM),   # x_tap
            pl.BlockSpec(memory_space=pltpu.MemorySpace.VMEM),   # w1c
            pl.BlockSpec(memory_space=pltpu.MemorySpace.VMEM),   # w2c (bf16)
            pl.BlockSpec(memory_space=pl.ANY),                   # fc1w_blk (manual DMA)
            pl.BlockSpec(memory_space=pltpu.MemorySpace.VMEM),   # fc1b
            pl.BlockSpec(memory_space=pltpu.MemorySpace.VMEM),   # fc2w
            pl.BlockSpec(memory_space=pltpu.MemorySpace.VMEM),   # fc2b
        ],
        out_specs=pl.BlockSpec(memory_space=pltpu.MemorySpace.VMEM),
        scratch_shapes=[
            pltpu.VMEM((W3, C1, FC1_PAD), jnp.bfloat16),         # fc1 weight landing buf
            pltpu.SemaphoreType.DMA(()),                         # its DMA semaphore
        ],
        # ~4 MB actual footprint; 32 MiB keeps headroom and fits v7x's 64 MiB VMEM.
        compiler_params=pltpu.CompilerParams(vmem_limit_bytes=32 * 1024 * 1024),
    )(x_tap, w1c, w2c, fc1w_blk, fc1b_p, fc2w_p, fc2b_p)


def reference_forward(x_nchw, w1_t, w2_t, fc1w, fc1b, fc2w, fc2b):
    """Pure-JAX NCHW reference mirroring the PyTorch module (dropout = identity),
    run at HIGHEST precision so the comparison isolates the kernel's bf16 weights."""
    dn = ("NCHW", "OIHW", "NCHW")
    hi = jax.lax.Precision.HIGHEST
    y = jax.lax.conv_general_dilated(x_nchw, w1_t, (1, 1), "VALID",
                                     dimension_numbers=dn, precision=hi)
    y = jax.lax.reduce_window(y, -jnp.inf, jax.lax.max,
                              (1, 1, 1, 2), (1, 1, 2, 2), "VALID")
    y = jax.lax.conv_general_dilated(y, w2_t, (1, 1), "VALID",
                                     dimension_numbers=dn, precision=hi)
    y = y.reshape(-1, FC1_IN)
    y = jnp.tanh(y)
    y = jnp.dot(y, fc1w.T, precision=hi) + fc1b
    y = jnp.tanh(y)
    y = jnp.dot(y, fc2w.T, precision=hi) + fc2b
    return y


if __name__ == "__main__":
    key = jax.random.PRNGKey(0)
    ks = jax.random.split(key, 7)
    # deterministic synthetic parameters (PyTorch shapes)
    x_nchw = jax.random.normal(ks[0], (N, C_IN, 1, W_IN), jnp.float32)
    w1_t   = jax.random.normal(ks[1], (C1, C_IN, 1, K1), jnp.float32) * 0.05
    w2_t   = jax.random.normal(ks[2], (C1, C1, 1, K2), jnp.float32) * 0.02
    fc1w   = jax.random.normal(ks[3], (FC1_OUT, FC1_IN), jnp.float32) * 0.02
    fc1b   = jax.random.normal(ks[4], (FC1_OUT,), jnp.float32) * 0.02
    fc2w   = jax.random.normal(ks[5], (FC2_OUT, FC1_OUT), jnp.float32) * 0.02
    fc2b   = jax.random.normal(ks[6], (FC2_OUT,), jnp.float32) * 0.02

    # Weight re-layout + bf16 cast done once (hoisted out of the forward path).
    kparams = prepare_params(w1_t, w2_t, fc1w, fc1b, fc2w, fc2b)
    kparams = jax.tree_util.tree_map(jax.block_until_ready, kparams)

    y = shallow_net_forward(x_nchw, *kparams)
    jax.block_until_ready(y)

    y_ref = reference_forward(x_nchw, w1_t, w2_t, fc1w, fc1b, fc2w, fc2b)
    assert y.shape == (N, 1), y.shape
    # bf16 storage of the conv2/fc1 weights (the review's top DMA optimization)
    # introduces ~1e-3-level rounding over the K=1536/2048 reductions; 5e-3 keeps a
    # comfortable margin while still catching any structural/layout mistake.
    assert jnp.allclose(y, y_ref, atol=5e-3, rtol=5e-3), (y, y_ref)
    print("KERNEL_OK")
</pallas_src>

<mosaic_0001>
module attributes {stable_mosaic.version = 11 : i64} {
  func.func @shallow_net_kernel(%arg0: memref<32x40xf32, #tpu.memory_space<vmem>>, %arg1: memref<40x512xf32, #tpu.memory_space<vmem>>, %arg2: memref<1536x512xbf16, #tpu.memory_space<vmem>>, %arg3: memref<4x512x512xbf16, #tpu.memory_space<any>>, %arg4: memref<1x512xf32, #tpu.memory_space<vmem>>, %arg5: memref<1x512xf32, #tpu.memory_space<vmem>>, %arg6: memref<1x1xf32, #tpu.memory_space<vmem>>, %arg7: memref<2x1xf32, #tpu.memory_space<vmem>>, %arg8: memref<4x512x512xbf16, #tpu.memory_space<vmem>>, %arg9: memref<!tpu.dma_semaphore, #tpu.memory_space<semaphore_mem>>) attributes {dimension_semantics = [], scalar_prefetch = 0 : i64, scratch_operands = 2 : i64, tpu.core_type = #tpu.core_type<tc>} {
    tpu.enqueue_dma source(%arg3 : memref<4x512x512xbf16, #tpu.memory_space<any>>) target(%arg8 : memref<4x512x512xbf16, #tpu.memory_space<vmem>>) target_semaphore(%arg9 : memref<!tpu.dma_semaphore, #tpu.memory_space<semaphore_mem>>)
    %c0 = arith.constant 0 : index
    %c0_0 = arith.constant 0 : index
    %0 = vector.load %arg0[%c0, %c0_0] : memref<32x40xf32, #tpu.memory_space<vmem>>, vector<32x40xf32>
    %c0_1 = arith.constant 0 : index
    %c0_2 = arith.constant 0 : index
    %1 = vector.load %arg1[%c0_1, %c0_2] : memref<40x512xf32, #tpu.memory_space<vmem>>, vector<40x512xf32>
    %cst = arith.constant dense<0.000000e+00> : vector<32x512xf32>
    %2 = tpu.matmul %0, %1, %cst {dimension_numbers = #tpu.dot_dimension_numbers<[1], [0], [0], [1], [0, 0, 1, 1], [], []>} : vector<32x40xf32>, vector<40x512xf32>, vector<32x512xf32> -> vector<32x512xf32>
    %c31_i32 = arith.constant 31 : i32
    %3 = tpu.dynamic_rotate %2 by %c31_i32 dim 0 : vector<32x512xf32>, i32 -> vector<32x512xf32>
    %4 = arith.maximumf %2, %3 : vector<32x512xf32>
    %c30_i32 = arith.constant 30 : i32
    %5 = tpu.dynamic_rotate %4 by %c30_i32 dim 0 : vector<32x512xf32>, i32 -> vector<32x512xf32>
    %c28_i32 = arith.constant 28 : i32
    %6 = tpu.dynamic_rotate %4 by %c28_i32 dim 0 : vector<32x512xf32>, i32 -> vector<32x512xf32>
    %7 = tpu.concatenate %4, %5, %6 in 1 : vector<32x512xf32>, vector<32x512xf32>, vector<32x512xf32> -> vector<32x1536xf32>
    %8 = arith.truncf %7 : vector<32x1536xf32> to vector<32x1536xbf16>
    %c0_3 = arith.constant 0 : index
    %c0_4 = arith.constant 0 : index
    %9 = vector.load %arg2[%c0_3, %c0_4] : memref<1536x512xbf16, #tpu.memory_space<vmem>>, vector<1536x512xbf16>
    %cst_5 = arith.constant dense<0.000000e+00> : vector<32x512xf32>
    %10 = tpu.matmul %8, %9, %cst_5 {dimension_numbers = #tpu.dot_dimension_numbers<[1], [0], [0], [1], [0, 0, 1, 1], [], []>} : vector<32x1536xbf16>, vector<1536x512xbf16>, vector<32x512xf32> -> vector<32x512xf32>
    %11 = math.tanh %10 : vector<32x512xf32>
    tpu.wait_dma2 semaphore(%arg9 : memref<!tpu.dma_semaphore, #tpu.memory_space<semaphore_mem>>) src(%arg3 : memref<4x512x512xbf16, #tpu.memory_space<any>>) dst(%arg8 : memref<4x512x512xbf16, #tpu.memory_space<vmem>>)
    %12 = arith.truncf %11 : vector<32x512xf32> to vector<32x512xbf16>
    %c0_6 = arith.constant 0 : index
    %c0_7 = arith.constant 0 : index
    %c0_8 = arith.constant 0 : index
    %13 = vector.load %arg8[%c0_6, %c0_7, %c0_8] : memref<4x512x512xbf16, #tpu.memory_space<vmem>>, vector<1x512x512xbf16>
    %14 = vector.shape_cast %13 : vector<1x512x512xbf16> to vector<512x512xbf16>
    %cst_9 = arith.constant dense<0.000000e+00> : vector<32x512xf32>
    %15 = tpu.matmul %12, %14, %cst_9 {dimension_numbers = #tpu.dot_dimension_numbers<[1], [0], [0], [1], [0, 0, 1, 1], [], []>} : vector<32x512xbf16>, vector<512x512xbf16>, vector<32x512xf32> -> vector<32x512xf32>
    %c30_i32_10 = arith.constant 30 : i32
    %16 = tpu.dynamic_rotate %11 by %c30_i32_10 dim 0 : vector<32x512xf32>, i32 -> vector<32x512xf32>
    %17 = arith.truncf %16 : vector<32x512xf32> to vector<32x512xbf16>
    %c1 = arith.constant 1 : index
    %c0_11 = arith.constant 0 : index
    %c0_12 = arith.constant 0 : index
    %18 = vector.load %arg8[%c1, %c0_11, %c0_12] : memref<4x512x512xbf16, #tpu.memory_space<vmem>>, vector<1x512x512xbf16>
    %19 = vector.shape_cast %18 : vector<1x512x512xbf16> to vector<512x512xbf16>
    %cst_13 = arith.constant dense<0.000000e+00> : vector<32x512xf32>
    %20 = tpu.matmul %17, %19, %cst_13 {dimension_numbers = #tpu.dot_dimension_numbers<[1], [0], [0], [1], [0, 0, 1, 1], [], []>} : vector<32x512xbf16>, vector<512x512xbf16>, vector<32x512xf32> -> vector<32x512xf32>
    %21 = arith.addf %15, %20 : vector<32x512xf32>
    %c28_i32_14 = arith.constant 28 : i32
    %22 = tpu.dynamic_rotate %11 by %c28_i32_14 dim 0 : vector<32x512xf32>, i32 -> vector<32x512xf32>
    %23 = arith.truncf %22 : vector<32x512xf32> to vector<32x512xbf16>
    %c2 = arith.constant 2 : index
    %c0_15 = arith.constant 0 : index
    %c0_16 = arith.constant 0 : index
    %24 = vector.load %arg8[%c2, %c0_15, %c0_16] : memref<4x512x512xbf16, #tpu.memory_space<vmem>>, vector<1x512x512xbf16>
    %25 = vector.shape_cast %24 : vector<1x512x512xbf16> to vector<512x512xbf16>
    %cst_17 = arith.constant dense<0.000000e+00> : vector<32x512xf32>
    %26 = tpu.matmul %23, %25, %cst_17 {dimension_numbers = #tpu.dot_dimension_numbers<[1], [0], [0], [1], [0, 0, 1, 1], [], []>} : vector<32x512xbf16>, vector<512x512xbf16>, vector<32x512xf32> -> vector<32x512xf32>
    %27 = arith.addf %21, %26 : vector<32x512xf32>
    %c26_i32 = arith.constant 26 : i32
    %28 = tpu.dynamic_rotate %11 by %c26_i32 dim 0 : vector<32x512xf32>, i32 -> vector<32x512xf32>
    %29 = arith.truncf %28 : vector<32x512xf32> to vector<32x512xbf16>
    %c3 = arith.constant 3 : index
    %c0_18 = arith.constant 0 : index
    %c0_19 = arith.constant 0 : index
    %30 = vector.load %arg8[%c3, %c0_18, %c0_19] : memref<4x512x512xbf16, #tpu.memory_space<vmem>>, vector<1x512x512xbf16>
    %31 = vector.shape_cast %30 : vector<1x512x512xbf16> to vector<512x512xbf16>
    %cst_20 = arith.constant dense<0.000000e+00> : vector<32x512xf32>
    %32 = tpu.matmul %29, %31, %cst_20 {dimension_numbers = #tpu.dot_dimension_numbers<[1], [0], [0], [1], [0, 0, 1, 1], [], []>} : vector<32x512xbf16>, vector<512x512xbf16>, vector<32x512xf32> -> vector<32x512xf32>
    %33 = arith.addf %27, %32 : vector<32x512xf32>
    %34 = vector.extract_strided_slice %33 {offsets = [0, 0], sizes = [1, 512], strides = [1, 1]} : vector<32x512xf32> to vector<1x512xf32>
    %35 = vector.extract_strided_slice %33 {offsets = [16, 0], sizes = [1, 512], strides = [1, 1]} : vector<32x512xf32> to vector<1x512xf32>
    %36 = tpu.concatenate %34, %35 in 0 : vector<1x512xf32>, vector<1x512xf32> -> vector<2x512xf32>
    %c0_21 = arith.constant 0 : index
    %c0_22 = arith.constant 0 : index
    %37 = vector.load %arg4[%c0_21, %c0_22] : memref<1x512xf32, #tpu.memory_space<vmem>>, vector<1x512xf32>
    %38 = vector.broadcast %37 : vector<1x512xf32> to vector<2x512xf32>
    %39 = arith.addf %36, %38 : vector<2x512xf32>
    %40 = math.tanh %39 : vector<2x512xf32>
    %c0_23 = arith.constant 0 : index
    %c0_24 = arith.constant 0 : index
    %41 = vector.load %arg5[%c0_23, %c0_24] : memref<1x512xf32, #tpu.memory_space<vmem>>, vector<1x512xf32>
    %42 = vector.broadcast %41 : vector<1x512xf32> to vector<2x512xf32>
    %43 = arith.mulf %40, %42 : vector<2x512xf32>
    %cst_25 = arith.constant dense<0.000000e+00> : vector<2xf32>
    %44 = vector.multi_reduction <add>, %43, %cst_25 [1] : vector<2x512xf32> to vector<2xf32>
    %45 = vector.shape_cast %44 : vector<2xf32> to vector<2x1xf32>
    %c0_26 = arith.constant 0 : index
    %c0_27 = arith.constant 0 : index
    %46 = vector.load %arg6[%c0_26, %c0_27] : memref<1x1xf32, #tpu.memory_space<vmem>>, vector<1x1xf32>
    %47 = vector.broadcast %46 : vector<1x1xf32> to vector<2x1xf32>
    %48 = arith.addf %45, %47 : vector<2x1xf32>
    %c0_28 = arith.constant 0 : index
    %c0_29 = arith.constant 0 : index
    %49 = vector.load %arg7[%c0_28, %c0_29] : memref<2x1xf32, #tpu.memory_space<vmem>>, vector<2x1xf32>
    tpu.vector_store %arg7[%c0_28, %c0_29], %48 {strides = array<i32>} : memref<2x1xf32, #tpu.memory_space<vmem>>, vector<2x1xf32>,
    return
  }
}

</mosaic_0001>

<bundles_post_ra>
// kernel: shallow_net_forward.1
= control target key start
LH: loop header
LB: loop body
LE: loop exit
PB: predicated region body
PF: predicated region fallthrough
CT: control target
= control target key end

     0   :  { %s7073_s0 = inlined_call_operand.vmem [shape: f32[32,40], index: 0, kind: input, shape index: {}]   ;;  %s7074_s1 = inlined_call_operand.hbm [shape: f32[40,512], index: 1, kind: input, shape index: {}]   ;;  %s7075_s2 = inlined_call_operand.hbm [shape: bf16[1536,512], index: 2, kind: input, shape index: {}]   ;;  %s7076_s3 = inlined_call_operand.hbm [shape: bf16[4,512,512], index: 3, kind: input, shape index: {}]   ;;  %s7077_s4 = inlined_call_operand.hbm [shape: f32[1,512], index: 4, kind: input, shape index: {}]   ;;  %s7078_s5 = inlined_call_operand.hbm [shape: f32[1,512], index: 5, kind: input, shape index: {}]   ;;  %s7079_s6 = inlined_call_operand.<no memory space> [shape: f32[1,1], index: 6, kind: input, shape index: {}]   ;;  %s7080_s7 = inlined_call_operand.vmem [shape: f32[2,1], index: 7, kind: output, shape index: {}]  }
   0x1   :  { %v12_v0 = vstv %s7079_s6 }
   0x2   :  { %13 = vst [vmem:[#allocation4] sm:$0x1] %v12_v0 }
   0x3   :  { %14 = vsyncpa [#allocation6], 0 }
   0x4   :  { %15 = vsyncpa [#allocation8], 0 }
   0x5   :  { %16 = vsyncpa [#allocation11], 0  ;;  %s6311_s26 = smov [#allocation7]   ;;  %s6215_s30 = scalar_lea.hbm %s7075_s2, 49152 }
   0x6   :  { %s36_s27 = sshll.u32 %s6311_s26, 4  ;;  %p6216_p0 = scmp.ne.s32.totalorder %s7075_s2, %s6215_s30  ;;  %s37_s27 = int_to_ptr.vmem [resolvable:$true] %s36_s27 }
   0x7   :  { %p6219_p1 = scmp.lt.u32.totalorder %s6215_s30, %s7075_s2 }
   0x9   :  { %p6221_p2 = pnand %p6219_p1, %p6216_p0 }
   0xb   :  { %6224 = shalt.err (!%p6221_p2)
}
   0xc   :  { %s6225_s6 = scalar_lea.vmem %s37_s27, 49152  ;;  %p6230_p4 = scmp.lt.s32.totalorder %s37_s27, %s37_s27 }
   0xd   :  { %p6226_p3 = scmp.ne.s32.totalorder %s37_s27, %s6225_s6  ;;  %p6231_p5 = scmp.lt.s32.totalorder %s6225_s6, %s6225_s6 }
   0xf   :  { %p6232_p6 = por %p6231_p5, %p6230_p4 }
  0x11   :  { %p6233_p7 = pnand %p6232_p6, %p6226_p3 }
  0x13   :  { %6236 = shalt.err (!%p6233_p7)
}
  0x14   :  { %s6312_s12 = smov 256   ;;  %s6313_s13 = smov 16  }
  0x15   :  { %42 = dma.hbm_to_vmem [thread:$0]  %s7075_s2, 49152, %s37_s27, [#allocation8], %s6312_s12, %s6312_s12, %s6313_s13  }
  0x16   :  { %s6314_s16 = smov [#allocation5]   ;;  %s6237_s20 = scalar_lea.hbm %s7074_s1, 2560 }
  0x17   :  { %s24_s17 = sshll.u32 %s6314_s16, 4  ;;  %p6238_p8 = scmp.ne.s32.totalorder %s7074_s1, %s6237_s20  ;;  %s25_s17 = int_to_ptr.vmem [resolvable:$true] %s24_s17 }
  0x18   :  { %p6241_p9 = scmp.lt.u32.totalorder %s6237_s20, %s7074_s1 }
  0x1a   :  { %p6243_p10 = pnand %p6241_p9, %p6238_p8 }
  0x1c   :  { %6246 = shalt.err (!%p6243_p10)
}
  0x1d   :  { %s6247_s25 = scalar_lea.vmem %s25_s17, 2560  ;;  %p6252_p12 = scmp.lt.s32.totalorder %s25_s17, %s25_s17 }
  0x1e   :  { %p6248_p11 = scmp.ne.s32.totalorder %s25_s17, %s6247_s25  ;;  %p6253_p13 = scmp.lt.s32.totalorder %s6247_s25, %s6247_s25 }
  0x20   :  { %p6254_p0 = por %p6253_p13, %p6252_p12 }
  0x22   :  { %p6255_p1 = pnand %p6254_p0, %p6248_p11 }
  0x24   :  { %6258 = shalt.err (!%p6255_p1)
}
  0x25   :  { %s6315_s2 = smov 512   ;;  %s6316_s26 = smov 32  }
  0x26   :  { %30 = dma.hbm_to_vmem [thread:$0]  %s7074_s1, 2560, %s25_s17, [#allocation6], %s6315_s2, %s6315_s2, %s6316_s26  }
  0x27   :  { %s6317_s29 = smov [#allocation9]   ;;  %s6318_s8 = smov [#allocation10]  }
  0x28   :  { %s49_s30 = sshll.u32 %s6317_s29, 4  ;;  %s59_s9 = sshll.u32 %s6318_s8, 4  ;;  %s50_s30 = int_to_ptr.vmem [resolvable:$true] %s49_s30  ;;  %s60_s9 = int_to_ptr.vmem [resolvable:$true] %s59_s9 }
  0x29   :  { %s6259_s6 = scalar_lea.hbm %s7077_s4, 64 }
  0x2a   :  { %p6260_p2 = scmp.ne.s32.totalorder %s7077_s4, %s6259_s6  ;;  %p6263_p3 = scmp.lt.u32.totalorder %s6259_s6, %s7077_s4 }
  0x2c   :  { %p6265_p4 = pnand %p6263_p3, %p6260_p2 }
  0x2e   :  { %6268 = shalt.err (!%p6265_p4)
}
  0x2f   :  { %s6269_s1 = scalar_lea.vmem %s50_s30, 64  ;;  %p6274_p6 = scmp.lt.s32.totalorder %s50_s30, %s50_s30 }
  0x30   :  { %p6270_p5 = scmp.ne.s32.totalorder %s50_s30, %s6269_s1  ;;  %p6275_p7 = scmp.lt.s32.totalorder %s6269_s1, %s6269_s1 }
  0x32   :  { %p6276_p8 = por %p6275_p7, %p6274_p6 }
  0x34   :  { %p6277_p9 = pnand %p6276_p8, %p6270_p5 }
  0x36   :  { %6280 = shalt.err (!%p6277_p9)
}
  0x37   :  { %52 = dma.hbm_to_vmem [thread:$0]  %s7077_s4, 64, %s50_s30, [#allocation8]  }
  0x38   :  { %s6281_s21 = scalar_lea.hbm %s7078_s5, 64 }
  0x39   :  { %p6282_p10 = scmp.ne.s32.totalorder %s7078_s5, %s6281_s21  ;;  %p6285_p11 = scmp.lt.u32.totalorder %s6281_s21, %s7078_s5 }
  0x3b   :  { %p6287_p12 = pnand %p6285_p11, %p6282_p10 }
  0x3d   :  { %6290 = shalt.err (!%p6287_p12)
}
  0x3e   :  { %s6291_s26 = scalar_lea.vmem %s60_s9, 64  ;;  %p6296_p0 = scmp.lt.s32.totalorder %s60_s9, %s60_s9 }
  0x3f   :  { %p6292_p13 = scmp.ne.s32.totalorder %s60_s9, %s6291_s26  ;;  %p6297_p1 = scmp.lt.s32.totalorder %s6291_s26, %s6291_s26 }
  0x41   :  { %p6298_p2 = por %p6297_p1, %p6296_p0 }
  0x43   :  { %p6299_p3 = pnand %p6298_p2, %p6292_p13 }
  0x45   :  { %6302 = shalt.err (!%p6299_p3)
}
  0x46   :  { %62 = dma.hbm_to_vmem [thread:$0]  %s7078_s5, 64, %s60_s9, [#allocation11]  }
  0x47   :  { %6303 = dma.done.wait [#allocation6], 2560  }
  0x48   :  { %6304 = vsyncadd [#allocation6], 4294964736 }
  0x49   :  { %6305 = dma.done.wait [#allocation8], 49216  }
  0x4a   :  { %6306 = vsyncadd [#allocation8], 4294918080 }
  0x4b   :  { %6307 = dma.done.wait [#allocation11], 64  }
  0x4c   :  { %6308 = vsyncadd [#allocation11], 4294967232  ;;  %s81_s28 = sld [smem:[#allocation0]]   ;;  %93 = sst [smem:[#allocation13]] %s6315_s2  ;;  %v6319_v1 = vmov 0.0   ;;  %vm136_vm0 = vcmask 326656  }
  0x4d   :  { %213 = vmatprep.mubr.f32.mxu0 %v6319_v1  ;;  %302 = vmatprep.mubr.f32.mxu1 %v6319_v1  ;;  %95 = sst [smem:[#allocation13 + $0x1]] %s6315_s2  ;;  %s6320_s29 = smov 4  }
  0x4e   :  { %97 = sst [smem:[#allocation13 + $0x2]] %s6320_s29  ;;  %s6321_s30 = smov 64  }
  0x4f   :  { %99 = sst [smem:[#allocation13 + $0x3]] %s6321_s30  ;;  %s6322_s5 = smov 128  }
  0x50   :  { %101 = sst [smem:[#allocation13 + $0x4]] %s6322_s5  ;;  %s6323_s8 = smov [#allocation2]  }
  0x51   :  { %s89_s9 = sshll.u32 %s6323_s8, 4  ;;  %s6324_s10 = smov 2   ;;  %s90_s9 = int_to_ptr.vmem [resolvable:$true] %s89_s9 }
  0x52   :  { %103 = sst [smem:[#allocation13 + $0x5]] %s6324_s10  ;;  %s4979_s11 = sshll.u32 %s81_s28, 26 }
  0x53   :  { %105 = sst [smem:[#allocation13 + $0x6]] %s6312_s12  ;;  %s4980_s6 = sadd.s32 134217728, %s4979_s11 }
  0x54   :  { %107 = sst [smem:[#allocation13 + $0x7]] %s6321_s30  ;;  %s6325_s13 = smov [#allocation3]  }
  0x55   :  { %109 = sst [smem:[#allocation13 + $0x8]] %s6320_s29  ;;  %s6326_s14 = smov [#allocation12]  }
  0x56   :  { %111 = dma.general %s7076_s3, 65536, %s90_s9, %s6325_s13, %s6326_s14, [#allocation13], %s4980_s6, 0  }
  0x57   :  { %v117_v2 = vld [vmem:[#allocation5 + $0x8] sm:$0xff]  ;;  %v116_v4 = vld [vmem:[#allocation5] sm:$0xff]  ;;  %v119_v15 = vld [vmem:[#allocation5 + $0x18] sm:$0xff] }
  0x58   :  { %v121_v3 = vld [vmem:[#allocation5 + $0x28] sm:$0xff]  ;;  %v120_v6 = vld [vmem:[#allocation5 + $0x20] sm:$0xff]  ;;  %v123_v16 = vld [vmem:[#allocation5 + $0x38] sm:$0xff] }
  0x59   :  { %v5375_v5 = vpack.c.bf16 %v121_v3, %v117_v2  ;;  %v125_v7 = vld [vmem:[#allocation5 + $0x48] sm:$0xff]  ;;  %v5377_v9 = vpack.c.bf16 %v120_v6, %v116_v4  ;;  %v124_v11 = vld [vmem:[#allocation5 + $0x40] sm:$0xff]  ;;  %v118_v17 = vld [vmem:[#allocation5 + $0x10] sm:$0xff]  ;;  %v5383_v19 = vpack.c.bf16 %v123_v16, %v119_v15 }
  0x5a   :  { %v129_v8 = vld [vmem:[#allocation5 + $0x68] sm:$0xff]  ;;  %v128_v12 = vld [vmem:[#allocation5 + $0x60] sm:$0xff]  ;;  %v122_v18 = vld [vmem:[#allocation5 + $0x30] sm:$0xff] }
  0x5b   :  { %v5379_v10 = vpack.c.bf16 %v129_v8, %v125_v7  ;;  %5376 = vmatprep.subr.bf16.mxu0 %v5375_v5  ;;  %v5381_v13 = vpack.c.bf16 %v128_v12, %v124_v11  ;;  %v133_v14 = vld [vmem:[#allocation5 + $0x88] sm:$0xff]  ;;  %v5385_v20 = vpack.c.bf16 %v122_v18, %v118_v17  ;;  %v127_v21 = vld [vmem:[#allocation5 + $0x58] sm:$0xff]  ;;  %v126_v23 = vld [vmem:[#allocation5 + $0x50] sm:$0xff]  ;;  %5384 = vmatprep.subr.bf16.mxu1 %v5383_v19 }
  0x5c   :  { %5378 = vmatpush1.bf16.msra.mxu0 %v5377_v9  ;;  %v131_v22 = vld [vmem:[#allocation5 + $0x78] sm:$0xff]  ;;  %v130_v25 = vld [vmem:[#allocation5 + $0x70] sm:$0xff]  ;;  %v132_v26 = vld [vmem:[#allocation5 + $0x80] sm:$0xff] }
  0x5d   :  { %5380 = vmatprep.subr.bf16.mxu0 %v5379_v10  ;;  %v5387_v24 = vpack.c.bf16 %v131_v22, %v127_v21  ;;  %5386 = vmatpush1.bf16.msra.mxu1 %v5385_v20  ;;  %v5389_v27 = vpack.c.bf16 %v130_v25, %v126_v23  ;;  %v112_v28 = vld [vmem:[%s7073_s0] sm:$0xff]  ;;  %v113_v32 = vld [vmem:[%s7073_s0 + $0x8] sm:$0xff]  ;;  %v134_v33 = vld [vmem:[#allocation5 + $0x90] sm:$0xff] }
  0x5e   :  { %v135_v29 = vld [vmem:[#allocation5 + $0x98] sm:$0xff]  ;;  %v5601_v30 = vld [vmem:[#allocation7 + $0x4] ss:$16 sps:$4 sm:$0xff]   ;;  %v5599_v31 = vld [vmem:[#allocation7] ss:$16 sps:$4 sm:$0xff]  }
  0x5f   :  { %5388 = vmatprep.subr.bf16.mxu1 %v5387_v24  ;;  %v5602_v34 = vld [vmem:[#allocation7 + $0x8] ss:$16 sps:$4 sm:$0xff]   ;;  %v5604_v35 = vld [vmem:[#allocation7 + $0xc] ss:$16 sps:$4 sm:$0xff]   ;;  %v5607_v36 = vld [vmem:[#allocation7 + $0x24] ss:$16 sps:$4 sm:$0xff]  }
  0x60   :  { %5382 = vmatpush1.bf16.msra.mxu0 %v5381_v13  ;;  %v5610_v37 = vld [vmem:[#allocation7 + $0x2c] ss:$16 sps:$4 sm:$0xff]   ;;  %v5605_v39 = vld [vmem:[#allocation7 + $0x20] ss:$16 sps:$4 sm:$0xff]   ;;  %v5608_v40 = vld [vmem:[#allocation7 + $0x28] ss:$16 sps:$4 sm:$0xff]  }
  0x61   :  { %157 = vmatprep.subr.mxu0 %v133_v14  ;;  %5390 = vmatpush1.bf16.msra.mxu1 %v5389_v27  ;;  %v114_v38 = vld [vmem:[%s7073_s0 + $0x10] sm:$0xff]  ;;  %v115_v43 = vld [vmem:[%s7073_s0 + $0x18] sm:$0xff] }
  0x62   :  { %246 = vmatprep.subr.mxu1 %v135_v29  ;;  %v5613_v41 = vld [vmem:[#allocation7 + $0x44] ss:$16 sps:$4 sm:$0xff]   ;;  %v5616_v42 = vld [vmem:[#allocation7 + $0x4c] ss:$16 sps:$4 sm:$0xff]   ;;  %v5611_v44 = vld [vmem:[#allocation7 + $0x40] ss:$16 sps:$4 sm:$0xff]  }
  0x63   :  { %v5614_v45 = vld [vmem:[#allocation7 + $0x48] ss:$16 sps:$4 sm:$0xff]   ;;  %v5619_v46 = vld [vmem:[#allocation7 + $0x64] ss:$16 sps:$4 sm:$0xff]   ;;  %v5622_v47 = vld [vmem:[#allocation7 + $0x6c] ss:$16 sps:$4 sm:$0xff]  }
  0x64   :  { %158 = vmatpush1.msra.mxu0 %v132_v26  ;;  %v5617_v48 = vld [vmem:[#allocation7 + $0x60] ss:$16 sps:$4 sm:$0xff]   ;;  %v5620_v49 = vld [vmem:[#allocation7 + $0x68] ss:$16 sps:$4 sm:$0xff]   ;;  %v5625_v50 = vld [vmem:[#allocation7 + $0x84] ss:$16 sps:$4 sm:$0xff]  }
  0x65   :  { %4981 = vmatmul.mubr.msk.f32.vlgmr.msra.gmra.mrb[0].mxu0 %vm136_vm0, %v112_v28  ;;  %2772 = vmatprep.subr.bf16.mxu0 %v5601_v30  ;;  %v5628_v51 = vld [vmem:[#allocation7 + $0x8c] ss:$16 sps:$4 sm:$0xff]   ;;  %v5623_v52 = vld [vmem:[#allocation7 + $0x80] ss:$16 sps:$4 sm:$0xff]   ;;  %v5626_v53 = vld [vmem:[#allocation7 + $0x88] ss:$16 sps:$4 sm:$0xff]  }
  0x66   :  { %219 = vmatprep.mubr.f32.mxu0 %v6319_v1  ;;  %2773 = vmatpush1.bf16.msra.mxu0 %v5599_v31  ;;  %v5631_v54 = vld [vmem:[#allocation7 + $0xa4] ss:$16 sps:$4 sm:$0xff]   ;;  %v5634_v55 = vld [vmem:[#allocation7 + $0xac] ss:$16 sps:$4 sm:$0xff]   ;;  %v5629_v56 = vld [vmem:[#allocation7 + $0xa0] ss:$16 sps:$4 sm:$0xff]  }
  0x67   :  { %247 = vmatpush1.msra.mxu1 %v134_v33  ;;  %2774 = vmatprep.subr.bf16.mxu0 %v5607_v36  ;;  %v5632_v57 = vld [vmem:[#allocation7 + $0xa8] ss:$16 sps:$4 sm:$0xff]   ;;  %v5637_v58 = vld [vmem:[#allocation7 + $0xc4] ss:$16 sps:$4 sm:$0xff]   ;;  %v5640_v59 = vld [vmem:[#allocation7 + $0xcc] ss:$16 sps:$4 sm:$0xff]   ;;  %v343_v36 = vlaneseq }
  0x68   :  { %4985 = vmatmul.mubr.msk.f32.vlgmr.msra.gmra.mrb[0].mxu1 %vm136_vm0, %v112_v28  ;;  %3090 = vmatprep.subr.bf16.mxu1 %v5604_v35  ;;  %v5635_v60 = vld [vmem:[#allocation7 + $0xc0] ss:$16 sps:$4 sm:$0xff]   ;;  %v5638_v61 = vld [vmem:[#allocation7 + $0xc8] ss:$16 sps:$4 sm:$0xff]   ;;  %v5643_v62 = vld [vmem:[#allocation7 + $0xe4] ss:$16 sps:$4 sm:$0xff]  }
  0x69   :  { %4982 = vmatmul.mubr.msk.f32.gmra.mrb[2].mxu0 %vm136_vm0, %v113_v32  ;;  %308 = vmatprep.mubr.f32.mxu1 %v6319_v1  ;;  %v5646_v63 = vld [vmem:[#allocation7 + $0xec] ss:$16 sps:$4 sm:$0xff]   ;;  %v5641_v0 = vld [vmem:[#allocation7 + $0xe0] ss:$16 sps:$4 sm:$0xff]   ;;  %v5649_v2 = vld [vmem:[#allocation7 + $0x104] ss:$16 sps:$4 sm:$0xff]  }
  0x6a   :  { %225 = vmatprep.mubr.f32.mxu0 %v6319_v1  ;;  %3091 = vmatpush1.bf16.msra.mxu1 %v5602_v34  ;;  %v5652_v3 = vld [vmem:[#allocation7 + $0x10c] ss:$16 sps:$4 sm:$0xff]   ;;  %v5647_v4 = vld [vmem:[#allocation7 + $0x100] ss:$16 sps:$4 sm:$0xff]   ;;  %v5650_v5 = vld [vmem:[#allocation7 + $0x108] ss:$16 sps:$4 sm:$0xff]  }
  0x6b   :  { %3092 = vmatprep.subr.bf16.mxu1 %v5610_v37  ;;  %2775 = vmatpush1.bf16.msra.mxu0 %v5605_v39  ;;  %v5655_v6 = vld [vmem:[#allocation7 + $0x124] ss:$16 sps:$4 sm:$0xff]   ;;  %v5658_v7 = vld [vmem:[#allocation7 + $0x12c] ss:$16 sps:$4 sm:$0xff]   ;;  %v5653_v8 = vld [vmem:[#allocation7 + $0x120] ss:$16 sps:$4 sm:$0xff]  }
  0x6c   :  { %4986 = vmatmul.mubr.msk.f32.gmra.mrb[2].mxu1 %vm136_vm0, %v113_v32  ;;  %2776 = vmatprep.subr.bf16.mxu0 %v5613_v41  ;;  %v5656_v9 = vld [vmem:[#allocation7 + $0x128] ss:$16 sps:$4 sm:$0xff]   ;;  %v5661_v10 = vld [vmem:[#allocation7 + $0x144] ss:$16 sps:$4 sm:$0xff]   ;;  %v5664_v11 = vld [vmem:[#allocation7 + $0x14c] ss:$16 sps:$4 sm:$0xff]  }
  0x6d   :  { %4983 = vmatmul.mubr.msk.f32.gmra.mrb[4].mxu0 %vm136_vm0, %v114_v38  ;;  %314 = vmatprep.mubr.f32.mxu1 %v6319_v1  ;;  %v5659_v12 = vld [vmem:[#allocation7 + $0x140] ss:$16 sps:$4 sm:$0xff]   ;;  %v5662_v13 = vld [vmem:[#allocation7 + $0x148] ss:$16 sps:$4 sm:$0xff]   ;;  %v5667_v14 = vld [vmem:[#allocation7 + $0x164] ss:$16 sps:$4 sm:$0xff]  }
  0x6e   :  { %231 = vmatprep.mubr.f32.mxu0 %v6319_v1  ;;  %3093 = vmatpush1.bf16.msra.mxu1 %v5608_v40  ;;  %v5670_v15 = vld [vmem:[#allocation7 + $0x16c] ss:$16 sps:$4 sm:$0xff]   ;;  %v5665_v16 = vld [vmem:[#allocation7 + $0x160] ss:$16 sps:$4 sm:$0xff]   ;;  %v5668_v17 = vld [vmem:[#allocation7 + $0x168] ss:$16 sps:$4 sm:$0xff]  }
  0x6f   :  { %3094 = vmatprep.subr.bf16.mxu1 %v5616_v42  ;;  %2777 = vmatpush1.bf16.msra.mxu0 %v5611_v44  ;;  %v5673_v18 = vld [vmem:[#allocation7 + $0x184] ss:$16 sps:$4 sm:$0xff]   ;;  %v5676_v19 = vld [vmem:[#allocation7 + $0x18c] ss:$16 sps:$4 sm:$0xff]   ;;  %v5671_v20 = vld [vmem:[#allocation7 + $0x180] ss:$16 sps:$4 sm:$0xff]  }
  0x70   :  { %4987 = vmatmul.mubr.msk.f32.gmra.mrb[4].mxu1 %vm136_vm0, %v114_v38  ;;  %2778 = vmatprep.subr.bf16.mxu0 %v5619_v46  ;;  %v5674_v21 = vld [vmem:[#allocation7 + $0x188] ss:$16 sps:$4 sm:$0xff]   ;;  %v5679_v22 = vld [vmem:[#allocation7 + $0x1a4] ss:$16 sps:$4 sm:$0xff]   ;;  %v5682_v23 = vld [vmem:[#allocation7 + $0x1ac] ss:$16 sps:$4 sm:$0xff]  }
  0x71   :  { %4984 = vmatmul.mubr.msk.f32.gmra.mrb[6].mxu0 %vm136_vm0, %v115_v43  ;;  %320 = vmatprep.mubr.f32.mxu1 %v6319_v1  ;;  %v5644_v1 = vld [vmem:[#allocation7 + $0xe8] ss:$16 sps:$4 sm:$0xff]   ;;  %v5677_v24 = vld [vmem:[#allocation7 + $0x1a0] ss:$16 sps:$4 sm:$0xff]   ;;  %v5685_v26 = vld [vmem:[#allocation7 + $0x1c4] ss:$16 sps:$4 sm:$0xff]  }
  0x72   :  { %3095 = vmatpush1.bf16.msra.mxu1 %v5614_v45  ;;  %v5680_v25 = vld [vmem:[#allocation7 + $0x1a8] ss:$16 sps:$4 sm:$0xff]   ;;  %v5688_v27 = vld [vmem:[#allocation7 + $0x1cc] ss:$16 sps:$4 sm:$0xff]   ;;  %v5683_v28 = vld [vmem:[#allocation7 + $0x1c0] ss:$16 sps:$4 sm:$0xff]  }
  0x73   :  { %3096 = vmatprep.subr.bf16.mxu1 %v5622_v47  ;;  %2779 = vmatpush1.bf16.msra.mxu0 %v5617_v48  ;;  %v5686_v29 = vld [vmem:[#allocation7 + $0x1c8] ss:$16 sps:$4 sm:$0xff]   ;;  %v5691_v30 = vld [vmem:[#allocation7 + $0x1e4] ss:$16 sps:$4 sm:$0xff]   ;;  %v5694_v31 = vld [vmem:[#allocation7 + $0x1ec] ss:$16 sps:$4 sm:$0xff]  }
  0x74   :  { %4988 = vmatmul.mubr.msk.f32.gmra.mrb[6].mxu1 %vm136_vm0, %v115_v43  ;;  %2780 = vmatprep.subr.bf16.mxu0 %v5625_v50  ;;  %v5689_v32 = vld [vmem:[#allocation7 + $0x1e0] ss:$16 sps:$4 sm:$0xff]   ;;  %v5692_v33 = vld [vmem:[#allocation7 + $0x1e8] ss:$16 sps:$4 sm:$0xff]   ;;  %v5697_v34 = vld [vmem:[#allocation7 + $0x204] ss:$16 sps:$4 sm:$0xff]  }
  0x75   :  { %v5700_v35 = vld [vmem:[#allocation7 + $0x20c] ss:$16 sps:$4 sm:$0xff]   ;;  %v6456_v38 = vshrl.u32 %v343_v36, 7 }
  0x76   :  { %3097 = vmatpush1.bf16.msra.mxu1 %v5620_v49 }
  0x77   :  { %3098 = vmatprep.subr.bf16.mxu1 %v5628_v51  ;;  %2781 = vmatpush1.bf16.msra.mxu0 %v5623_v52  ;;  %vm345_vm1 = vcmp.lt.s32.totalorder %v6456_v38, 7  ;;  %vm394_vm2 = vcmp.lt.s32.totalorder %v6456_v38, 6  ;;  %vm427_vm3 = vcmp.lt.s32.totalorder %v6456_v38, 4 }
  0x78   :  { %2782 = vmatprep.subr.bf16.mxu0 %v5631_v54 }
  0x7a   :  { %3099 = vmatpush1.bf16.msra.mxu1 %v5626_v53 }
  0x7b   :  { %3100 = vmatprep.subr.bf16.mxu1 %v5634_v55  ;;  %2783 = vmatpush1.bf16.msra.mxu0 %v5629_v56 }
  0x7c   :  { %2784 = vmatprep.subr.bf16.mxu0 %v5637_v58 }
  0x7e   :  { %3101 = vmatpush1.bf16.msra.mxu1 %v5632_v57 }
  0x7f   :  { %3102 = vmatprep.subr.bf16.mxu1 %v5640_v59  ;;  %2785 = vmatpush1.bf16.msra.mxu0 %v5635_v60 }
  0x80   :  { %2786 = vmatprep.subr.bf16.mxu0 %v5643_v62 }
  0x82   :  { %3103 = vmatpush1.bf16.msra.mxu1 %v5638_v61 }
  0x83   :  { %3104 = vmatprep.subr.bf16.mxu1 %v5646_v63  ;;  %2787 = vmatpush1.bf16.msra.mxu0 %v5641_v0 }
  0x84   :  { %2788 = vmatprep.subr.bf16.mxu0 %v5649_v2 }
  0x86   :  { %3105 = vmatpush1.bf16.msra.mxu1 %v5644_v1 }
  0x87   :  { %3106 = vmatprep.subr.bf16.mxu1 %v5652_v3  ;;  %2789 = vmatpush1.bf16.msra.mxu0 %v5647_v4 }
  0x88   :  { %2790 = vmatprep.subr.bf16.mxu0 %v5655_v6 }
  0x8a   :  { %3107 = vmatpush1.bf16.msra.mxu1 %v5650_v5 }
  0x8b   :  { %3108 = vmatprep.subr.bf16.mxu1 %v5658_v7  ;;  %2791 = vmatpush1.bf16.msra.mxu0 %v5653_v8 }
  0x8c   :  { %2792 = vmatprep.subr.bf16.mxu0 %v5661_v10 }
  0x8e   :  { %3109 = vmatpush1.bf16.msra.mxu1 %v5656_v9 }
  0x8f   :  { %3110 = vmatprep.subr.bf16.mxu1 %v5664_v11  ;;  %2793 = vmatpush1.bf16.msra.mxu0 %v5659_v12 }
  0x90   :  { %2794 = vmatprep.subr.bf16.mxu0 %v5667_v14 }
  0x92   :  { %3111 = vmatpush1.bf16.msra.mxu1 %v5662_v13 }
  0x93   :  { %3112 = vmatprep.subr.bf16.mxu1 %v5670_v15  ;;  %2795 = vmatpush1.bf16.msra.mxu0 %v5665_v16 }
  0x94   :  { %2796 = vmatprep.subr.bf16.mxu0 %v5673_v18 }
  0x96   :  { %3113 = vmatpush1.bf16.msra.mxu1 %v5668_v17 }
  0x97   :  { %3114 = vmatprep.subr.bf16.mxu1 %v5676_v19  ;;  %2797 = vmatpush1.bf16.msra.mxu0 %v5671_v20 }
  0x98   :  { %2798 = vmatprep.subr.bf16.mxu0 %v5679_v22  ;;  %v5698_v22 = vld [vmem:[#allocation7 + $0x208] ss:$16 sps:$4 sm:$0xff]  }
  0x9a   :  { %3115 = vmatpush1.bf16.msra.mxu1 %v5674_v21  ;;  %v5695_v21 = vld [vmem:[#allocation7 + $0x200] ss:$16 sps:$4 sm:$0xff]  }
  0x9b   :  { %3116 = vmatprep.subr.bf16.mxu1 %v5682_v23  ;;  %2799 = vmatpush1.bf16.msra.mxu0 %v5677_v24 }
  0x9c   :  { %2800 = vmatprep.subr.bf16.mxu0 %v5685_v26 }
  0x9e   :  { %3117 = vmatpush1.bf16.msra.mxu1 %v5680_v25 }
  0x9f   :  { %3118 = vmatprep.subr.bf16.mxu1 %v5688_v27  ;;  %2801 = vmatpush1.bf16.msra.mxu0 %v5683_v28  ;;  %v5703_v27 = vld [vmem:[#allocation7 + $0x224] ss:$16 sps:$4 sm:$0xff]   ;;  %v5706_v28 = vld [vmem:[#allocation7 + $0x22c] ss:$16 sps:$4 sm:$0xff]  }
  0xa0   :  { %2802 = vmatprep.subr.bf16.mxu0 %v5691_v30 }
  0xa2   :  { %3119 = vmatpush1.bf16.msra.mxu1 %v5686_v29 }
  0xa3   :  { %3120 = vmatprep.subr.bf16.mxu1 %v5694_v31  ;;  %2803 = vmatpush1.bf16.msra.mxu0 %v5689_v32  ;;  %v5701_v31 = vld [vmem:[#allocation7 + $0x220] ss:$16 sps:$4 sm:$0xff]  }
  0xa4   :  { %2825 = vmatprep.subr.bf16.mxu0 %v5697_v34 }
  0xa6   :  { %3121 = vmatpush1.bf16.msra.mxu1 %v5692_v33 }
  0xa7   :  { %3143 = vmatprep.subr.bf16.mxu1 %v5700_v35 }
 0x138   :  { %v215_v37 = vpop.f32.mrb[0].mxu0 }
 0x139   :  { %v217_v39 = vpop.f32.mrb[1].mxu0  ;;  %v327_v41 = vrot.slane %v215_v37, 1 }
 0x13a   :  { %v328_v45 = vrot.slane %v217_v39, 1 }
 0x13b   :  { %v6459_v44 = vpop.f32.mrb[0].mxu1 }
 0x13c   :  { %v221_v40 = vpop.f32.mrb[2].mxu0  ;;  %v6461_v47 = vpop.f32.mrb[1].mxu1  ;;  %v329_v52 = vrot.slane %v6459_v44, 1 }
 0x13d   :  { %v331_v42 = vrot.slane %v221_v40, 1  ;;  %v223_v43 = vpop.f32.mrb[3].mxu0  ;;  %v330_v56 = vrot.slane %v6461_v47, 1 }
 0x13e   :  { %v332_v46 = vrot.slane %v223_v43, 1 }
 0x13f   :  { %v354_v48 = vsel %vm345_vm1, %v327_v41, %v331_v42  ;;  %v6473_v57 = vpop.f32.mrb[2].mxu1 }
 0x140   :  { %v6465_v49 = vmax.f32 %v215_v37, %v354_v48  ;;  %v355_v50 = vsel %vm345_vm1, %v328_v45, %v332_v46  ;;  %v227_v51 = vpop.f32.mrb[4].mxu0  ;;  %v333_v59 = vrot.slane %v6473_v57, 1  ;;  %v6476_v60 = vpop.f32.mrb[3].mxu1 }
 0x141   :  { %v6470_v53 = vmax.f32 %v217_v39, %v355_v50  ;;  %v335_v54 = vrot.slane %v227_v51, 1  ;;  %v229_v55 = vpop.f32.mrb[5].mxu0  ;;  %v334_v0 = vrot.slane %v6476_v60, 1  ;;  %v5712_v50 = vld [vmem:[#allocation7 + $0x24c] ss:$16 sps:$4 sm:$0xff]  }
 0x142   :  { %v336_v58 = vrot.slane %v229_v55, 1  ;;  %v378_v61 = vrot.slane %v6465_v49, 2  ;;  %v411_v62 = vrot.slane %v6465_v49, 4  ;;  %v356_v4 = vsel %vm345_vm1, %v329_v52, %v333_v59 }
 0x143   :  { %v350_v63 = vsel %vm345_vm1, %v331_v42, %v335_v54  ;;  %v379_v5 = vrot.slane %v6470_v53, 2  ;;  %v6498_v9 = vmax.f32 %v6459_v44, %v356_v4  ;;  %v357_v10 = vsel %vm345_vm1, %v330_v56, %v334_v0  ;;  %v6506_v11 = vpop.f32.mrb[4].mxu1  ;;  %v5715_v44 = vld [vmem:[#allocation7 + $0x264] ss:$16 sps:$4 sm:$0xff]  }
 0x144   :  { %v6484_v1 = vmax.f32 %v221_v40, %v350_v63  ;;  %v351_v2 = vsel %vm345_vm1, %v332_v46, %v336_v58  ;;  %v233_v3 = vpop.f32.mrb[6].mxu0  ;;  %v6511_v15 = vpop.f32.mrb[5].mxu1  ;;  %v412_v16 = vrot.slane %v6470_v53, 4  ;;  %v6535_v33 = vmax.f32 %v6461_v47, %v357_v10  ;;  %v5709_v46 = vld [vmem:[#allocation7 + $0x244] ss:$16 sps:$4 sm:$0xff]  }
 0x145   :  { %v6495_v6 = vmax.f32 %v223_v43, %v351_v2  ;;  %v339_v7 = vrot.slane %v233_v3, 1  ;;  %v235_v8 = vpop.f32.mrb[7].mxu0  ;;  %v380_v32 = vrot.slane %v6498_v9, 2  ;;  %v413_v39 = vrot.slane %v6498_v9, 4 }
 0x146   :  { %v382_v12 = vrot.slane %v6484_v1, 2  ;;  %v444_v13 = vpack.c.bf16 %v6484_v1, %v6465_v49  ;;  %v340_v14 = vrot.slane %v235_v8, 1  ;;  %v415_v17 = vrot.slane %v6484_v1, 4 }
 0x147   :  { %v346_v18 = vsel %vm345_vm1, %v335_v54, %v339_v7  ;;  %v358_v19 = vsel %vm345_vm1, %v339_v7, %v327_v41  ;;  %v445_v20 = vpack.c.bf16 %v6495_v6, %v6470_v53  ;;  %v322_v34 = vpop.f32.mrb[6].mxu1  ;;  %v338_v54 = vrot.slane %v6511_v15, 1 }
 0x148   :  { %v6521_v23 = vmax.f32 %v227_v51, %v346_v18  ;;  %v6523_v24 = vmax.f32 %v233_v3, %v358_v19  ;;  %v347_v25 = vsel %vm345_vm1, %v336_v58, %v340_v14  ;;  %v359_v26 = vsel %vm345_vm1, %v340_v14, %v328_v45  ;;  %v324_v40 = vpop.f32.mrb[7].mxu1  ;;  %v5704_v45 = vld [vmem:[#allocation7 + $0x228] ss:$16 sps:$4 sm:$0xff]  }
 0x149   :  { %v6529_v29 = vmax.f32 %v229_v55, %v347_v25  ;;  %v6531_v30 = vmax.f32 %v235_v8, %v359_v26  ;;  %2804 = vmatprep.mubr.bf16.mxu0 %v445_v20  ;;  %3122 = vmatprep.mubr.bf16.mxu1 %v445_v20  ;;  %v337_v51 = vrot.slane %v6506_v11, 1  ;;  %v341_v55 = vrot.slane %v322_v34, 1  ;;  %v5710_v14 = vld [vmem:[#allocation7 + $0x248] ss:$16 sps:$4 sm:$0xff]   ;;  %v5718_v20 = vld [vmem:[#allocation7 + $0x26c] ss:$16 sps:$4 sm:$0xff]  }
 0x14a   :  { %v386_v35 = vrot.slane %v6521_v23, 2  ;;  %v390_v36 = vrot.slane %v6523_v24, 2  ;;  %v419_v37 = vrot.slane %v6521_v23, 4  ;;  %2805 = vmatmul.mubr.bf16.vlgmr.msra.gmra.mrb[8].mxu0 %v444_v13  ;;  %3123 = vmatmul.mubr.bf16.vlgmr.msra.gmra.mrb[8].mxu1 %v444_v13  ;;  %v423_v41 = vrot.slane %v6523_v24, 4 }
 0x14b   :  { %v391_v42 = vrot.slane %v6531_v30, 2  ;;  %2826 = vmatpush1.bf16.msra.mxu0 %v5695_v21  ;;  %3144 = vmatpush1.bf16.msra.mxu1 %v5698_v22  ;;  %v457_v43 = vpack.c.bf16 %v6531_v30, %v6529_v29  ;;  %v456_v48 = vpack.c.bf16 %v6523_v24, %v6521_v23  ;;  %v342_v58 = vrot.slane %v324_v40, 1  ;;  %v5731_v23 = vld [vmem:[#allocation7 + $0x2c0] ss:$16 sps:$4 sm:$0xff]  }
 0x14c   :  { %2827 = vmatprep.subr.bf16.mxu0 %v5703_v27  ;;  %3145 = vmatprep.subr.bf16.mxu1 %v5706_v28  ;;  %v424_v63 = vrot.slane %v6531_v30, 4  ;;  %v383_v2 = vrot.slane %v6495_v6, 2  ;;  %v399_v3 = vsel %vm394_vm2, %v382_v12, %v386_v35  ;;  %v403_v4 = vsel %vm394_vm2, %v378_v61, %v382_v12  ;;  %v5707_v12 = vld [vmem:[#allocation7 + $0x240] ss:$16 sps:$4 sm:$0xff]  }
 0x14d   :  { %2814 = vmatprep.mubr.bf16.mxu0 %v457_v43  ;;  %3132 = vmatprep.mubr.bf16.mxu1 %v457_v43  ;;  %v352_v7 = vsel %vm345_vm1, %v333_v59, %v337_v51  ;;  %v353_v8 = vsel %vm345_vm1, %v334_v0, %v338_v54  ;;  %v348_v10 = vsel %vm345_vm1, %v337_v51, %v341_v55  ;;  %v387_v19 = vrot.slane %v6529_v29, 2 }
 0x14e   :  { %v360_v13 = vsel %vm345_vm1, %v341_v55, %v329_v52  ;;  %v6574_v18 = vmax.f32 %v6473_v57, %v352_v7  ;;  %v6577_v59 = vmax.f32 %v6476_v60, %v353_v8  ;;  %v6580_v0 = vmax.f32 %v6506_v11, %v348_v10 }
 0x14f   :  { %2828 = vmatpush1.bf16.msra.mxu0 %v5701_v31  ;;  %3146 = vmatpush1.bf16.msra.mxu1 %v5704_v45  ;;  %v6583_v52 = vmax.f32 %v322_v34, %v360_v13  ;;  %v349_v21 = vsel %vm345_vm1, %v338_v54, %v342_v58  ;;  %v361_v57 = vsel %vm345_vm1, %v342_v58, %v330_v56  ;;  %v381_v60 = vrot.slane %v6535_v33, 2  ;;  %v5713_v31 = vld [vmem:[#allocation7 + $0x260] ss:$16 sps:$4 sm:$0xff]   ;;  %v5716_v34 = vld [vmem:[#allocation7 + $0x268] ss:$16 sps:$4 sm:$0xff]  }
 0x150   :  { %2829 = vmatprep.subr.bf16.mxu0 %v5709_v46  ;;  %3147 = vmatprep.subr.bf16.mxu1 %v5712_v50  ;;  %v384_v11 = vrot.slane %v6574_v18, 2  ;;  %v417_v22 = vrot.slane %v6574_v18, 4  ;;  %v6597_v25 = vpack.c.bf16 %v6574_v18, %v6498_v9  ;;  %v416_v26 = vrot.slane %v6495_v6, 4  ;;  %v5721_v50 = vld [vmem:[#allocation7 + $0x284] ss:$16 sps:$4 sm:$0xff]  }
 0x151   :  { %v388_v47 = vrot.slane %v6580_v0, 2  ;;  %v392_v56 = vrot.slane %v6583_v52, 2  ;;  %v421_v27 = vrot.slane %v6580_v0, 4  ;;  %v6604_v28 = vmax.f32 %v6511_v15, %v349_v21  ;;  %v5724_v15 = vld [vmem:[#allocation7 + $0x28c] ss:$16 sps:$4 sm:$0xff]  }
 0x152   :  { %2815 = vmatmul.mubr.bf16.gmra.mrb[12].mxu0 %v456_v48  ;;  %3133 = vmatmul.mubr.bf16.gmra.mrb[12].mxu1 %v456_v48  ;;  %v425_v43 = vrot.slane %v6583_v52, 4  ;;  %v6607_v45 = vmax.f32 %v324_v40, %v361_v57  ;;  %v447_v46 = vpack.c.bf16 %v6577_v59, %v6535_v33  ;;  %v6613_v48 = vpack.c.bf16 %v6583_v52, %v6580_v0  ;;  %v5748_v0 = vld [vmem:[#allocation7 + $0x30c] ss:$16 sps:$4 sm:$0xff]   ;;  %v5751_v9 = vld [vmem:[#allocation7 + $0x324] ss:$16 sps:$4 sm:$0xff]  }
 0x153   :  { %2830 = vmatpush1.bf16.msra.mxu0 %v5707_v12  ;;  %3148 = vmatpush1.bf16.msra.mxu1 %v5710_v14  ;;  %v400_v51 = vsel %vm394_vm2, %v383_v2, %v387_v19  ;;  %v404_v40 = vsel %vm394_vm2, %v379_v5, %v383_v2  ;;  %v6621_v54 = vpack.c.bf16 %v399_v3, %v403_v4  ;;  %v385_v55 = vrot.slane %v6577_v59, 2  ;;  %v5719_v12 = vld [vmem:[#allocation7 + $0x280] ss:$16 sps:$4 sm:$0xff]   ;;  %v5722_v14 = vld [vmem:[#allocation7 + $0x288] ss:$16 sps:$4 sm:$0xff]  }
 0x154   :  { %2831 = vmatprep.subr.bf16.mxu0 %v5715_v44  ;;  %3149 = vmatprep.subr.bf16.mxu1 %v5718_v20  ;;  %v393_v58 = vrot.slane %v6607_v45, 2  ;;  %v426_v7 = vrot.slane %v6607_v45, 4  ;;  %v6628_v8 = vpack.c.bf16 %v6607_v45, %v6604_v28  ;;  %v6630_v10 = vpack.c.bf16 %v400_v51, %v404_v40  ;;  %v5727_v44 = vld [vmem:[#allocation7 + $0x2a4] ss:$16 sps:$4 sm:$0xff]   ;;  %v5730_v20 = vld [vmem:[#allocation7 + $0x2ac] ss:$16 sps:$4 sm:$0xff]  }
 0x155   :  { %2857 = vmatprep.mubr.bf16.mxu0 %v447_v46  ;;  %3175 = vmatprep.mubr.bf16.mxu1 %v447_v46  ;;  %v396_v2 = vsel %vm394_vm2, %v387_v19, %v391_v42  ;;  %v408_v3 = vsel %vm394_vm2, %v391_v42, %v379_v5  ;;  %v395_v4 = vsel %vm394_vm2, %v386_v35, %v390_v36  ;;  %v389_v42 = vrot.slane %v6604_v28, 2  ;;  %v5728_v40 = vld [vmem:[#allocation7 + $0x2a8] ss:$16 sps:$4 sm:$0xff]   ;;  %v5754_v52 = vld [vmem:[#allocation7 + $0x32c] ss:$16 sps:$4 sm:$0xff]  }
 0x156   :  { %v407_v13 = vsel %vm394_vm2, %v390_v36, %v378_v61  ;;  %v6654_v19 = vpack.c.bf16 %v408_v3, %v396_v2  ;;  %v406_v35 = vsel %vm394_vm2, %v381_v60, %v385_v55  ;;  %v401_v61 = vsel %vm394_vm2, %v384_v11, %v388_v47  ;;  %v5736_v2 = vld [vmem:[#allocation7 + $0x2cc] ss:$16 sps:$4 sm:$0xff]  }
 0x157   :  { %2832 = vmatpush1.bf16.msra.mxu0 %v5713_v31  ;;  %3150 = vmatpush1.bf16.msra.mxu1 %v5716_v34  ;;  %v6656_v5 = vpack.c.bf16 %v407_v13, %v395_v4  ;;  %v405_v36 = vsel %vm394_vm2, %v380_v32, %v384_v11  ;;  %v410_v21 = vsel %vm394_vm2, %v393_v58, %v381_v60  ;;  %v420_v57 = vrot.slane %v6529_v29, 4  ;;  %v5725_v11 = vld [vmem:[#allocation7 + $0x2a0] ss:$16 sps:$4 sm:$0xff]  }
 0x158   :  { %2833 = vmatprep.subr.bf16.mxu0 %v5721_v50  ;;  %3151 = vmatprep.subr.bf16.mxu1 %v5724_v15  ;;  %v402_v31 = vsel %vm394_vm2, %v385_v55, %v389_v42  ;;  %v6672_v34 = vpack.c.bf16 %v401_v61, %v405_v36  ;;  %v398_v46 = vsel %vm394_vm2, %v389_v42, %v393_v58  ;;  %v5733_v58 = vld [vmem:[#allocation7 + $0x2c4] ss:$16 sps:$4 sm:$0xff]   ;;  %v5746_v61 = vld [vmem:[#allocation7 + $0x308] ss:$16 sps:$4 sm:$0xff]  }
 0x159   :  { %v397_v50 = vsel %vm394_vm2, %v388_v47, %v392_v56  ;;  %v6678_v15 = vpack.c.bf16 %v402_v31, %v406_v35  ;;  %v6680_v51 = vpack.c.bf16 %v410_v21, %v398_v46  ;;  %v409_v29 = vsel %vm394_vm2, %v392_v56, %v380_v32  ;;  %v5757_v36 = vld [vmem:[#allocation7 + $0x344] ss:$16 sps:$4 sm:$0xff]   ;;  %v5760_v21 = vld [vmem:[#allocation7 + $0x34c] ss:$16 sps:$4 sm:$0xff]   ;;  %v5758_v31 = vld [vmem:[#allocation7 + $0x348] ss:$16 sps:$4 sm:$0xff]  }
 0x15a   :  { %v433_v60 = vsel %vm427_vm3, %v416_v26, %v420_v57  ;;  %v6690_v55 = vpack.c.bf16 %v409_v29, %v397_v50  ;;  %v437_v47 = vsel %vm427_vm3, %v412_v16, %v416_v26  ;;  %v432_v32 = vsel %vm427_vm3, %v415_v17, %v419_v37  ;;  %v5763_v46 = vld [vmem:[#allocation7 + $0x364] ss:$16 sps:$4 sm:$0xff]   ;;  %v5766_v50 = vld [vmem:[#allocation7 + $0x36c] ss:$16 sps:$4 sm:$0xff]   ;;  %v5761_v29 = vld [vmem:[#allocation7 + $0x360] ss:$16 sps:$4 sm:$0xff]  }
 0x15b   :  { %2834 = vmatpush1.bf16.msra.mxu0 %v5719_v12  ;;  %3152 = vmatpush1.bf16.msra.mxu1 %v5722_v14  ;;  %v414_v56 = vrot.slane %v6535_v33, 4  ;;  %v6705_v3 = vpack.c.bf16 %v433_v60, %v437_v47  ;;  %v436_v6 = vsel %vm427_vm3, %v411_v62, %v415_v17  ;;  %v429_v26 = vsel %vm427_vm3, %v420_v57, %v424_v63  ;;  %v5755_v57 = vld [vmem:[#allocation7 + $0x340] ss:$16 sps:$4 sm:$0xff]   ;;  %v5764_v60 = vld [vmem:[#allocation7 + $0x368] ss:$16 sps:$4 sm:$0xff]  }
 0x15c   :  { %2835 = vmatprep.subr.bf16.mxu0 %v5727_v44  ;;  %3153 = vmatprep.subr.bf16.mxu1 %v5730_v20  ;;  %v418_v33 = vrot.slane %v6577_v59, 4  ;;  %v6718_v4 = vpack.c.bf16 %v432_v32, %v436_v6  ;;  %v441_v1 = vsel %vm427_vm3, %v424_v63, %v412_v16  ;;  %v428_v17 = vsel %vm427_vm3, %v419_v37, %v423_v41  ;;  %v5734_v37 = vld [vmem:[#allocation7 + $0x2c8] ss:$16 sps:$4 sm:$0xff]   ;;  %v5745_v20 = vld [vmem:[#allocation7 + $0x304] ss:$16 sps:$4 sm:$0xff]  }
 0x15d   :  { %v440_v59 = vsel %vm427_vm3, %v423_v41, %v411_v62  ;;  %v6738_v53 = vpack.c.bf16 %v441_v1, %v429_v26  ;;  %v422_v16 = vrot.slane %v6604_v28, 4  ;;  %v434_v49 = vsel %vm427_vm3, %v417_v22, %v421_v27  ;;  %v5739_v41 = vld [vmem:[#allocation7 + $0x2e4] ss:$16 sps:$4 sm:$0xff]   ;;  %v5742_v28 = vld [vmem:[#allocation7 + $0x2ec] ss:$16 sps:$4 sm:$0xff]  }
 0x15e   :  { %v6740_v30 = vpack.c.bf16 %v440_v59, %v428_v17  ;;  %v439_v63 = vsel %vm427_vm3, %v414_v56, %v418_v33  ;;  %v438_v62 = vsel %vm427_vm3, %v413_v39, %v417_v22  ;;  %v443_v24 = vsel %vm427_vm3, %v426_v7, %v414_v56  ;;  %v5740_v44 = vld [vmem:[#allocation7 + $0x2e8] ss:$16 sps:$4 sm:$0xff]   ;;  %v5767_v47 = vld [vmem:[#allocation7 + $0x380] ss:$16 sps:$4 sm:$0xff]   ;;  %v5775_v56 = vld [vmem:[#allocation7 + $0x3a4] ss:$16 sps:$4 sm:$0xff]  }
 0x15f   :  { %2836 = vmatpush1.bf16.msra.mxu0 %v5725_v11  ;;  %3154 = vmatpush1.bf16.msra.mxu1 %v5728_v40  ;;  %v435_v13 = vsel %vm427_vm3, %v418_v33, %v422_v16  ;;  %v6763_v12 = vpack.c.bf16 %v434_v49, %v438_v62  ;;  %v431_v18 = vsel %vm427_vm3, %v422_v16, %v426_v7  ;;  %v5737_v7 = vld [vmem:[#allocation7 + $0x2e0] ss:$16 sps:$4 sm:$0xff]   ;;  %v5769_v11 = vld [vmem:[#allocation7 + $0x384] ss:$16 sps:$4 sm:$0xff]   ;;  %v5772_v40 = vld [vmem:[#allocation7 + $0x38c] ss:$16 sps:$4 sm:$0xff]  }
 0x160   :  { %2837 = vmatprep.subr.bf16.mxu0 %v5733_v58  ;;  %3155 = vmatprep.subr.bf16.mxu1 %v5736_v2  ;;  %v6769_v22 = vpack.c.bf16 %v435_v13, %v439_v63  ;;  %v6771_v14 = vpack.c.bf16 %v443_v24, %v431_v18  ;;  %v430_v42 = vsel %vm427_vm3, %v421_v27, %v425_v43  ;;  %v5743_v27 = vld [vmem:[#allocation7 + $0x300] ss:$16 sps:$4 sm:$0xff]   ;;  %v5770_v32 = vld [vmem:[#allocation7 + $0x388] ss:$16 sps:$4 sm:$0xff]   ;;  %v5778_v58 = vld [vmem:[#allocation7 + $0x3ac] ss:$16 sps:$4 sm:$0xff]  }
 0x161   :  { %v442_v45 = vsel %vm427_vm3, %v425_v43, %v413_v39  ;;  %v5749_v39 = vld [vmem:[#allocation7 + $0x320] ss:$16 sps:$4 sm:$0xff]   ;;  %v5752_v43 = vld [vmem:[#allocation7 + $0x328] ss:$16 sps:$4 sm:$0xff]   ;;  %v5781_v26 = vld [vmem:[#allocation7 + $0x3c4] ss:$16 sps:$4 sm:$0xff]  }
 0x162   :  { %v6785_v35 = vpack.c.bf16 %v442_v45, %v430_v42  ;;  %v5773_v2 = vld [vmem:[#allocation7 + $0x3a0] ss:$16 sps:$4 sm:$0xff]   ;;  %v5776_v6 = vld [vmem:[#allocation7 + $0x3a8] ss:$16 sps:$4 sm:$0xff]   ;;  %v5784_v33 = vld [vmem:[#allocation7 + $0x3cc] ss:$16 sps:$4 sm:$0xff]  }
 0x163   :  { %2838 = vmatpush1.bf16.msra.mxu0 %v5731_v23  ;;  %3156 = vmatpush1.bf16.msra.mxu1 %v5734_v37  ;;  %v5779_v1 = vld [vmem:[#allocation7 + $0x3c0] ss:$16 sps:$4 sm:$0xff]   ;;  %v5782_v17 = vld [vmem:[#allocation7 + $0x3c8] ss:$16 sps:$4 sm:$0xff]   ;;  %v5787_v59 = vld [vmem:[#allocation7 + $0x3e4] ss:$16 sps:$4 sm:$0xff]  }
 0x164   :  { %2839 = vmatprep.subr.bf16.mxu0 %v5739_v41  ;;  %3157 = vmatprep.subr.bf16.mxu1 %v5742_v28  ;;  %v5790_v16 = vld [vmem:[#allocation7 + $0x3ec] ss:$16 sps:$4 sm:$0xff]   ;;  %v5785_v63 = vld [vmem:[#allocation7 + $0x3e0] ss:$16 sps:$4 sm:$0xff]   ;;  %v5788_v23 = vld [vmem:[#allocation7 + $0x3e8] ss:$16 sps:$4 sm:$0xff]  }
 0x165   :  { %v5793_v37 = vld [vmem:[#allocation7 + $0x404] ss:$16 sps:$4 sm:$0xff]   ;;  %v5796_v49 = vld [vmem:[#allocation7 + $0x40c] ss:$16 sps:$4 sm:$0xff]   ;;  %v5791_v62 = vld [vmem:[#allocation7 + $0x400] ss:$16 sps:$4 sm:$0xff]  }
 0x166   :  { %v5794_v24 = vld [vmem:[#allocation7 + $0x408] ss:$16 sps:$4 sm:$0xff]   ;;  %v5799_v41 = vld [vmem:[#allocation7 + $0x424] ss:$16 sps:$4 sm:$0xff]   ;;  %v5802_v28 = vld [vmem:[#allocation7 + $0x42c] ss:$16 sps:$4 sm:$0xff]  }
 0x167   :  { %2840 = vmatpush1.bf16.msra.mxu0 %v5737_v7  ;;  %3158 = vmatpush1.bf16.msra.mxu1 %v5740_v44  ;;  %v5797_v13 = vld [vmem:[#allocation7 + $0x420] ss:$16 sps:$4 sm:$0xff]   ;;  %v5800_v18 = vld [vmem:[#allocation7 + $0x428] ss:$16 sps:$4 sm:$0xff]   ;;  %v5805_v42 = vld [vmem:[#allocation7 + $0x444] ss:$16 sps:$4 sm:$0xff]  }
 0x168   :  { %2841 = vmatprep.subr.bf16.mxu0 %v5745_v20  ;;  %3159 = vmatprep.subr.bf16.mxu1 %v5748_v0  ;;  %v5808_v45 = vld [vmem:[#allocation7 + $0x44c] ss:$16 sps:$4 sm:$0xff]   ;;  %v5803_v7 = vld [vmem:[#allocation7 + $0x440] ss:$16 sps:$4 sm:$0xff]   ;;  %v5806_v44 = vld [vmem:[#allocation7 + $0x448] ss:$16 sps:$4 sm:$0xff]  }
 0x169   :  { %v5811_v20 = vld [vmem:[#allocation7 + $0x464] ss:$16 sps:$4 sm:$0xff]   ;;  %v5812_v0 = vld [vmem:[#allocation7 + $0x468] ss:$16 sps:$4 sm:$0xff]  }
 0x16b   :  { %2842 = vmatpush1.bf16.msra.mxu0 %v5743_v27  ;;  %3160 = vmatpush1.bf16.msra.mxu1 %v5746_v61  ;;  %v5817_v27 = vld [vmem:[#allocation7 + $0x484] ss:$16 sps:$4 sm:$0xff]   ;;  %v5820_v61 = vld [vmem:[#allocation7 + $0x48c] ss:$16 sps:$4 sm:$0xff]  }
 0x16c   :  { %2843 = vmatprep.subr.bf16.mxu0 %v5751_v9  ;;  %3161 = vmatprep.subr.bf16.mxu1 %v5754_v52  ;;  %v5815_v9 = vld [vmem:[#allocation7 + $0x480] ss:$16 sps:$4 sm:$0xff]   ;;  %v5818_v52 = vld [vmem:[#allocation7 + $0x488] ss:$16 sps:$4 sm:$0xff]  }
 0x16f   :  { %2844 = vmatpush1.bf16.msra.mxu0 %v5749_v39  ;;  %3162 = vmatpush1.bf16.msra.mxu1 %v5752_v43  ;;  %v5823_v39 = vld [vmem:[#allocation7 + $0x4a4] ss:$16 sps:$4 sm:$0xff]   ;;  %v5821_v43 = vld [vmem:[#allocation7 + $0x4a0] ss:$16 sps:$4 sm:$0xff]  }
 0x170   :  { %2845 = vmatprep.subr.bf16.mxu0 %v5757_v36  ;;  %3163 = vmatprep.subr.bf16.mxu1 %v5760_v21  ;;  %v5824_v36 = vld [vmem:[#allocation7 + $0x4a8] ss:$16 sps:$4 sm:$0xff]   ;;  %v5829_v21 = vld [vmem:[#allocation7 + $0x4c4] ss:$16 sps:$4 sm:$0xff]  }
 0x173   :  { %2846 = vmatpush1.bf16.msra.mxu0 %v5755_v57  ;;  %3164 = vmatpush1.bf16.msra.mxu1 %v5758_v31  ;;  %v5827_v57 = vld [vmem:[#allocation7 + $0x4c0] ss:$16 sps:$4 sm:$0xff]   ;;  %v5830_v31 = vld [vmem:[#allocation7 + $0x4c8] ss:$16 sps:$4 sm:$0xff]  }
 0x174   :  { %2847 = vmatprep.subr.bf16.mxu0 %v5763_v46  ;;  %3165 = vmatprep.subr.bf16.mxu1 %v5766_v50  ;;  %v5835_v46 = vld [vmem:[#allocation7 + $0x4e4] ss:$16 sps:$4 sm:$0xff]   ;;  %v5838_v50 = vld [vmem:[#allocation7 + $0x4ec] ss:$16 sps:$4 sm:$0xff]  }
 0x177   :  { %2848 = vmatpush1.bf16.msra.mxu0 %v5761_v29  ;;  %3166 = vmatpush1.bf16.msra.mxu1 %v5764_v60  ;;  %v5833_v29 = vld [vmem:[#allocation7 + $0x4e0] ss:$16 sps:$4 sm:$0xff]   ;;  %v5836_v60 = vld [vmem:[#allocation7 + $0x4e8] ss:$16 sps:$4 sm:$0xff]  }
 0x178   :  { %2849 = vmatprep.subr.bf16.mxu0 %v5769_v11  ;;  %3167 = vmatprep.subr.bf16.mxu1 %v5772_v40  ;;  %v5841_v11 = vld [vmem:[#allocation7 + $0x504] ss:$16 sps:$4 sm:$0xff]   ;;  %v5844_v40 = vld [vmem:[#allocation7 + $0x50c] ss:$16 sps:$4 sm:$0xff]  }
 0x17b   :  { %2850 = vmatpush1.bf16.msra.mxu0 %v5767_v47  ;;  %3168 = vmatpush1.bf16.msra.mxu1 %v5770_v32  ;;  %v5839_v47 = vld [vmem:[#allocation7 + $0x500] ss:$16 sps:$4 sm:$0xff]   ;;  %v5842_v32 = vld [vmem:[#allocation7 + $0x508] ss:$16 sps:$4 sm:$0xff]  }
 0x17c   :  { %2851 = vmatprep.subr.bf16.mxu0 %v5775_v56  ;;  %3169 = vmatprep.subr.bf16.mxu1 %v5778_v58  ;;  %v5847_v56 = vld [vmem:[#allocation7 + $0x524] ss:$16 sps:$4 sm:$0xff]   ;;  %v5850_v58 = vld [vmem:[#allocation7 + $0x52c] ss:$16 sps:$4 sm:$0xff]  }
 0x17f   :  { %2852 = vmatpush1.bf16.msra.mxu0 %v5773_v2  ;;  %3170 = vmatpush1.bf16.msra.mxu1 %v5776_v6  ;;  %v5845_v2 = vld [vmem:[#allocation7 + $0x520] ss:$16 sps:$4 sm:$0xff]   ;;  %v5848_v6 = vld [vmem:[#allocation7 + $0x528] ss:$16 sps:$4 sm:$0xff]  }
 0x180   :  { %2853 = vmatprep.subr.bf16.mxu0 %v5781_v26  ;;  %3171 = vmatprep.subr.bf16.mxu1 %v5784_v33  ;;  %v5853_v26 = vld [vmem:[#allocation7 + $0x544] ss:$16 sps:$4 sm:$0xff]   ;;  %v5856_v33 = vld [vmem:[#allocation7 + $0x54c] ss:$16 sps:$4 sm:$0xff]  }
 0x183   :  { %2854 = vmatpush1.bf16.msra.mxu0 %v5779_v1  ;;  %3172 = vmatpush1.bf16.msra.mxu1 %v5782_v17  ;;  %v5851_v1 = vld [vmem:[#allocation7 + $0x540] ss:$16 sps:$4 sm:$0xff]   ;;  %v5854_v17 = vld [vmem:[#allocation7 + $0x548] ss:$16 sps:$4 sm:$0xff]  }
 0x184   :  { %2855 = vmatprep.subr.bf16.mxu0 %v5787_v59  ;;  %3173 = vmatprep.subr.bf16.mxu1 %v5790_v16  ;;  %v5859_v59 = vld [vmem:[#allocation7 + $0x564] ss:$16 sps:$4 sm:$0xff]   ;;  %v5862_v16 = vld [vmem:[#allocation7 + $0x56c] ss:$16 sps:$4 sm:$0xff]  }
 0x187   :  { %2856 = vmatpush1.bf16.msra.mxu0 %v5785_v63  ;;  %3174 = vmatpush1.bf16.msra.mxu1 %v5788_v23  ;;  %v5857_v63 = vld [vmem:[#allocation7 + $0x560] ss:$16 sps:$4 sm:$0xff]   ;;  %v5860_v23 = vld [vmem:[#allocation7 + $0x568] ss:$16 sps:$4 sm:$0xff]  }
 0x188   :  { %2878 = vmatprep.subr.bf16.mxu0 %v5793_v37  ;;  %3196 = vmatprep.subr.bf16.mxu1 %v5796_v49  ;;  %v5865_v37 = vld [vmem:[#allocation7 + $0x584] ss:$16 sps:$4 sm:$0xff]   ;;  %v5868_v49 = vld [vmem:[#allocation7 + $0x58c] ss:$16 sps:$4 sm:$0xff]  }
 0x18a   :  { %2858 = vmatmul.mubr.bf16.vlgmr.msra.gmra.mrb[8].mxu0 %v6597_v25  ;;  %3176 = vmatmul.mubr.bf16.vlgmr.msra.gmra.mrb[8].mxu1 %v6597_v25  ;;  %v5814_v25 = vld [vmem:[#allocation7 + $0x46c] ss:$16 sps:$4 sm:$0xff]  }
 0x18b   :  { %2867 = vmatprep.mubr.bf16.mxu0 %v6628_v8  ;;  %2879 = vmatpush1.bf16.msra.mxu0 %v5791_v62  ;;  %v5863_v62 = vld [vmem:[#allocation7 + $0x580] ss:$16 sps:$4 sm:$0xff]  }
 0x18c   :  { %3185 = vmatprep.mubr.bf16.mxu1 %v6628_v8  ;;  %3197 = vmatpush1.bf16.msra.mxu1 %v5794_v24  ;;  %v5809_v8 = vld [vmem:[#allocation7 + $0x460] ss:$16 sps:$4 sm:$0xff]   ;;  %v5866_v24 = vld [vmem:[#allocation7 + $0x588] ss:$16 sps:$4 sm:$0xff]  }
 0x18d   :  { %2880 = vmatprep.subr.bf16.mxu0 %v5799_v41  ;;  %3198 = vmatprep.subr.bf16.mxu1 %v5802_v28  ;;  %v5871_v41 = vld [vmem:[#allocation7 + $0x5a4] ss:$16 sps:$4 sm:$0xff]   ;;  %v5874_v28 = vld [vmem:[#allocation7 + $0x5ac] ss:$16 sps:$4 sm:$0xff]  }
 0x18f   :  { %2881 = vmatpush1.bf16.msra.mxu0 %v5797_v13  ;;  %v5869_v13 = vld [vmem:[#allocation7 + $0x5a0] ss:$16 sps:$4 sm:$0xff]  }
 0x190   :  { %3199 = vmatpush1.bf16.msra.mxu1 %v5800_v18  ;;  %2882 = vmatprep.subr.bf16.mxu0 %v5805_v42  ;;  %v5872_v18 = vld [vmem:[#allocation7 + $0x5a8] ss:$16 sps:$4 sm:$0xff]   ;;  %v5877_v42 = vld [vmem:[#allocation7 + $0x5c4] ss:$16 sps:$4 sm:$0xff]  }
 0x191   :  { %3200 = vmatprep.subr.bf16.mxu1 %v5808_v45  ;;  %v5880_v45 = vld [vmem:[#allocation7 + $0x5cc] ss:$16 sps:$4 sm:$0xff]  }
 0x192   :  { %2868 = vmatmul.mubr.bf16.gmra.mrb[12].mxu0 %v6613_v48  ;;  %3186 = vmatmul.mubr.bf16.gmra.mrb[12].mxu1 %v6613_v48  ;;  %v5826_v48 = vld [vmem:[#allocation7 + $0x4ac] ss:$16 sps:$4 sm:$0xff]  }
 0x193   :  { %2883 = vmatpush1.bf16.msra.mxu0 %v5803_v7  ;;  %2910 = vmatprep.mubr.bf16.mxu0 %v6630_v10  ;;  %v5875_v7 = vld [vmem:[#allocation7 + $0x5c0] ss:$16 sps:$4 sm:$0xff]  }
 0x194   :  { %3201 = vmatpush1.bf16.msra.mxu1 %v5806_v44  ;;  %3228 = vmatprep.mubr.bf16.mxu1 %v6630_v10  ;;  %v5832_v10 = vld [vmem:[#allocation7 + $0x4cc] ss:$16 sps:$4 sm:$0xff]   ;;  %v5878_v44 = vld [vmem:[#allocation7 + $0x5c8] ss:$16 sps:$4 sm:$0xff]  }
 0x195   :  { %2884 = vmatprep.subr.bf16.mxu0 %v5811_v20  ;;  %3202 = vmatprep.subr.bf16.mxu1 %v5814_v25  ;;  %v5883_v20 = vld [vmem:[#allocation7 + $0x5e4] ss:$16 sps:$4 sm:$0xff]   ;;  %v5886_v25 = vld [vmem:[#allocation7 + $0x5ec] ss:$16 sps:$4 sm:$0xff]  }
 0x197   :  { %2885 = vmatpush1.bf16.msra.mxu0 %v5809_v8  ;;  %v5881_v8 = vld [vmem:[#allocation7 + $0x5e0] ss:$16 sps:$4 sm:$0xff]  }
 0x198   :  { %3203 = vmatpush1.bf16.msra.mxu1 %v5812_v0  ;;  %2886 = vmatprep.subr.bf16.mxu0 %v5817_v27  ;;  %v5884_v0 = vld [vmem:[#allocation7 + $0x5e8] ss:$16 sps:$4 sm:$0xff]   ;;  %v5889_v27 = vld [vmem:[#allocation7 + $0x604] ss:$16 sps:$4 sm:$0xff]  }
 0x199   :  { %3204 = vmatprep.subr.bf16.mxu1 %v5820_v61  ;;  %v5892_v61 = vld [vmem:[#allocation7 + $0x60c] ss:$16 sps:$4 sm:$0xff]  }
 0x19b   :  { %2887 = vmatpush1.bf16.msra.mxu0 %v5815_v9  ;;  %v5887_v9 = vld [vmem:[#allocation7 + $0x600] ss:$16 sps:$4 sm:$0xff]  }
 0x19c   :  { %3205 = vmatpush1.bf16.msra.mxu1 %v5818_v52  ;;  %2888 = vmatprep.subr.bf16.mxu0 %v5823_v39  ;;  %v5890_v52 = vld [vmem:[#allocation7 + $0x608] ss:$16 sps:$4 sm:$0xff]   ;;  %v5895_v39 = vld [vmem:[#allocation7 + $0x624] ss:$16 sps:$4 sm:$0xff]  }
 0x19d   :  { %3206 = vmatprep.subr.bf16.mxu1 %v5826_v48  ;;  %v5898_v48 = vld [vmem:[#allocation7 + $0x62c] ss:$16 sps:$4 sm:$0xff]  }
 0x19f   :  { %2889 = vmatpush1.bf16.msra.mxu0 %v5821_v43  ;;  %v5893_v43 = vld [vmem:[#allocation7 + $0x620] ss:$16 sps:$4 sm:$0xff]  }
 0x1a0   :  { %3207 = vmatpush1.bf16.msra.mxu1 %v5824_v36  ;;  %2890 = vmatprep.subr.bf16.mxu0 %v5829_v21  ;;  %v5896_v36 = vld [vmem:[#allocation7 + $0x628] ss:$16 sps:$4 sm:$0xff]   ;;  %v5901_v21 = vld [vmem:[#allocation7 + $0x644] ss:$16 sps:$4 sm:$0xff]  }
 0x1a1   :  { %3208 = vmatprep.subr.bf16.mxu1 %v5832_v10  ;;  %v5904_v10 = vld [vmem:[#allocation7 + $0x64c] ss:$16 sps:$4 sm:$0xff]  }
 0x1a3   :  { %2891 = vmatpush1.bf16.msra.mxu0 %v5827_v57  ;;  %v5899_v57 = vld [vmem:[#allocation7 + $0x640] ss:$16 sps:$4 sm:$0xff]  }
 0x1a4   :  { %3209 = vmatpush1.bf16.msra.mxu1 %v5830_v31  ;;  %2892 = vmatprep.subr.bf16.mxu0 %v5835_v46  ;;  %v5902_v31 = vld [vmem:[#allocation7 + $0x648] ss:$16 sps:$4 sm:$0xff]   ;;  %v5907_v46 = vld [vmem:[#allocation7 + $0x664] ss:$16 sps:$4 sm:$0xff]  }
 0x1a5   :  { %3210 = vmatprep.subr.bf16.mxu1 %v5838_v50  ;;  %v5908_v50 = vld [vmem:[#allocation7 + $0x668] ss:$16 sps:$4 sm:$0xff]  }
 0x1a7   :  { %2893 = vmatpush1.bf16.msra.mxu0 %v5833_v29  ;;  %v5913_v29 = vld [vmem:[#allocation7 + $0x684] ss:$16 sps:$4 sm:$0xff]  }
 0x1a8   :  { %3211 = vmatpush1.bf16.msra.mxu1 %v5836_v60  ;;  %2894 = vmatprep.subr.bf16.mxu0 %v5841_v11  ;;  %v5916_v60 = vld [vmem:[#allocation7 + $0x68c] ss:$16 sps:$4 sm:$0xff]   ;;  %v5911_v11 = vld [vmem:[#allocation7 + $0x680] ss:$16 sps:$4 sm:$0xff]  }
 0x1a9   :  { %3212 = vmatprep.subr.bf16.mxu1 %v5844_v40  ;;  %v5914_v40 = vld [vmem:[#allocation7 + $0x688] ss:$16 sps:$4 sm:$0xff]  }
 0x1ab   :  { %2895 = vmatpush1.bf16.msra.mxu0 %v5839_v47  ;;  %v5919_v47 = vld [vmem:[#allocation7 + $0x6a4] ss:$16 sps:$4 sm:$0xff]  }
 0x1ac   :  { %3213 = vmatpush1.bf16.msra.mxu1 %v5842_v32  ;;  %2896 = vmatprep.subr.bf16.mxu0 %v5847_v56  ;;  %v5917_v32 = vld [vmem:[#allocation7 + $0x6a0] ss:$16 sps:$4 sm:$0xff]   ;;  %v5925_v56 = vld [vmem:[#allocation7 + $0x6c4] ss:$16 sps:$4 sm:$0xff]  }
 0x1ad   :  { %3214 = vmatprep.subr.bf16.mxu1 %v5850_v58  ;;  %v5928_v58 = vld [vmem:[#allocation7 + $0x6cc] ss:$16 sps:$4 sm:$0xff]  }
 0x1af   :  { %2897 = vmatpush1.bf16.msra.mxu0 %v5845_v2  ;;  %v5923_v2 = vld [vmem:[#allocation7 + $0x6c0] ss:$16 sps:$4 sm:$0xff]  }
 0x1b0   :  { %3215 = vmatpush1.bf16.msra.mxu1 %v5848_v6  ;;  %2898 = vmatprep.subr.bf16.mxu0 %v5853_v26  ;;  %v5926_v6 = vld [vmem:[#allocation7 + $0x6c8] ss:$16 sps:$4 sm:$0xff]   ;;  %v5931_v26 = vld [vmem:[#allocation7 + $0x6e4] ss:$16 sps:$4 sm:$0xff]  }
 0x1b1   :  { %3216 = vmatprep.subr.bf16.mxu1 %v5856_v33  ;;  %v5934_v33 = vld [vmem:[#allocation7 + $0x6ec] ss:$16 sps:$4 sm:$0xff]  }
 0x1b3   :  { %2899 = vmatpush1.bf16.msra.mxu0 %v5851_v1  ;;  %v5929_v1 = vld [vmem:[#allocation7 + $0x6e0] ss:$16 sps:$4 sm:$0xff]  }
 0x1b4   :  { %3217 = vmatpush1.bf16.msra.mxu1 %v5854_v17  ;;  %2900 = vmatprep.subr.bf16.mxu0 %v5859_v59  ;;  %v5932_v17 = vld [vmem:[#allocation7 + $0x6e8] ss:$16 sps:$4 sm:$0xff]   ;;  %v5937_v59 = vld [vmem:[#allocation7 + $0x704] ss:$16 sps:$4 sm:$0xff]  }
 0x1b5   :  { %3218 = vmatprep.subr.bf16.mxu1 %v5862_v16  ;;  %v5940_v16 = vld [vmem:[#allocation7 + $0x70c] ss:$16 sps:$4 sm:$0xff]  }
 0x1b7   :  { %2901 = vmatpush1.bf16.msra.mxu0 %v5857_v63  ;;  %v5935_v63 = vld [vmem:[#allocation7 + $0x700] ss:$16 sps:$4 sm:$0xff]  }
 0x1b8   :  { %3219 = vmatpush1.bf16.msra.mxu1 %v5860_v23  ;;  %2902 = vmatprep.subr.bf16.mxu0 %v5865_v37  ;;  %v5938_v23 = vld [vmem:[#allocation7 + $0x708] ss:$16 sps:$4 sm:$0xff]   ;;  %v5943_v37 = vld [vmem:[#allocation7 + $0x724] ss:$16 sps:$4 sm:$0xff]  }
 0x1b9   :  { %3220 = vmatprep.subr.bf16.mxu1 %v5868_v49  ;;  %v5946_v49 = vld [vmem:[#allocation7 + $0x72c] ss:$16 sps:$4 sm:$0xff]  }
 0x1bb   :  { %2903 = vmatpush1.bf16.msra.mxu0 %v5863_v62  ;;  %v5941_v62 = vld [vmem:[#allocation7 + $0x720] ss:$16 sps:$4 sm:$0xff]  }
 0x1bc   :  { %3221 = vmatpush1.bf16.msra.mxu1 %v5866_v24  ;;  %2904 = vmatprep.subr.bf16.mxu0 %v5871_v41  ;;  %v5944_v24 = vld [vmem:[#allocation7 + $0x728] ss:$16 sps:$4 sm:$0xff]   ;;  %v5949_v41 = vld [vmem:[#allocation7 + $0x744] ss:$16 sps:$4 sm:$0xff]  }
 0x1bd   :  { %3222 = vmatprep.subr.bf16.mxu1 %v5874_v28  ;;  %v5952_v28 = vld [vmem:[#allocation7 + $0x74c] ss:$16 sps:$4 sm:$0xff]  }
 0x1bf   :  { %2905 = vmatpush1.bf16.msra.mxu0 %v5869_v13  ;;  %v5947_v13 = vld [vmem:[#allocation7 + $0x740] ss:$16 sps:$4 sm:$0xff]  }
 0x1c0   :  { %3223 = vmatpush1.bf16.msra.mxu1 %v5872_v18  ;;  %2906 = vmatprep.subr.bf16.mxu0 %v5877_v42  ;;  %v5950_v18 = vld [vmem:[#allocation7 + $0x748] ss:$16 sps:$4 sm:$0xff]   ;;  %v5955_v42 = vld [vmem:[#allocation7 + $0x764] ss:$16 sps:$4 sm:$0xff]  }
 0x1c1   :  { %3224 = vmatprep.subr.bf16.mxu1 %v5880_v45  ;;  %v5958_v45 = vld [vmem:[#allocation7 + $0x76c] ss:$16 sps:$4 sm:$0xff]  }
 0x1c3   :  { %2907 = vmatpush1.bf16.msra.mxu0 %v5875_v7  ;;  %v5953_v7 = vld [vmem:[#allocation7 + $0x760] ss:$16 sps:$4 sm:$0xff]  }
 0x1c4   :  { %3225 = vmatpush1.bf16.msra.mxu1 %v5878_v44  ;;  %2908 = vmatprep.subr.bf16.mxu0 %v5883_v20  ;;  %v5956_v44 = vld [vmem:[#allocation7 + $0x768] ss:$16 sps:$4 sm:$0xff]   ;;  %v5961_v20 = vld [vmem:[#allocation7 + $0x784] ss:$16 sps:$4 sm:$0xff]  }
 0x1c5   :  { %3226 = vmatprep.subr.bf16.mxu1 %v5886_v25  ;;  %v5964_v25 = vld [vmem:[#allocation7 + $0x78c] ss:$16 sps:$4 sm:$0xff]  }
 0x1c7   :  { %2909 = vmatpush1.bf16.msra.mxu0 %v5881_v8  ;;  %v5959_v8 = vld [vmem:[#allocation7 + $0x780] ss:$16 sps:$4 sm:$0xff]  }
 0x1c8   :  { %3227 = vmatpush1.bf16.msra.mxu1 %v5884_v0  ;;  %2931 = vmatprep.subr.bf16.mxu0 %v5889_v27  ;;  %v5962_v0 = vld [vmem:[#allocation7 + $0x788] ss:$16 sps:$4 sm:$0xff]   ;;  %v5967_v27 = vld [vmem:[#allocation7 + $0x7a4] ss:$16 sps:$4 sm:$0xff]  }
 0x1c9   :  { %3249 = vmatprep.subr.bf16.mxu1 %v5892_v61  ;;  %v5970_v61 = vld [vmem:[#allocation7 + $0x7ac] ss:$16 sps:$4 sm:$0xff]  }
 0x1ca   :  { %2911 = vmatmul.mubr.bf16.vlgmr.msra.gmra.mrb[8].mxu0 %v6621_v54 }
 0x1cb   :  { %3229 = vmatmul.mubr.bf16.vlgmr.msra.gmra.mrb[8].mxu1 %v6621_v54  ;;  %2920 = vmatprep.mubr.bf16.mxu0 %v6654_v19  ;;  %v5910_v54 = vld [vmem:[#allocation7 + $0x66c] ss:$16 sps:$4 sm:$0xff]  }
 0x1cc   :  { %2932 = vmatpush1.bf16.msra.mxu0 %v5887_v9  ;;  %3238 = vmatprep.mubr.bf16.mxu1 %v6654_v19  ;;  %v5905_v19 = vld [vmem:[#allocation7 + $0x660] ss:$16 sps:$4 sm:$0xff]  }
 0x1cd   :  { %3250 = vmatpush1.bf16.msra.mxu1 %v5890_v52  ;;  %2933 = vmatprep.subr.bf16.mxu0 %v5895_v39  ;;  %v5965_v9 = vld [vmem:[#allocation7 + $0x7a0] ss:$16 sps:$4 sm:$0xff]   ;;  %v5968_v52 = vld [vmem:[#allocation7 + $0x7a8] ss:$16 sps:$4 sm:$0xff]   ;;  %v5973_v39 = vld [vmem:[#allocation7 + $0x7c4] ss:$16 sps:$4 sm:$0xff]  }
 0x1ce   :  { %3251 = vmatprep.subr.bf16.mxu1 %v5898_v48  ;;  %v5976_v48 = vld [vmem:[#allocation7 + $0x7cc] ss:$16 sps:$4 sm:$0xff]  }
 0x1d0   :  { %2934 = vmatpush1.bf16.msra.mxu0 %v5893_v43  ;;  %v5971_v43 = vld [vmem:[#allocation7 + $0x7c0] ss:$16 sps:$4 sm:$0xff]  }
 0x1d1   :  { %3252 = vmatpush1.bf16.msra.mxu1 %v5896_v36  ;;  %2935 = vmatprep.subr.bf16.mxu0 %v5901_v21  ;;  %v5974_v36 = vld [vmem:[#allocation7 + $0x7c8] ss:$16 sps:$4 sm:$0xff]   ;;  %v5979_v21 = vld [vmem:[#allocation7 + $0x7e4] ss:$16 sps:$4 sm:$0xff]  }
 0x1d2   :  { %2921 = vmatmul.mubr.bf16.gmra.mrb[12].mxu0 %v6656_v5  ;;  %3253 = vmatprep.subr.bf16.mxu1 %v5904_v10  ;;  %v5982_v10 = vld [vmem:[#allocation7 + $0x7ec] ss:$16 sps:$4 sm:$0xff]  }
 0x1d3   :  { %3239 = vmatmul.mubr.bf16.gmra.mrb[12].mxu1 %v6656_v5  ;;  %2963 = vmatprep.mubr.bf16.mxu0 %v6678_v15  ;;  %v5922_v5 = vld [vmem:[#allocation7 + $0x6ac] ss:$16 sps:$4 sm:$0xff]  }
 0x1d4   :  { %2936 = vmatpush1.bf16.msra.mxu0 %v5899_v57  ;;  %3281 = vmatprep.mubr.bf16.mxu1 %v6678_v15  ;;  %v5920_v15 = vld [vmem:[#allocation7 + $0x6a8] ss:$16 sps:$4 sm:$0xff]   ;;  %v5977_v57 = vld [vmem:[#allocation7 + $0x7e0] ss:$16 sps:$4 sm:$0xff]  }
 0x1d5   :  { %3254 = vmatpush1.bf16.msra.mxu1 %v5902_v31  ;;  %2937 = vmatprep.subr.bf16.mxu0 %v5907_v46  ;;  %v5980_v31 = vld [vmem:[#allocation7 + $0x7e8] ss:$16 sps:$4 sm:$0xff]   ;;  %v5985_v46 = vld [vmem:[#allocation7 + $0x804] ss:$16 sps:$4 sm:$0xff]  }
 0x1d6   :  { %3255 = vmatprep.subr.bf16.mxu1 %v5910_v54  ;;  %v5988_v54 = vld [vmem:[#allocation7 + $0x80c] ss:$16 sps:$4 sm:$0xff]  }
 0x1d8   :  { %2938 = vmatpush1.bf16.msra.mxu0 %v5905_v19  ;;  %v5983_v19 = vld [vmem:[#allocation7 + $0x800] ss:$16 sps:$4 sm:$0xff]  }
 0x1d9   :  { %3256 = vmatpush1.bf16.msra.mxu1 %v5908_v50  ;;  %2939 = vmatprep.subr.bf16.mxu0 %v5913_v29  ;;  %v5986_v50 = vld [vmem:[#allocation7 + $0x808] ss:$16 sps:$4 sm:$0xff]   ;;  %v5991_v29 = vld [vmem:[#allocation7 + $0x824] ss:$16 sps:$4 sm:$0xff]  }
 0x1da   :  { %3257 = vmatprep.subr.bf16.mxu1 %v5916_v60  ;;  %v5994_v60 = vld [vmem:[#allocation7 + $0x82c] ss:$16 sps:$4 sm:$0xff]  }
 0x1dc   :  { %2940 = vmatpush1.bf16.msra.mxu0 %v5911_v11  ;;  %v5989_v11 = vld [vmem:[#allocation7 + $0x820] ss:$16 sps:$4 sm:$0xff]  }
 0x1dd   :  { %3258 = vmatpush1.bf16.msra.mxu1 %v5914_v40  ;;  %2941 = vmatprep.subr.bf16.mxu0 %v5919_v47  ;;  %v5992_v40 = vld [vmem:[#allocation7 + $0x828] ss:$16 sps:$4 sm:$0xff]   ;;  %v5997_v47 = vld [vmem:[#allocation7 + $0x844] ss:$16 sps:$4 sm:$0xff]  }
 0x1de   :  { %3259 = vmatprep.subr.bf16.mxu1 %v5922_v5  ;;  %v6000_v5 = vld [vmem:[#allocation7 + $0x84c] ss:$16 sps:$4 sm:$0xff]  }
 0x1e0   :  { %2942 = vmatpush1.bf16.msra.mxu0 %v5917_v32  ;;  %v5995_v32 = vld [vmem:[#allocation7 + $0x840] ss:$16 sps:$4 sm:$0xff]  }
 0x1e1   :  { %3260 = vmatpush1.bf16.msra.mxu1 %v5920_v15  ;;  %2943 = vmatprep.subr.bf16.mxu0 %v5925_v56  ;;  %v5998_v15 = vld [vmem:[#allocation7 + $0x848] ss:$16 sps:$4 sm:$0xff]   ;;  %v6003_v56 = vld [vmem:[#allocation7 + $0x864] ss:$16 sps:$4 sm:$0xff]  }
 0x1e2   :  { %3261 = vmatprep.subr.bf16.mxu1 %v5928_v58  ;;  %v6004_v58 = vld [vmem:[#allocation7 + $0x868] ss:$16 sps:$4 sm:$0xff]  }
 0x1e4   :  { %2944 = vmatpush1.bf16.msra.mxu0 %v5923_v2  ;;  %v6009_v2 = vld [vmem:[#allocation7 + $0x884] ss:$16 sps:$4 sm:$0xff]  }
 0x1e5   :  { %3262 = vmatpush1.bf16.msra.mxu1 %v5926_v6  ;;  %2945 = vmatprep.subr.bf16.mxu0 %v5931_v26  ;;  %v6012_v6 = vld [vmem:[#allocation7 + $0x88c] ss:$16 sps:$4 sm:$0xff]   ;;  %v6007_v26 = vld [vmem:[#allocation7 + $0x880] ss:$16 sps:$4 sm:$0xff]  }
 0x1e6   :  { %3263 = vmatprep.subr.bf16.mxu1 %v5934_v33  ;;  %v6010_v33 = vld [vmem:[#allocation7 + $0x888] ss:$16 sps:$4 sm:$0xff]  }
 0x1e8   :  { %2946 = vmatpush1.bf16.msra.mxu0 %v5929_v1  ;;  %v6015_v1 = vld [vmem:[#allocation7 + $0x8a4] ss:$16 sps:$4 sm:$0xff]  }
 0x1e9   :  { %3264 = vmatpush1.bf16.msra.mxu1 %v5932_v17  ;;  %2947 = vmatprep.subr.bf16.mxu0 %v5937_v59  ;;  %v6013_v17 = vld [vmem:[#allocation7 + $0x8a0] ss:$16 sps:$4 sm:$0xff]   ;;  %v6021_v59 = vld [vmem:[#allocation7 + $0x8c4] ss:$16 sps:$4 sm:$0xff]  }
 0x1ea   :  { %3265 = vmatprep.subr.bf16.mxu1 %v5940_v16  ;;  %v6024_v16 = vld [vmem:[#allocation7 + $0x8cc] ss:$16 sps:$4 sm:$0xff]  }
 0x1ec   :  { %2948 = vmatpush1.bf16.msra.mxu0 %v5935_v63  ;;  %v6019_v63 = vld [vmem:[#allocation7 + $0x8c0] ss:$16 sps:$4 sm:$0xff]  }
 0x1ed   :  { %3266 = vmatpush1.bf16.msra.mxu1 %v5938_v23  ;;  %2949 = vmatprep.subr.bf16.mxu0 %v5943_v37  ;;  %v6022_v23 = vld [vmem:[#allocation7 + $0x8c8] ss:$16 sps:$4 sm:$0xff]   ;;  %v6027_v37 = vld [vmem:[#allocation7 + $0x8e4] ss:$16 sps:$4 sm:$0xff]  }
 0x1ee   :  { %3267 = vmatprep.subr.bf16.mxu1 %v5946_v49  ;;  %v6030_v49 = vld [vmem:[#allocation7 + $0x8ec] ss:$16 sps:$4 sm:$0xff]  }
 0x1f0   :  { %2950 = vmatpush1.bf16.msra.mxu0 %v5941_v62  ;;  %v6025_v62 = vld [vmem:[#allocation7 + $0x8e0] ss:$16 sps:$4 sm:$0xff]  }
 0x1f1   :  { %3268 = vmatpush1.bf16.msra.mxu1 %v5944_v24  ;;  %2951 = vmatprep.subr.bf16.mxu0 %v5949_v41  ;;  %v6028_v24 = vld [vmem:[#allocation7 + $0x8e8] ss:$16 sps:$4 sm:$0xff]   ;;  %v6033_v41 = vld [vmem:[#allocation7 + $0x904] ss:$16 sps:$4 sm:$0xff]  }
 0x1f2   :  { %3269 = vmatprep.subr.bf16.mxu1 %v5952_v28  ;;  %v6036_v28 = vld [vmem:[#allocation7 + $0x90c] ss:$16 sps:$4 sm:$0xff]  }
 0x1f4   :  { %2952 = vmatpush1.bf16.msra.mxu0 %v5947_v13  ;;  %v6031_v13 = vld [vmem:[#allocation7 + $0x900] ss:$16 sps:$4 sm:$0xff]  }
 0x1f5   :  { %3270 = vmatpush1.bf16.msra.mxu1 %v5950_v18  ;;  %2953 = vmatprep.subr.bf16.mxu0 %v5955_v42  ;;  %v6034_v18 = vld [vmem:[#allocation7 + $0x908] ss:$16 sps:$4 sm:$0xff]   ;;  %v6039_v42 = vld [vmem:[#allocation7 + $0x924] ss:$16 sps:$4 sm:$0xff]  }
 0x1f6   :  { %3271 = vmatprep.subr.bf16.mxu1 %v5958_v45  ;;  %v6042_v45 = vld [vmem:[#allocation7 + $0x92c] ss:$16 sps:$4 sm:$0xff]  }
 0x1f8   :  { %2954 = vmatpush1.bf16.msra.mxu0 %v5953_v7  ;;  %v6037_v7 = vld [vmem:[#allocation7 + $0x920] ss:$16 sps:$4 sm:$0xff]  }
 0x1f9   :  { %3272 = vmatpush1.bf16.msra.mxu1 %v5956_v44  ;;  %2955 = vmatprep.subr.bf16.mxu0 %v5961_v20  ;;  %v6040_v44 = vld [vmem:[#allocation7 + $0x928] ss:$16 sps:$4 sm:$0xff]   ;;  %v6045_v20 = vld [vmem:[#allocation7 + $0x944] ss:$16 sps:$4 sm:$0xff]  }
 0x1fa   :  { %3273 = vmatprep.subr.bf16.mxu1 %v5964_v25  ;;  %v6048_v25 = vld [vmem:[#allocation7 + $0x94c] ss:$16 sps:$4 sm:$0xff]  }
 0x1fc   :  { %2956 = vmatpush1.bf16.msra.mxu0 %v5959_v8  ;;  %v6043_v8 = vld [vmem:[#allocation7 + $0x940] ss:$16 sps:$4 sm:$0xff]  }
 0x1fd   :  { %3274 = vmatpush1.bf16.msra.mxu1 %v5962_v0  ;;  %2957 = vmatprep.subr.bf16.mxu0 %v5967_v27  ;;  %v6046_v0 = vld [vmem:[#allocation7 + $0x948] ss:$16 sps:$4 sm:$0xff]   ;;  %v6051_v27 = vld [vmem:[#allocation7 + $0x964] ss:$16 sps:$4 sm:$0xff]  }
 0x1fe   :  { %3275 = vmatprep.subr.bf16.mxu1 %v5970_v61  ;;  %v6054_v61 = vld [vmem:[#allocation7 + $0x96c] ss:$16 sps:$4 sm:$0xff]  }
 0x200   :  { %2958 = vmatpush1.bf16.msra.mxu0 %v5965_v9  ;;  %v6049_v9 = vld [vmem:[#allocation7 + $0x960] ss:$16 sps:$4 sm:$0xff]  }
 0x201   :  { %3276 = vmatpush1.bf16.msra.mxu1 %v5968_v52  ;;  %2959 = vmatprep.subr.bf16.mxu0 %v5973_v39  ;;  %v6052_v52 = vld [vmem:[#allocation7 + $0x968] ss:$16 sps:$4 sm:$0xff]   ;;  %v6057_v39 = vld [vmem:[#allocation7 + $0x984] ss:$16 sps:$4 sm:$0xff]  }
 0x202   :  { %3277 = vmatprep.subr.bf16.mxu1 %v5976_v48  ;;  %v6060_v48 = vld [vmem:[#allocation7 + $0x98c] ss:$16 sps:$4 sm:$0xff]  }
 0x204   :  { %2960 = vmatpush1.bf16.msra.mxu0 %v5971_v43  ;;  %v6055_v43 = vld [vmem:[#allocation7 + $0x980] ss:$16 sps:$4 sm:$0xff]  }
 0x205   :  { %3278 = vmatpush1.bf16.msra.mxu1 %v5974_v36  ;;  %2961 = vmatprep.subr.bf16.mxu0 %v5979_v21  ;;  %v6058_v36 = vld [vmem:[#allocation7 + $0x988] ss:$16 sps:$4 sm:$0xff]   ;;  %v6063_v21 = vld [vmem:[#allocation7 + $0x9a4] ss:$16 sps:$4 sm:$0xff]  }
 0x206   :  { %3279 = vmatprep.subr.bf16.mxu1 %v5982_v10  ;;  %v6066_v10 = vld [vmem:[#allocation7 + $0x9ac] ss:$16 sps:$4 sm:$0xff]  }
 0x208   :  { %2962 = vmatpush1.bf16.msra.mxu0 %v5977_v57  ;;  %v6061_v57 = vld [vmem:[#allocation7 + $0x9a0] ss:$16 sps:$4 sm:$0xff]  }
 0x209   :  { %3280 = vmatpush1.bf16.msra.mxu1 %v5980_v31  ;;  %2984 = vmatprep.subr.bf16.mxu0 %v5985_v46  ;;  %v6064_v31 = vld [vmem:[#allocation7 + $0x9a8] ss:$16 sps:$4 sm:$0xff]   ;;  %v6069_v46 = vld [vmem:[#allocation7 + $0x9c4] ss:$16 sps:$4 sm:$0xff]  }
 0x20a   :  { %3302 = vmatprep.subr.bf16.mxu1 %v5988_v54  ;;  %v6072_v54 = vld [vmem:[#allocation7 + $0x9cc] ss:$16 sps:$4 sm:$0xff]  }
 0x20b   :  { %2964 = vmatmul.mubr.bf16.vlgmr.msra.gmra.mrb[8].mxu0 %v6672_v34 }
 0x20c   :  { %3282 = vmatmul.mubr.bf16.vlgmr.msra.gmra.mrb[8].mxu1 %v6672_v34  ;;  %2973 = vmatprep.mubr.bf16.mxu0 %v6680_v51  ;;  %v6006_v34 = vld [vmem:[#allocation7 + $0x86c] ss:$16 sps:$4 sm:$0xff]  }
 0x20d   :  { %2985 = vmatpush1.bf16.msra.mxu0 %v5983_v19  ;;  %3291 = vmatprep.mubr.bf16.mxu1 %v6680_v51  ;;  %v6001_v51 = vld [vmem:[#allocation7 + $0x860] ss:$16 sps:$4 sm:$0xff]  }
 0x20e   :  { %3303 = vmatpush1.bf16.msra.mxu1 %v5986_v50  ;;  %2986 = vmatprep.subr.bf16.mxu0 %v5991_v29  ;;  %v6067_v19 = vld [vmem:[#allocation7 + $0x9c0] ss:$16 sps:$4 sm:$0xff]   ;;  %v6070_v50 = vld [vmem:[#allocation7 + $0x9c8] ss:$16 sps:$4 sm:$0xff]   ;;  %v6075_v29 = vld [vmem:[#allocation7 + $0x9e4] ss:$16 sps:$4 sm:$0xff]  }
 0x20f   :  { %3304 = vmatprep.subr.bf16.mxu1 %v5994_v60  ;;  %v6078_v60 = vld [vmem:[#allocation7 + $0x9ec] ss:$16 sps:$4 sm:$0xff]  }
 0x211   :  { %2987 = vmatpush1.bf16.msra.mxu0 %v5989_v11  ;;  %v6073_v11 = vld [vmem:[#allocation7 + $0x9e0] ss:$16 sps:$4 sm:$0xff]  }
 0x212   :  { %3305 = vmatpush1.bf16.msra.mxu1 %v5992_v40  ;;  %2988 = vmatprep.subr.bf16.mxu0 %v5997_v47  ;;  %v6076_v40 = vld [vmem:[#allocation7 + $0x9e8] ss:$16 sps:$4 sm:$0xff]   ;;  %v6081_v47 = vld [vmem:[#allocation7 + $0xa04] ss:$16 sps:$4 sm:$0xff]  }
 0x213   :  { %2974 = vmatmul.mubr.bf16.gmra.mrb[12].mxu0 %v6690_v55  ;;  %3306 = vmatprep.subr.bf16.mxu1 %v6000_v5  ;;  %v6084_v5 = vld [vmem:[#allocation7 + $0xa0c] ss:$16 sps:$4 sm:$0xff]  }
 0x214   :  { %3292 = vmatmul.mubr.bf16.gmra.mrb[12].mxu1 %v6690_v55  ;;  %3016 = vmatprep.mubr.bf16.mxu0 %v6705_v3  ;;  %v6018_v55 = vld [vmem:[#allocation7 + $0x8ac] ss:$16 sps:$4 sm:$0xff]  }
 0x215   :  { %2989 = vmatpush1.bf16.msra.mxu0 %v5995_v32  ;;  %3334 = vmatprep.mubr.bf16.mxu1 %v6705_v3  ;;  %v6016_v3 = vld [vmem:[#allocation7 + $0x8a8] ss:$16 sps:$4 sm:$0xff]   ;;  %v6079_v32 = vld [vmem:[#allocation7 + $0xa00] ss:$16 sps:$4 sm:$0xff]  }
 0x216   :  { %3307 = vmatpush1.bf16.msra.mxu1 %v5998_v15  ;;  %2990 = vmatprep.subr.bf16.mxu0 %v6003_v56  ;;  %v6082_v15 = vld [vmem:[#allocation7 + $0xa08] ss:$16 sps:$4 sm:$0xff]   ;;  %v6087_v56 = vld [vmem:[#allocation7 + $0xa24] ss:$16 sps:$4 sm:$0xff]  }
 0x217   :  { %3308 = vmatprep.subr.bf16.mxu1 %v6006_v34  ;;  %v6090_v34 = vld [vmem:[#allocation7 + $0xa2c] ss:$16 sps:$4 sm:$0xff]  }
 0x219   :  { %2991 = vmatpush1.bf16.msra.mxu0 %v6001_v51  ;;  %v6085_v51 = vld [vmem:[#allocation7 + $0xa20] ss:$16 sps:$4 sm:$0xff]  }
 0x21a   :  { %3309 = vmatpush1.bf16.msra.mxu1 %v6004_v58  ;;  %2992 = vmatprep.subr.bf16.mxu0 %v6009_v2  ;;  %v6088_v58 = vld [vmem:[#allocation7 + $0xa28] ss:$16 sps:$4 sm:$0xff]   ;;  %v6093_v2 = vld [vmem:[#allocation7 + $0xa44] ss:$16 sps:$4 sm:$0xff]  }
 0x21b   :  { %3310 = vmatprep.subr.bf16.mxu1 %v6012_v6  ;;  %v6096_v6 = vld [vmem:[#allocation7 + $0xa4c] ss:$16 sps:$4 sm:$0xff]  }
 0x21d   :  { %2993 = vmatpush1.bf16.msra.mxu0 %v6007_v26  ;;  %v6091_v26 = vld [vmem:[#allocation7 + $0xa40] ss:$16 sps:$4 sm:$0xff]  }
 0x21e   :  { %3311 = vmatpush1.bf16.msra.mxu1 %v6010_v33  ;;  %2994 = vmatprep.subr.bf16.mxu0 %v6015_v1  ;;  %v6094_v33 = vld [vmem:[#allocation7 + $0xa48] ss:$16 sps:$4 sm:$0xff]   ;;  %v6099_v1 = vld [vmem:[#allocation7 + $0xa64] ss:$16 sps:$4 sm:$0xff]  }
 0x21f   :  { %3312 = vmatprep.subr.bf16.mxu1 %v6018_v55  ;;  %v6100_v55 = vld [vmem:[#allocation7 + $0xa68] ss:$16 sps:$4 sm:$0xff]  }
 0x221   :  { %2995 = vmatpush1.bf16.msra.mxu0 %v6013_v17  ;;  %v6105_v17 = vld [vmem:[#allocation7 + $0xa84] ss:$16 sps:$4 sm:$0xff]  }
 0x222   :  { %3313 = vmatpush1.bf16.msra.mxu1 %v6016_v3  ;;  %2996 = vmatprep.subr.bf16.mxu0 %v6021_v59  ;;  %v6108_v3 = vld [vmem:[#allocation7 + $0xa8c] ss:$16 sps:$4 sm:$0xff]   ;;  %v6103_v59 = vld [vmem:[#allocation7 + $0xa80] ss:$16 sps:$4 sm:$0xff]  }
 0x223   :  { %3314 = vmatprep.subr.bf16.mxu1 %v6024_v16  ;;  %v6106_v16 = vld [vmem:[#allocation7 + $0xa88] ss:$16 sps:$4 sm:$0xff]  }
 0x225   :  { %2997 = vmatpush1.bf16.msra.mxu0 %v6019_v63  ;;  %v6111_v63 = vld [vmem:[#allocation7 + $0xaa4] ss:$16 sps:$4 sm:$0xff]  }
 0x226   :  { %3315 = vmatpush1.bf16.msra.mxu1 %v6022_v23  ;;  %2998 = vmatprep.subr.bf16.mxu0 %v6027_v37  ;;  %v6109_v23 = vld [vmem:[#allocation7 + $0xaa0] ss:$16 sps:$4 sm:$0xff]   ;;  %v6117_v37 = vld [vmem:[#allocation7 + $0xac4] ss:$16 sps:$4 sm:$0xff]  }
 0x227   :  { %3316 = vmatprep.subr.bf16.mxu1 %v6030_v49  ;;  %v6120_v49 = vld [vmem:[#allocation7 + $0xacc] ss:$16 sps:$4 sm:$0xff]  }
 0x229   :  { %2999 = vmatpush1.bf16.msra.mxu0 %v6025_v62  ;;  %v6115_v62 = vld [vmem:[#allocation7 + $0xac0] ss:$16 sps:$4 sm:$0xff]  }
 0x22a   :  { %3317 = vmatpush1.bf16.msra.mxu1 %v6028_v24  ;;  %3000 = vmatprep.subr.bf16.mxu0 %v6033_v41  ;;  %v6118_v24 = vld [vmem:[#allocation7 + $0xac8] ss:$16 sps:$4 sm:$0xff]   ;;  %v6123_v41 = vld [vmem:[#allocation7 + $0xae4] ss:$16 sps:$4 sm:$0xff]  }
 0x22b   :  { %3318 = vmatprep.subr.bf16.mxu1 %v6036_v28  ;;  %v6126_v28 = vld [vmem:[#allocation7 + $0xaec] ss:$16 sps:$4 sm:$0xff]  }
 0x22d   :  { %3001 = vmatpush1.bf16.msra.mxu0 %v6031_v13  ;;  %v6121_v13 = vld [vmem:[#allocation7 + $0xae0] ss:$16 sps:$4 sm:$0xff]  }
 0x22e   :  { %3319 = vmatpush1.bf16.msra.mxu1 %v6034_v18  ;;  %3002 = vmatprep.subr.bf16.mxu0 %v6039_v42  ;;  %v6124_v18 = vld [vmem:[#allocation7 + $0xae8] ss:$16 sps:$4 sm:$0xff]   ;;  %v6129_v42 = vld [vmem:[#allocation7 + $0xb04] ss:$16 sps:$4 sm:$0xff]  }
 0x22f   :  { %3320 = vmatprep.subr.bf16.mxu1 %v6042_v45  ;;  %v6132_v45 = vld [vmem:[#allocation7 + $0xb0c] ss:$16 sps:$4 sm:$0xff]  }
 0x231   :  { %3003 = vmatpush1.bf16.msra.mxu0 %v6037_v7  ;;  %v6127_v7 = vld [vmem:[#allocation7 + $0xb00] ss:$16 sps:$4 sm:$0xff]  }
 0x232   :  { %3321 = vmatpush1.bf16.msra.mxu1 %v6040_v44  ;;  %3004 = vmatprep.subr.bf16.mxu0 %v6045_v20  ;;  %v6130_v44 = vld [vmem:[#allocation7 + $0xb08] ss:$16 sps:$4 sm:$0xff]   ;;  %v6135_v20 = vld [vmem:[#allocation7 + $0xb24] ss:$16 sps:$4 sm:$0xff]  }
 0x233   :  { %3322 = vmatprep.subr.bf16.mxu1 %v6048_v25  ;;  %v6138_v25 = vld [vmem:[#allocation7 + $0xb2c] ss:$16 sps:$4 sm:$0xff]  }
 0x235   :  { %3005 = vmatpush1.bf16.msra.mxu0 %v6043_v8  ;;  %v6133_v8 = vld [vmem:[#allocation7 + $0xb20] ss:$16 sps:$4 sm:$0xff]  }
 0x236   :  { %3323 = vmatpush1.bf16.msra.mxu1 %v6046_v0  ;;  %3006 = vmatprep.subr.bf16.mxu0 %v6051_v27  ;;  %v6136_v0 = vld [vmem:[#allocation7 + $0xb28] ss:$16 sps:$4 sm:$0xff]   ;;  %v6141_v27 = vld [vmem:[#allocation7 + $0xb44] ss:$16 sps:$4 sm:$0xff]  }
 0x237   :  { %3324 = vmatprep.subr.bf16.mxu1 %v6054_v61  ;;  %v6144_v61 = vld [vmem:[#allocation7 + $0xb4c] ss:$16 sps:$4 sm:$0xff]  }
 0x239   :  { %3007 = vmatpush1.bf16.msra.mxu0 %v6049_v9  ;;  %v6139_v9 = vld [vmem:[#allocation7 + $0xb40] ss:$16 sps:$4 sm:$0xff]  }
 0x23a   :  { %3325 = vmatpush1.bf16.msra.mxu1 %v6052_v52  ;;  %3008 = vmatprep.subr.bf16.mxu0 %v6057_v39  ;;  %v6142_v52 = vld [vmem:[#allocation7 + $0xb48] ss:$16 sps:$4 sm:$0xff]   ;;  %v6147_v39 = vld [vmem:[#allocation7 + $0xb64] ss:$16 sps:$4 sm:$0xff]  }
 0x23b   :  { %3326 = vmatprep.subr.bf16.mxu1 %v6060_v48  ;;  %v6150_v48 = vld [vmem:[#allocation7 + $0xb6c] ss:$16 sps:$4 sm:$0xff]  }
 0x23d   :  { %3009 = vmatpush1.bf16.msra.mxu0 %v6055_v43  ;;  %v6145_v43 = vld [vmem:[#allocation7 + $0xb60] ss:$16 sps:$4 sm:$0xff]  }
 0x23e   :  { %3327 = vmatpush1.bf16.msra.mxu1 %v6058_v36  ;;  %3010 = vmatprep.subr.bf16.mxu0 %v6063_v21  ;;  %v6148_v36 = vld [vmem:[#allocation7 + $0xb68] ss:$16 sps:$4 sm:$0xff]   ;;  %v6153_v21 = vld [vmem:[#allocation7 + $0xb84] ss:$16 sps:$4 sm:$0xff]  }
 0x23f   :  { %3328 = vmatprep.subr.bf16.mxu1 %v6066_v10  ;;  %v6156_v10 = vld [vmem:[#allocation7 + $0xb8c] ss:$16 sps:$4 sm:$0xff]  }
 0x241   :  { %3011 = vmatpush1.bf16.msra.mxu0 %v6061_v57  ;;  %v6151_v57 = vld [vmem:[#allocation7 + $0xb80] ss:$16 sps:$4 sm:$0xff]  }
 0x242   :  { %3329 = vmatpush1.bf16.msra.mxu1 %v6064_v31  ;;  %3012 = vmatprep.subr.bf16.mxu0 %v6069_v46  ;;  %v6154_v31 = vld [vmem:[#allocation7 + $0xb88] ss:$16 sps:$4 sm:$0xff]   ;;  %v6159_v46 = vld [vmem:[#allocation7 + $0xba4] ss:$16 sps:$4 sm:$0xff]  }
 0x243   :  { %3330 = vmatprep.subr.bf16.mxu1 %v6072_v54  ;;  %v6162_v54 = vld [vmem:[#allocation7 + $0xbac] ss:$16 sps:$4 sm:$0xff]  }
 0x245   :  { %3013 = vmatpush1.bf16.msra.mxu0 %v6067_v19  ;;  %v6157_v19 = vld [vmem:[#allocation7 + $0xba0] ss:$16 sps:$4 sm:$0xff]  }
 0x246   :  { %3331 = vmatpush1.bf16.msra.mxu1 %v6070_v50  ;;  %3014 = vmatprep.subr.bf16.mxu0 %v6075_v29  ;;  %v6160_v50 = vld [vmem:[#allocation7 + $0xba8] ss:$16 sps:$4 sm:$0xff]   ;;  %v6165_v29 = vld [vmem:[#allocation7 + $0xbc4] ss:$16 sps:$4 sm:$0xff]  }
 0x247   :  { %3332 = vmatprep.subr.bf16.mxu1 %v6078_v60  ;;  %v6168_v60 = vld [vmem:[#allocation7 + $0xbcc] ss:$16 sps:$4 sm:$0xff]  }
 0x249   :  { %3015 = vmatpush1.bf16.msra.mxu0 %v6073_v11  ;;  %v6163_v11 = vld [vmem:[#allocation7 + $0xbc0] ss:$16 sps:$4 sm:$0xff]  }
 0x24a   :  { %3333 = vmatpush1.bf16.msra.mxu1 %v6076_v40  ;;  %3037 = vmatprep.subr.bf16.mxu0 %v6081_v47  ;;  %v6166_v40 = vld [vmem:[#allocation7 + $0xbc8] ss:$16 sps:$4 sm:$0xff]   ;;  %v6171_v47 = vld [vmem:[#allocation7 + $0xbe4] ss:$16 sps:$4 sm:$0xff]  }
 0x24b   :  { %3355 = vmatprep.subr.bf16.mxu1 %v6084_v5  ;;  %v6174_v5 = vld [vmem:[#allocation7 + $0xbec] ss:$16 sps:$4 sm:$0xff]  }
 0x24c   :  { %3017 = vmatmul.mubr.bf16.vlgmr.msra.gmra.mrb[8].mxu0 %v6718_v4 }
 0x24d   :  { %3335 = vmatmul.mubr.bf16.vlgmr.msra.gmra.mrb[8].mxu1 %v6718_v4  ;;  %3026 = vmatprep.mubr.bf16.mxu0 %v6738_v53  ;;  %v6102_v4 = vld [vmem:[#allocation7 + $0xa6c] ss:$16 sps:$4 sm:$0xff]  }
 0x24e   :  { %3038 = vmatpush1.bf16.msra.mxu0 %v6079_v32  ;;  %3344 = vmatprep.mubr.bf16.mxu1 %v6738_v53  ;;  %v6097_v53 = vld [vmem:[#allocation7 + $0xa60] ss:$16 sps:$4 sm:$0xff]  }
 0x24f   :  { %3356 = vmatpush1.bf16.msra.mxu1 %v6082_v15  ;;  %3039 = vmatprep.subr.bf16.mxu0 %v6087_v56  ;;  %v6169_v32 = vld [vmem:[#allocation7 + $0xbe0] ss:$16 sps:$4 sm:$0xff]   ;;  %v6172_v15 = vld [vmem:[#allocation7 + $0xbe8] ss:$16 sps:$4 sm:$0xff]  }
 0x250   :  { %3357 = vmatprep.subr.bf16.mxu1 %v6090_v34 }
 0x252   :  { %3040 = vmatpush1.bf16.msra.mxu0 %v6085_v51 }
 0x253   :  { %3358 = vmatpush1.bf16.msra.mxu1 %v6088_v58  ;;  %3041 = vmatprep.subr.bf16.mxu0 %v6093_v2 }
 0x254   :  { %3027 = vmatmul.mubr.bf16.gmra.mrb[12].mxu0 %v6740_v30  ;;  %3359 = vmatprep.subr.bf16.mxu1 %v6096_v6 }
 0x255   :  { %3345 = vmatmul.mubr.bf16.gmra.mrb[12].mxu1 %v6740_v30  ;;  %3069 = vmatprep.mubr.bf16.mxu0 %v6769_v22  ;;  %v6114_v30 = vld [vmem:[#allocation7 + $0xaac] ss:$16 sps:$4 sm:$0xff]  }
 0x256   :  { %3042 = vmatpush1.bf16.msra.mxu0 %v6091_v26  ;;  %3387 = vmatprep.mubr.bf16.mxu1 %v6769_v22  ;;  %v6112_v22 = vld [vmem:[#allocation7 + $0xaa8] ss:$16 sps:$4 sm:$0xff]  }
 0x257   :  { %3360 = vmatpush1.bf16.msra.mxu1 %v6094_v33  ;;  %3043 = vmatprep.subr.bf16.mxu0 %v6099_v1 }
 0x258   :  { %3361 = vmatprep.subr.bf16.mxu1 %v6102_v4 }
 0x25a   :  { %3044 = vmatpush1.bf16.msra.mxu0 %v6097_v53 }
 0x25b   :  { %3362 = vmatpush1.bf16.msra.mxu1 %v6100_v55  ;;  %3045 = vmatprep.subr.bf16.mxu0 %v6105_v17 }
 0x25c   :  { %3363 = vmatprep.subr.bf16.mxu1 %v6108_v3 }
 0x25e   :  { %3046 = vmatpush1.bf16.msra.mxu0 %v6103_v59 }
 0x25f   :  { %3364 = vmatpush1.bf16.msra.mxu1 %v6106_v16  ;;  %3047 = vmatprep.subr.bf16.mxu0 %v6111_v63 }
 0x260   :  { %3365 = vmatprep.subr.bf16.mxu1 %v6114_v30 }
 0x262   :  { %3048 = vmatpush1.bf16.msra.mxu0 %v6109_v23 }
 0x263   :  { %3366 = vmatpush1.bf16.msra.mxu1 %v6112_v22  ;;  %3049 = vmatprep.subr.bf16.mxu0 %v6117_v37 }
 0x264   :  { %3367 = vmatprep.subr.bf16.mxu1 %v6120_v49 }
 0x266   :  { %3050 = vmatpush1.bf16.msra.mxu0 %v6115_v62 }
 0x267   :  { %3368 = vmatpush1.bf16.msra.mxu1 %v6118_v24  ;;  %3051 = vmatprep.subr.bf16.mxu0 %v6123_v41 }
 0x268   :  { %3369 = vmatprep.subr.bf16.mxu1 %v6126_v28 }
 0x26a   :  { %3052 = vmatpush1.bf16.msra.mxu0 %v6121_v13 }
 0x26b   :  { %3370 = vmatpush1.bf16.msra.mxu1 %v6124_v18  ;;  %3053 = vmatprep.subr.bf16.mxu0 %v6129_v42 }
 0x26c   :  { %3371 = vmatprep.subr.bf16.mxu1 %v6132_v45 }
 0x26e   :  { %3054 = vmatpush1.bf16.msra.mxu0 %v6127_v7 }
 0x26f   :  { %3372 = vmatpush1.bf16.msra.mxu1 %v6130_v44  ;;  %3055 = vmatprep.subr.bf16.mxu0 %v6135_v20 }
 0x270   :  { %3373 = vmatprep.subr.bf16.mxu1 %v6138_v25 }
 0x272   :  { %3056 = vmatpush1.bf16.msra.mxu0 %v6133_v8 }
 0x273   :  { %3374 = vmatpush1.bf16.msra.mxu1 %v6136_v0  ;;  %3057 = vmatprep.subr.bf16.mxu0 %v6141_v27 }
 0x274   :  { %3375 = vmatprep.subr.bf16.mxu1 %v6144_v61 }
 0x276   :  { %3058 = vmatpush1.bf16.msra.mxu0 %v6139_v9 }
 0x277   :  { %3376 = vmatpush1.bf16.msra.mxu1 %v6142_v52  ;;  %3059 = vmatprep.subr.bf16.mxu0 %v6147_v39 }
 0x278   :  { %3377 = vmatprep.subr.bf16.mxu1 %v6150_v48 }
 0x27a   :  { %3060 = vmatpush1.bf16.msra.mxu0 %v6145_v43 }
 0x27b   :  { %3378 = vmatpush1.bf16.msra.mxu1 %v6148_v36  ;;  %3061 = vmatprep.subr.bf16.mxu0 %v6153_v21 }
 0x27c   :  { %3379 = vmatprep.subr.bf16.mxu1 %v6156_v10 }
 0x27e   :  { %3062 = vmatpush1.bf16.msra.mxu0 %v6151_v57 }
 0x27f   :  { %3380 = vmatpush1.bf16.msra.mxu1 %v6154_v31  ;;  %3063 = vmatprep.subr.bf16.mxu0 %v6159_v46 }
 0x280   :  { %3381 = vmatprep.subr.bf16.mxu1 %v6162_v54 }
 0x282   :  { %3064 = vmatpush1.bf16.msra.mxu0 %v6157_v19 }
 0x283   :  { %3382 = vmatpush1.bf16.msra.mxu1 %v6160_v50  ;;  %3065 = vmatprep.subr.bf16.mxu0 %v6165_v29 }
 0x284   :  { %3383 = vmatprep.subr.bf16.mxu1 %v6168_v60 }
 0x286   :  { %3066 = vmatpush1.bf16.msra.mxu0 %v6163_v11 }
 0x287   :  { %3384 = vmatpush1.bf16.msra.mxu1 %v6166_v40  ;;  %3067 = vmatprep.subr.bf16.mxu0 %v6171_v47 }
 0x288   :  { %3385 = vmatprep.subr.bf16.mxu1 %v6174_v5 }
 0x28a   :  { %3068 = vmatpush1.bf16.msra.mxu0 %v6169_v32 }
 0x28b   :  { %3386 = vmatpush1.bf16.msra.mxu1 %v6172_v15 }
 0x28d   :  { %3070 = vmatmul.mubr.bf16.vlgmr.msra.gmra.mrb[8].mxu0 %v6763_v12 }
 0x28e   :  { %3388 = vmatmul.mubr.bf16.vlgmr.msra.gmra.mrb[8].mxu1 %v6763_v12  ;;  %3079 = vmatprep.mubr.bf16.mxu0 %v6771_v14 }
 0x28f   :  { %3397 = vmatprep.mubr.bf16.mxu1 %v6771_v14 }
 0x295   :  { %3080 = vmatmul.mubr.bf16.gmra.mrb[12].mxu0 %v6785_v35 }
 0x296   :  { %3398 = vmatmul.mubr.bf16.gmra.mrb[12].mxu1 %v6785_v35 }
 0x360   :  { %v3071_v56 = vpop.f32.mrb[8].mxu0 }
 0x361   :  { %6175 = vtanh.f32 %v3071_v56  ;;  %v3389_v34 = vpop.f32.mrb[8].mxu1  ;;  %v3073_v51 = vpop.f32.mrb[9].mxu0 }
 0x362   :  { %6177 = vtanh.f32 %v3389_v34  ;;  %v3391_v58 = vpop.f32.mrb[9].mxu1  ;;  %v3075_v2 = vpop.f32.mrb[10].mxu0 }
 0x363   :  { %6179 = vtanh.f32 %v3073_v51  ;;  %v3393_v6 = vpop.f32.mrb[10].mxu1  ;;  %v3077_v26 = vpop.f32.mrb[11].mxu0 }
 0x364   :  { %6181 = vtanh.f32 %v3391_v58  ;;  %v3395_v12 = vpop.f32.mrb[11].mxu1 }
 0x365   :  { %6183 = vtanh.f32 %v3075_v2 }
 0x366   :  { %6185 = vtanh.f32 %v3393_v6 }
 0x367   :  { %6187 = vtanh.f32 %v3077_v26 }
 0x368   :  { %6189 = vtanh.f32 %v3395_v12  ;;  %v3081_v14 = vpop.f32.mrb[12].mxu0 }
 0x369   :  { %6191 = vtanh.f32 %v3081_v14  ;;  %v3399_v33 = vpop.f32.mrb[12].mxu1  ;;  %v3083_v35 = vpop.f32.mrb[13].mxu0 }
 0x36a   :  { %6193 = vtanh.f32 %v3399_v33  ;;  %v3401_v1 = vpop.f32.mrb[13].mxu1  ;;  %v3085_v4 = vpop.f32.mrb[14].mxu0 }
 0x36b   :  { %v6825_v53 = vpop.eup %6175  ;;  %6195 = vtanh.f32 %v3083_v35  ;;  %v3403_v55 = vpop.f32.mrb[14].mxu1 }
 0x36c   :  { %v3087_v17 = vpop.f32.mrb[15].mxu0  ;;  %v6827_v3 = vpop.eup %6177  ;;  %6197 = vtanh.f32 %v3401_v1 }
 0x36d   :  { %v3405_v59 = vpop.f32.mrb[15].mxu1  ;;  %v6829_v16 = vpop.eup %6179  ;;  %6199 = vtanh.f32 %v3085_v4 }
 0x36e   :  { %v6831_v63 = vpop.eup %6181  ;;  %6201 = vtanh.f32 %v3403_v55 }
 0x36f   :  { %v6833_v30 = vpop.eup %6183  ;;  %6203 = vtanh.f32 %v3087_v17 }
 0x370   :  { %v6835_v23 = vpop.eup %6185  ;;  %6205 = vtanh.f32 %v3405_v59 }
 0x371   :  { %v6837_v22 = vpop.eup %6187 }
 0x372   :  { %v6839_v37 = vpop.eup %6189 }
 0x373   :  { %v6841_v49 = vpop.eup %6191 }
 0x374   :  { %v6843_v62 = vpop.eup %6193 }
 0x375   :  { %v6845_v24 = vpop.eup %6195 }
 0x376   :  { %v6847_v41 = vpop.eup %6197 }
 0x377   :  { %v6849_v28 = vpop.eup %6199 }
 0x378   :  { %v6851_v13 = vpop.eup %6201 }
 0x379   :  { %v6853_v18 = vpop.eup %6203 }
 0x37a   :  { %v6855_v42 = vpop.eup %6205 }
 0x37b   :  { %6309 = dma.done.wait [#allocation3], 65536 }
 0x37c   :  { %6310 = vsyncadd [#allocation3], 4294901760  ;;  %v3566_v45 = vrot.slane %v6829_v16, 2  ;;  %v3570_v7 = vrot.slane %v6837_v22, 2  ;;  %v3574_v44 = vrot.slane %v6845_v24, 2  ;;  %v3578_v20 = vrot.slane %v6853_v18, 2 }
 0x37d   :  { %v3607_v52 = vld [vmem:[#allocation2 + $0x408] sm:$0xff]  ;;  %v3609_v39 = vld [vmem:[#allocation2 + $0x418] sm:$0xff]  ;;  %v3606_v48 = vld [vmem:[#allocation2 + $0x400] sm:$0xff]  ;;  %vm4515_vm4 = vcmp.lt.s32.totalorder %v6456_v38, 2  ;;  %vm4885_vm5 = vcmask 1040384   ;;  %vm4946_vm6 = vcmask 1041408  }
 0x37e   :  { %v3586_v25 = vsel %vm394_vm2, %v3570_v7, %v3574_v44  ;;  %v3590_v8 = vsel %vm394_vm2, %v3566_v45, %v3570_v7  ;;  %v3582_v27 = vsel %vm394_vm2, %v3574_v44, %v3578_v20  ;;  %v3594_v61 = vsel %vm394_vm2, %v3578_v20, %v3566_v45  ;;  %3734 = vmatprep.subr.bf16.mxu0 %v3607_v52  ;;  %v3608_v43 = vld [vmem:[#allocation2 + $0x410] sm:$0xff]  ;;  %v3611_v36 = vld [vmem:[#allocation2 + $0x428] sm:$0xff]  ;;  %v3613_v21 = vld [vmem:[#allocation2 + $0x438] sm:$0xff] }
 0x37f   :  { %v3598_v0 = vpack.c.bf16 %v3586_v25, %v3590_v8  ;;  %v6869_v9 = vpack.c.bf16 %v3594_v61, %v3582_v27  ;;  %3832 = vmatprep.subr.bf16.mxu1 %v3609_v39  ;;  %3735 = vmatpush1.bf16.msra.mxu0 %v3606_v48  ;;  %v3610_v10 = vld [vmem:[#allocation2 + $0x420] sm:$0xff]  ;;  %v3612_v57 = vld [vmem:[#allocation2 + $0x430] sm:$0xff]  ;;  %v3615_v31 = vld [vmem:[#allocation2 + $0x448] sm:$0xff]  ;;  %vm4964_vm7 = vcmask 1024  }
 0x380   :  { %3833 = vmatpush1.bf16.msra.mxu1 %v3608_v43  ;;  %3736 = vmatprep.subr.bf16.mxu0 %v3611_v36  ;;  %v3617_v46 = vld [vmem:[#allocation2 + $0x458] sm:$0xff]  ;;  %v3614_v54 = vld [vmem:[#allocation2 + $0x440] sm:$0xff]  ;;  %v3616_v19 = vld [vmem:[#allocation2 + $0x450] sm:$0xff] }
 0x381   :  { %3766 = vmatprep.mubr.bf16.mxu0 %v3598_v0  ;;  %3864 = vmatprep.mubr.bf16.mxu1 %v3598_v0  ;;  %v3619_v50 = vld [vmem:[#allocation2 + $0x468] sm:$0xff]  ;;  %v3621_v29 = vld [vmem:[#allocation2 + $0x478] sm:$0xff]  ;;  %v3618_v60 = vld [vmem:[#allocation2 + $0x460] sm:$0xff] }
 0x382   :  { %3834 = vmatprep.subr.bf16.mxu1 %v3613_v21  ;;  %v3620_v11 = vld [vmem:[#allocation2 + $0x470] sm:$0xff]  ;;  %v3623_v40 = vld [vmem:[#allocation2 + $0x488] sm:$0xff]  ;;  %v3625_v47 = vld [vmem:[#allocation2 + $0x498] sm:$0xff] }
 0x383   :  { %3737 = vmatpush1.bf16.msra.mxu0 %v3610_v10  ;;  %v3622_v5 = vld [vmem:[#allocation2 + $0x480] sm:$0xff]  ;;  %v3624_v32 = vld [vmem:[#allocation2 + $0x490] sm:$0xff]  ;;  %v3627_v15 = vld [vmem:[#allocation2 + $0x4a8] sm:$0xff] }
 0x384   :  { %3835 = vmatpush1.bf16.msra.mxu1 %v3612_v57  ;;  %3738 = vmatprep.subr.bf16.mxu0 %v3615_v31  ;;  %v3629_v56 = vld [vmem:[#allocation2 + $0x4b8] sm:$0xff]  ;;  %v3626_v34 = vld [vmem:[#allocation2 + $0x4a0] sm:$0xff]  ;;  %v3628_v51 = vld [vmem:[#allocation2 + $0x4b0] sm:$0xff] }
 0x385   :  { %3836 = vmatprep.subr.bf16.mxu1 %v3617_v46  ;;  %v3631_v58 = vld [vmem:[#allocation2 + $0x4c8] sm:$0xff]  ;;  %v3633_v2 = vld [vmem:[#allocation2 + $0x4d8] sm:$0xff]  ;;  %v3630_v6 = vld [vmem:[#allocation2 + $0x4c0] sm:$0xff] }
 0x386   :  { %v3632_v26 = vld [vmem:[#allocation2 + $0x4d0] sm:$0xff]  ;;  %v3635_v12 = vld [vmem:[#allocation2 + $0x4e8] sm:$0xff]  ;;  %v3637_v14 = vld [vmem:[#allocation2 + $0x4f8] sm:$0xff] }
 0x387   :  { %3739 = vmatpush1.bf16.msra.mxu0 %v3614_v54  ;;  %v3634_v33 = vld [vmem:[#allocation2 + $0x4e0] sm:$0xff]  ;;  %v3636_v35 = vld [vmem:[#allocation2 + $0x4f0] sm:$0xff]  ;;  %v3639_v1 = vld [vmem:[#allocation2 + $0x508] sm:$0xff] }
 0x388   :  { %3837 = vmatpush1.bf16.msra.mxu1 %v3616_v19  ;;  %3740 = vmatprep.subr.bf16.mxu0 %v3619_v50  ;;  %v3641_v4 = vld [vmem:[#allocation2 + $0x518] sm:$0xff]  ;;  %v3638_v55 = vld [vmem:[#allocation2 + $0x500] sm:$0xff]  ;;  %v3640_v17 = vld [vmem:[#allocation2 + $0x510] sm:$0xff]  ;;  %v3565_v50 = vrot.slane %v6825_v53, 2 }
 0x389   :  { %3838 = vmatprep.subr.bf16.mxu1 %v3621_v29  ;;  %v3643_v59 = vld [vmem:[#allocation2 + $0x528] sm:$0xff]  ;;  %v3645_v45 = vld [vmem:[#allocation2 + $0x538] sm:$0xff]  ;;  %v3642_v7 = vld [vmem:[#allocation2 + $0x520] sm:$0xff]  ;;  %v3569_v29 = vrot.slane %v6833_v30, 2 }
 0x38a   :  { %v3644_v44 = vld [vmem:[#allocation2 + $0x530] sm:$0xff]  ;;  %v3647_v20 = vld [vmem:[#allocation2 + $0x548] sm:$0xff]  ;;  %v3649_v25 = vld [vmem:[#allocation2 + $0x558] sm:$0xff] }
 0x38b   :  { %3741 = vmatpush1.bf16.msra.mxu0 %v3618_v60  ;;  %v3646_v8 = vld [vmem:[#allocation2 + $0x540] sm:$0xff]  ;;  %v3648_v0 = vld [vmem:[#allocation2 + $0x550] sm:$0xff]  ;;  %v3651_v27 = vld [vmem:[#allocation2 + $0x568] sm:$0xff]  ;;  %v3573_v60 = vrot.slane %v6841_v49, 2 }
 0x38c   :  { %3839 = vmatpush1.bf16.msra.mxu1 %v3620_v11  ;;  %3742 = vmatprep.subr.bf16.mxu0 %v3623_v40  ;;  %v3653_v61 = vld [vmem:[#allocation2 + $0x578] sm:$0xff]  ;;  %v3650_v52 = vld [vmem:[#allocation2 + $0x560] sm:$0xff]  ;;  %v3652_v39 = vld [vmem:[#allocation2 + $0x570] sm:$0xff] }
 0x38d   :  { %3840 = vmatprep.subr.bf16.mxu1 %v3625_v47  ;;  %v3655_v48 = vld [vmem:[#allocation2 + $0x588] sm:$0xff]  ;;  %v3657_v43 = vld [vmem:[#allocation2 + $0x598] sm:$0xff]  ;;  %v3654_v36 = vld [vmem:[#allocation2 + $0x580] sm:$0xff] }
 0x38e   :  { %v3656_v21 = vld [vmem:[#allocation2 + $0x590] sm:$0xff]  ;;  %v3659_v10 = vld [vmem:[#allocation2 + $0x5a8] sm:$0xff]  ;;  %v3661_v57 = vld [vmem:[#allocation2 + $0x5b8] sm:$0xff] }
 0x38f   :  { %3743 = vmatpush1.bf16.msra.mxu0 %v3622_v5  ;;  %v3658_v31 = vld [vmem:[#allocation2 + $0x5a0] sm:$0xff]  ;;  %v3660_v46 = vld [vmem:[#allocation2 + $0x5b0] sm:$0xff]  ;;  %v3663_v54 = vld [vmem:[#allocation2 + $0x5c8] sm:$0xff] }
 0x390   :  { %3841 = vmatpush1.bf16.msra.mxu1 %v3624_v32  ;;  %3744 = vmatprep.subr.bf16.mxu0 %v3627_v15  ;;  %v3665_v19 = vld [vmem:[#allocation2 + $0x5d8] sm:$0xff]  ;;  %v3662_v11 = vld [vmem:[#allocation2 + $0x5c0] sm:$0xff]  ;;  %v3664_v40 = vld [vmem:[#allocation2 + $0x5d0] sm:$0xff]  ;;  %v3585_v32 = vsel %vm394_vm2, %v3569_v29, %v3573_v60  ;;  %v3589_v15 = vsel %vm394_vm2, %v3565_v50, %v3569_v29 }
 0x391   :  { %3842 = vmatprep.subr.bf16.mxu1 %v3629_v56  ;;  %v3667_v47 = vld [vmem:[#allocation2 + $0x5e8] sm:$0xff]  ;;  %v3669_v5 = vld [vmem:[#allocation2 + $0x5f8] sm:$0xff]  ;;  %v3666_v56 = vld [vmem:[#allocation2 + $0x5e0] sm:$0xff] }
 0x392   :  { %v3694_v29 = vld [vmem:[#allocation2 + $0x6c0] sm:$0xff] }
 0x393   :  { %3745 = vmatpush1.bf16.msra.mxu0 %v3626_v34  ;;  %v3668_v34 = vld [vmem:[#allocation2 + $0x5f0] sm:$0xff] }
 0x394   :  { %3843 = vmatpush1.bf16.msra.mxu1 %v3628_v51  ;;  %3746 = vmatprep.subr.bf16.mxu0 %v3631_v58  ;;  %v3671_v51 = vld [vmem:[#allocation2 + $0x608] sm:$0xff]  ;;  %v3673_v58 = vld [vmem:[#allocation2 + $0x618] sm:$0xff] }
 0x395   :  { %3844 = vmatprep.subr.bf16.mxu1 %v3633_v2  ;;  %v3597_v2 = vpack.c.bf16 %v3585_v32, %v3589_v15  ;;  %v3703_v32 = vld [vmem:[#allocation2 + $0x708] sm:$0xff]  ;;  %v3705_v15 = vld [vmem:[#allocation2 + $0x718] sm:$0xff] }
 0x397   :  { %3747 = vmatpush1.bf16.msra.mxu0 %v3630_v6  ;;  %v3577_v6 = vrot.slane %v6849_v28, 2 }
 0x398   :  { %3845 = vmatpush1.bf16.msra.mxu1 %v3632_v26  ;;  %3748 = vmatprep.subr.bf16.mxu0 %v3635_v12  ;;  %v3670_v26 = vld [vmem:[#allocation2 + $0x600] sm:$0xff]  ;;  %v3672_v12 = vld [vmem:[#allocation2 + $0x610] sm:$0xff] }
 0x399   :  { %3846 = vmatprep.subr.bf16.mxu1 %v3637_v14  ;;  %v3675_v14 = vld [vmem:[#allocation2 + $0x628] sm:$0xff] }
 0x39b   :  { %3749 = vmatpush1.bf16.msra.mxu0 %v3634_v33  ;;  %v3677_v33 = vld [vmem:[#allocation2 + $0x638] sm:$0xff] }
 0x39c   :  { %3847 = vmatpush1.bf16.msra.mxu1 %v3636_v35  ;;  %3750 = vmatprep.subr.bf16.mxu0 %v3639_v1  ;;  %v3568_v35 = vrot.slane %v6831_v63, 2  ;;  %v3572_v1 = vrot.slane %v6839_v37, 2 }
 0x39d   :  { %3848 = vmatprep.subr.bf16.mxu1 %v3641_v4  ;;  %v3576_v4 = vrot.slane %v6847_v41, 2 }
 0x39f   :  { %3751 = vmatpush1.bf16.msra.mxu0 %v3638_v55  ;;  %v3581_v55 = vsel %vm394_vm2, %v3573_v60, %v3577_v6  ;;  %v3696_v60 = vld [vmem:[#allocation2 + $0x6d0] sm:$0xff] }
 0x3a0   :  { %3849 = vmatpush1.bf16.msra.mxu1 %v3640_v17  ;;  %3752 = vmatprep.subr.bf16.mxu0 %v3643_v59  ;;  %v3593_v17 = vsel %vm394_vm2, %v3577_v6, %v3565_v50  ;;  %v3674_v59 = vld [vmem:[#allocation2 + $0x620] sm:$0xff]  ;;  %v3697_v50 = vld [vmem:[#allocation2 + $0x6d8] sm:$0xff]  ;;  %v3708_v6 = vld [vmem:[#allocation2 + $0x730] sm:$0xff] }
 0x3a1   :  { %3850 = vmatprep.subr.bf16.mxu1 %v3645_v45  ;;  %v3676_v45 = vld [vmem:[#allocation2 + $0x630] sm:$0xff] }
 0x3a3   :  { %3753 = vmatpush1.bf16.msra.mxu0 %v3642_v7  ;;  %v3679_v7 = vld [vmem:[#allocation2 + $0x648] sm:$0xff] }
 0x3a4   :  { %3851 = vmatpush1.bf16.msra.mxu1 %v3644_v44  ;;  %3754 = vmatprep.subr.bf16.mxu0 %v3647_v20  ;;  %v3681_v44 = vld [vmem:[#allocation2 + $0x658] sm:$0xff]  ;;  %v3601_v20 = vpack.c.bf16 %v3593_v17, %v3581_v55  ;;  %v3714_v17 = vld [vmem:[#allocation2 + $0x760] sm:$0xff] }
 0x3a5   :  { %3852 = vmatprep.subr.bf16.mxu1 %v3649_v25  ;;  %v3588_v25 = vsel %vm394_vm2, %v3572_v1, %v3576_v4  ;;  %v3717_v55 = vld [vmem:[#allocation2 + $0x778] sm:$0xff] }
 0x3a7   :  { %3755 = vmatpush1.bf16.msra.mxu0 %v3646_v8  ;;  %v3592_v8 = vsel %vm394_vm2, %v3568_v35, %v3572_v1  ;;  %v3715_v1 = vld [vmem:[#allocation2 + $0x768] sm:$0xff] }
 0x3a8   :  { %3853 = vmatpush1.bf16.msra.mxu1 %v3648_v0  ;;  %3756 = vmatprep.subr.bf16.mxu0 %v3651_v27  ;;  %v3678_v0 = vld [vmem:[#allocation2 + $0x640] sm:$0xff]  ;;  %v3680_v27 = vld [vmem:[#allocation2 + $0x650] sm:$0xff] }
 0x3a9   :  { %3854 = vmatprep.subr.bf16.mxu1 %v3653_v61  ;;  %v3683_v61 = vld [vmem:[#allocation2 + $0x668] sm:$0xff] }
 0x3ab   :  { %3757 = vmatpush1.bf16.msra.mxu0 %v3650_v52  ;;  %v3685_v52 = vld [vmem:[#allocation2 + $0x678] sm:$0xff] }
 0x3ac   :  { %3855 = vmatpush1.bf16.msra.mxu1 %v3652_v39  ;;  %3758 = vmatprep.subr.bf16.mxu0 %v3655_v48  ;;  %v3682_v39 = vld [vmem:[#allocation2 + $0x660] sm:$0xff]  ;;  %v3684_v48 = vld [vmem:[#allocation2 + $0x670] sm:$0xff] }
 0x3ad   :  { %3856 = vmatprep.subr.bf16.mxu1 %v3657_v43  ;;  %v3687_v43 = vld [vmem:[#allocation2 + $0x688] sm:$0xff] }
 0x3af   :  { %3759 = vmatpush1.bf16.msra.mxu0 %v3654_v36  ;;  %v3689_v36 = vld [vmem:[#allocation2 + $0x698] sm:$0xff] }
 0x3b0   :  { %3857 = vmatpush1.bf16.msra.mxu1 %v3656_v21  ;;  %3760 = vmatprep.subr.bf16.mxu0 %v3659_v10  ;;  %v3686_v21 = vld [vmem:[#allocation2 + $0x680] sm:$0xff]  ;;  %v3688_v10 = vld [vmem:[#allocation2 + $0x690] sm:$0xff] }
 0x3b1   :  { %3858 = vmatprep.subr.bf16.mxu1 %v3661_v57  ;;  %v3691_v57 = vld [vmem:[#allocation2 + $0x6a8] sm:$0xff] }
 0x3b3   :  { %3761 = vmatpush1.bf16.msra.mxu0 %v3658_v31  ;;  %v3693_v31 = vld [vmem:[#allocation2 + $0x6b8] sm:$0xff] }
 0x3b4   :  { %3859 = vmatpush1.bf16.msra.mxu1 %v3660_v46  ;;  %3762 = vmatprep.subr.bf16.mxu0 %v3663_v54  ;;  %v3690_v46 = vld [vmem:[#allocation2 + $0x6a0] sm:$0xff]  ;;  %v3692_v54 = vld [vmem:[#allocation2 + $0x6b0] sm:$0xff] }
 0x3b5   :  { %3860 = vmatprep.subr.bf16.mxu1 %v3665_v19  ;;  %v3695_v19 = vld [vmem:[#allocation2 + $0x6c8] sm:$0xff] }
 0x3b7   :  { %3763 = vmatpush1.bf16.msra.mxu0 %v3662_v11  ;;  %v3699_v11 = vld [vmem:[#allocation2 + $0x6e8] sm:$0xff] }
 0x3b8   :  { %3861 = vmatpush1.bf16.msra.mxu1 %v3664_v40  ;;  %3764 = vmatprep.subr.bf16.mxu0 %v3667_v47  ;;  %v3701_v40 = vld [vmem:[#allocation2 + $0x6f8] sm:$0xff]  ;;  %v3698_v47 = vld [vmem:[#allocation2 + $0x6e0] sm:$0xff] }
 0x3b9   :  { %3862 = vmatprep.subr.bf16.mxu1 %v3669_v5  ;;  %v3700_v5 = vld [vmem:[#allocation2 + $0x6f0] sm:$0xff] }
 0x3bb   :  { %3765 = vmatpush1.bf16.msra.mxu0 %v3666_v56  ;;  %v3702_v56 = vld [vmem:[#allocation2 + $0x700] sm:$0xff] }
 0x3bc   :  { %3863 = vmatpush1.bf16.msra.mxu1 %v3668_v34  ;;  %3783 = vmatprep.subr.bf16.mxu0 %v3671_v51  ;;  %v3704_v34 = vld [vmem:[#allocation2 + $0x710] sm:$0xff]  ;;  %v3707_v51 = vld [vmem:[#allocation2 + $0x728] sm:$0xff] }
 0x3bd   :  { %3881 = vmatprep.subr.bf16.mxu1 %v3673_v58  ;;  %v3709_v58 = vld [vmem:[#allocation2 + $0x738] sm:$0xff] }
 0x3be   :  { %3767 = vmatmul.mubr.bf16.vlgmr.msra.gmra.mrb[16].mxu0 %v3597_v2 }
 0x3bf   :  { %3865 = vmatmul.mubr.bf16.vlgmr.msra.gmra.mrb[16].mxu1 %v3597_v2  ;;  %3784 = vmatpush1.bf16.msra.mxu0 %v3670_v26  ;;  %v3706_v2 = vld [vmem:[#allocation2 + $0x720] sm:$0xff]  ;;  %v3711_v26 = vld [vmem:[#allocation2 + $0x748] sm:$0xff] }
 0x3c0   :  { %3882 = vmatpush1.bf16.msra.mxu1 %v3672_v12  ;;  %3785 = vmatprep.subr.bf16.mxu0 %v3675_v14  ;;  %v3713_v12 = vld [vmem:[#allocation2 + $0x758] sm:$0xff]  ;;  %v3710_v14 = vld [vmem:[#allocation2 + $0x740] sm:$0xff] }
 0x3c1   :  { %3883 = vmatprep.subr.bf16.mxu1 %v3677_v33  ;;  %3774 = vmatprep.mubr.bf16.mxu0 %v6869_v9  ;;  %v3712_v33 = vld [vmem:[#allocation2 + $0x750] sm:$0xff] }
 0x3c2   :  { %3872 = vmatprep.mubr.bf16.mxu1 %v6869_v9  ;;  %v3600_v9 = vpack.c.bf16 %v3588_v25, %v3592_v8  ;;  %v3723_v25 = vld [vmem:[#allocation2 + $0x7a8] sm:$0xff]  ;;  %v3725_v8 = vld [vmem:[#allocation2 + $0x7b8] sm:$0xff] }
 0x3c3   :  { %3786 = vmatpush1.bf16.msra.mxu0 %v3674_v59  ;;  %v3716_v59 = vld [vmem:[#allocation2 + $0x770] sm:$0xff] }
 0x3c4   :  { %3884 = vmatpush1.bf16.msra.mxu1 %v3676_v45  ;;  %3787 = vmatprep.subr.bf16.mxu0 %v3679_v7  ;;  %v3719_v45 = vld [vmem:[#allocation2 + $0x788] sm:$0xff]  ;;  %v3721_v7 = vld [vmem:[#allocation2 + $0x798] sm:$0xff] }
 0x3c5   :  { %3885 = vmatprep.subr.bf16.mxu1 %v3681_v44  ;;  %v3718_v44 = vld [vmem:[#allocation2 + $0x780] sm:$0xff] }
 0x3c6   :  { %3775 = vmatmul.mubr.bf16.gmra.mrb[20].mxu0 %v3601_v20 }
 0x3c7   :  { %3873 = vmatmul.mubr.bf16.gmra.mrb[20].mxu1 %v3601_v20  ;;  %3788 = vmatpush1.bf16.msra.mxu0 %v3678_v0  ;;  %v3720_v20 = vld [vmem:[#allocation2 + $0x790] sm:$0xff]  ;;  %v3722_v0 = vld [vmem:[#allocation2 + $0x7a0] sm:$0xff] }
 0x3c8   :  { %3886 = vmatpush1.bf16.msra.mxu1 %v3680_v27  ;;  %3789 = vmatprep.subr.bf16.mxu0 %v3683_v61  ;;  %v3724_v27 = vld [vmem:[#allocation2 + $0x7b0] sm:$0xff]  ;;  %v3727_v61 = vld [vmem:[#allocation2 + $0x7c8] sm:$0xff] }
 0x3c9   :  { %3887 = vmatprep.subr.bf16.mxu1 %v3685_v52  ;;  %3815 = vmatprep.mubr.bf16.mxu0 %v3600_v9  ;;  %v3729_v52 = vld [vmem:[#allocation2 + $0x7d8] sm:$0xff] }
 0x3ca   :  { %3913 = vmatprep.mubr.bf16.mxu1 %v3600_v9  ;;  %v3567_v9 = vrot.slane %v6827_v3, 2 }
 0x3cb   :  { %3790 = vmatpush1.bf16.msra.mxu0 %v3682_v39  ;;  %v3571_v39 = vrot.slane %v6835_v23, 2 }
 0x3cc   :  { %3888 = vmatpush1.bf16.msra.mxu1 %v3684_v48  ;;  %3791 = vmatprep.subr.bf16.mxu0 %v3687_v43  ;;  %v3575_v48 = vrot.slane %v6843_v62, 2  ;;  %v3726_v43 = vld [vmem:[#allocation2 + $0x7c0] sm:$0xff] }
 0x3cd   :  { %3889 = vmatprep.subr.bf16.mxu1 %v3689_v36  ;;  %v3728_v36 = vld [vmem:[#allocation2 + $0x7d0] sm:$0xff] }
 0x3cf   :  { %3792 = vmatpush1.bf16.msra.mxu0 %v3686_v21  ;;  %v3731_v21 = vld [vmem:[#allocation2 + $0x7e8] sm:$0xff] }
 0x3d0   :  { %3890 = vmatpush1.bf16.msra.mxu1 %v3688_v10  ;;  %3793 = vmatprep.subr.bf16.mxu0 %v3691_v57  ;;  %v3733_v10 = vld [vmem:[#allocation2 + $0x7f8] sm:$0xff]  ;;  %v3580_v57 = vrot.slane %v6855_v42, 2 }
 0x3d1   :  { %3891 = vmatprep.subr.bf16.mxu1 %v3693_v31  ;;  %v3587_v31 = vsel %vm394_vm2, %v3571_v39, %v3575_v48 }
 0x3d3   :  { %3794 = vmatpush1.bf16.msra.mxu0 %v3690_v46  ;;  %v3591_v46 = vsel %vm394_vm2, %v3567_v9, %v3571_v39  ;;  %v3463_v39 = vld [vmem:[#allocation2 + $0xd0] sm:$0xff] }
 0x3d4   :  { %3892 = vmatpush1.bf16.msra.mxu1 %v3692_v54  ;;  %3795 = vmatprep.subr.bf16.mxu0 %v3695_v19  ;;  %v3730_v54 = vld [vmem:[#allocation2 + $0x7e0] sm:$0xff]  ;;  %v3732_v19 = vld [vmem:[#allocation2 + $0x7f0] sm:$0xff] }
 0x3d5   :  { %3893 = vmatprep.subr.bf16.mxu1 %v3697_v50  ;;  %v3438_v50 = vld [vmem:[#allocation2 + $0x8] sm:$0xff] }
 0x3d7   :  { %3796 = vmatpush1.bf16.msra.mxu0 %v3694_v29  ;;  %v3440_v29 = vld [vmem:[#allocation2 + $0x18] sm:$0xff] }
 0x3d8   :  { %3894 = vmatpush1.bf16.msra.mxu1 %v3696_v60  ;;  %3797 = vmatprep.subr.bf16.mxu0 %v3699_v11  ;;  %v3599_v60 = vpack.c.bf16 %v3587_v31, %v3591_v46  ;;  %v3584_v11 = vsel %vm394_vm2, %v3576_v4, %v3580_v57  ;;  %v3469_v31 = vld [vmem:[#allocation2 + $0x100] sm:$0xff]  ;;  %v3471_v46 = vld [vmem:[#allocation2 + $0x110] sm:$0xff] }
 0x3d9   :  { %3895 = vmatprep.subr.bf16.mxu1 %v3701_v40  ;;  %v3596_v40 = vsel %vm394_vm2, %v3580_v57, %v3568_v35  ;;  %v3472_v57 = vld [vmem:[#allocation2 + $0x118] sm:$0xff] }
 0x3db   :  { %3798 = vmatpush1.bf16.msra.mxu0 %v3698_v47  ;;  %v3579_v47 = vrot.slane %v6851_v13, 2 }
 0x3dc   :  { %3896 = vmatpush1.bf16.msra.mxu1 %v3700_v5  ;;  %3799 = vmatprep.subr.bf16.mxu0 %v3703_v32  ;;  %v3437_v5 = vld [vmem:[#allocation2] sm:$0xff]  ;;  %v3439_v32 = vld [vmem:[#allocation2 + $0x10] sm:$0xff] }
 0x3dd   :  { %3897 = vmatprep.subr.bf16.mxu1 %v3705_v15  ;;  %v3442_v15 = vld [vmem:[#allocation2 + $0x28] sm:$0xff]  ;;  %v3583_v4 = vsel %vm394_vm2, %v3575_v48, %v3579_v47  ;;  %v3595_v35 = vsel %vm394_vm2, %v3579_v47, %v3567_v9  ;;  %v3461_v9 = vld [vmem:[#allocation2 + $0xc0] sm:$0xff]  ;;  %v3479_v47 = vld [vmem:[#allocation2 + $0x150] sm:$0xff] }
 0x3de   :  { %v3466_v48 = vld [vmem:[#allocation2 + $0xe8] sm:$0xff] }
 0x3df   :  { %3800 = vmatpush1.bf16.msra.mxu0 %v3702_v56  ;;  %v3444_v56 = vld [vmem:[#allocation2 + $0x38] sm:$0xff] }
 0x3e0   :  { %3898 = vmatpush1.bf16.msra.mxu1 %v3704_v34  ;;  %3801 = vmatprep.subr.bf16.mxu0 %v3707_v51  ;;  %v3604_v34 = vpack.c.bf16 %v3596_v40, %v3584_v11  ;;  %v3441_v51 = vld [vmem:[#allocation2 + $0x20] sm:$0xff]  ;;  %v3480_v11 = vld [vmem:[#allocation2 + $0x158] sm:$0xff] }
 0x3e1   :  { %3899 = vmatprep.subr.bf16.mxu1 %v3709_v58  ;;  %v3443_v58 = vld [vmem:[#allocation2 + $0x30] sm:$0xff]  ;;  %v3477_v40 = vld [vmem:[#allocation2 + $0x140] sm:$0xff] }
 0x3e3   :  { %3802 = vmatpush1.bf16.msra.mxu0 %v3706_v2  ;;  %v3446_v2 = vld [vmem:[#allocation2 + $0x48] sm:$0xff] }
 0x3e4   :  { %3900 = vmatpush1.bf16.msra.mxu1 %v3708_v6  ;;  %3803 = vmatprep.subr.bf16.mxu0 %v3711_v26  ;;  %v3448_v6 = vld [vmem:[#allocation2 + $0x58] sm:$0xff]  ;;  %v3603_v26 = vpack.c.bf16 %v3595_v35, %v3583_v4  ;;  %v3485_v35 = vld [vmem:[#allocation2 + $0x180] sm:$0xff] }
 0x3e5   :  { %3901 = vmatprep.subr.bf16.mxu1 %v3713_v12  ;;  %v3445_v12 = vld [vmem:[#allocation2 + $0x40] sm:$0xff]  ;;  %v3488_v4 = vld [vmem:[#allocation2 + $0x198] sm:$0xff] }
 0x3e7   :  { %3804 = vmatpush1.bf16.msra.mxu0 %v3710_v14  ;;  %v3447_v14 = vld [vmem:[#allocation2 + $0x50] sm:$0xff] }
 0x3e8   :  { %3902 = vmatpush1.bf16.msra.mxu1 %v3712_v33  ;;  %3805 = vmatprep.subr.bf16.mxu0 %v3715_v1  ;;  %v3450_v33 = vld [vmem:[#allocation2 + $0x68] sm:$0xff]  ;;  %v3452_v1 = vld [vmem:[#allocation2 + $0x78] sm:$0xff] }
 0x3e9   :  { %3903 = vmatprep.subr.bf16.mxu1 %v3717_v55  ;;  %v3430_v55 = vpack.c.bf16 %v6837_v22, %v6829_v16 }
 0x3eb   :  { %3806 = vmatpush1.bf16.msra.mxu0 %v3714_v17  ;;  %v3449_v17 = vld [vmem:[#allocation2 + $0x60] sm:$0xff] }
 0x3ec   :  { %3904 = vmatpush1.bf16.msra.mxu1 %v3716_v59  ;;  %3807 = vmatprep.subr.bf16.mxu0 %v3719_v45  ;;  %v3451_v59 = vld [vmem:[#allocation2 + $0x70] sm:$0xff]  ;;  %v3454_v45 = vld [vmem:[#allocation2 + $0x88] sm:$0xff] }
 0x3ed   :  { %3905 = vmatprep.subr.bf16.mxu1 %v3721_v7  ;;  %v3456_v7 = vld [vmem:[#allocation2 + $0x98] sm:$0xff] }
 0x3ef   :  { %3808 = vmatpush1.bf16.msra.mxu0 %v3718_v44  ;;  %v3453_v44 = vld [vmem:[#allocation2 + $0x80] sm:$0xff] }
 0x3f0   :  { %3906 = vmatpush1.bf16.msra.mxu1 %v3720_v20  ;;  %3809 = vmatprep.subr.bf16.mxu0 %v3723_v25  ;;  %v3455_v20 = vld [vmem:[#allocation2 + $0x90] sm:$0xff]  ;;  %v3458_v25 = vld [vmem:[#allocation2 + $0xa8] sm:$0xff] }
 0x3f1   :  { %3907 = vmatprep.subr.bf16.mxu1 %v3725_v8  ;;  %v3460_v8 = vld [vmem:[#allocation2 + $0xb8] sm:$0xff] }
 0x3f3   :  { %3810 = vmatpush1.bf16.msra.mxu0 %v3722_v0  ;;  %v3457_v0 = vld [vmem:[#allocation2 + $0xa0] sm:$0xff] }
 0x3f4   :  { %3908 = vmatpush1.bf16.msra.mxu1 %v3724_v27  ;;  %3811 = vmatprep.subr.bf16.mxu0 %v3727_v61  ;;  %v3459_v27 = vld [vmem:[#allocation2 + $0xb0] sm:$0xff]  ;;  %v3462_v61 = vld [vmem:[#allocation2 + $0xc8] sm:$0xff] }
 0x3f5   :  { %3909 = vmatprep.subr.bf16.mxu1 %v3729_v52  ;;  %v3464_v52 = vld [vmem:[#allocation2 + $0xd8] sm:$0xff] }
 0x3f7   :  { %3812 = vmatpush1.bf16.msra.mxu0 %v3726_v43  ;;  %v3468_v43 = vld [vmem:[#allocation2 + $0xf8] sm:$0xff] }
 0x3f8   :  { %3910 = vmatpush1.bf16.msra.mxu1 %v3728_v36  ;;  %3813 = vmatprep.subr.bf16.mxu0 %v3731_v21  ;;  %v3465_v36 = vld [vmem:[#allocation2 + $0xe0] sm:$0xff]  ;;  %v3467_v21 = vld [vmem:[#allocation2 + $0xf0] sm:$0xff] }
 0x3f9   :  { %3911 = vmatprep.subr.bf16.mxu1 %v3733_v10  ;;  %v3470_v10 = vld [vmem:[#allocation2 + $0x108] sm:$0xff] }
 0x3fb   :  { %3814 = vmatpush1.bf16.msra.mxu0 %v3730_v54  ;;  %v3474_v54 = vld [vmem:[#allocation2 + $0x128] sm:$0xff] }
 0x3fc   :  { %3912 = vmatpush1.bf16.msra.mxu1 %v3732_v19  ;;  %3930 = vmatprep.subr.bf16.mxu0 %v3438_v50  ;;  %v3476_v19 = vld [vmem:[#allocation2 + $0x138] sm:$0xff]  ;;  %v3473_v50 = vld [vmem:[#allocation2 + $0x120] sm:$0xff] }
 0x3fd   :  { %4028 = vmatprep.subr.bf16.mxu1 %v3440_v29  ;;  %v3475_v29 = vld [vmem:[#allocation2 + $0x130] sm:$0xff] }
 0x3fe   :  { %3816 = vmatmul.mubr.bf16.vlgmr.msra.gmra.mrb[16].mxu0 %v3599_v60 }
 0x3ff   :  { %3914 = vmatmul.mubr.bf16.vlgmr.msra.gmra.mrb[16].mxu1 %v3599_v60  ;;  %3931 = vmatpush1.bf16.msra.mxu0 %v3437_v5  ;;  %v3478_v60 = vld [vmem:[#allocation2 + $0x148] sm:$0xff] }
 0x400   :  { %4029 = vmatpush1.bf16.msra.mxu1 %v3439_v32  ;;  %3932 = vmatprep.subr.bf16.mxu0 %v3442_v15  ;;  %v3482_v5 = vld [vmem:[#allocation2 + $0x168] sm:$0xff]  ;;  %v3484_v32 = vld [vmem:[#allocation2 + $0x178] sm:$0xff]  ;;  %v3481_v15 = vld [vmem:[#allocation2 + $0x160] sm:$0xff] }
 0x401   :  { %4030 = vmatprep.subr.bf16.mxu1 %v3444_v56  ;;  %3823 = vmatprep.mubr.bf16.mxu0 %v3604_v34  ;;  %v3483_v56 = vld [vmem:[#allocation2 + $0x170] sm:$0xff] }
 0x402   :  { %3921 = vmatprep.mubr.bf16.mxu1 %v3604_v34  ;;  %v3486_v34 = vld [vmem:[#allocation2 + $0x188] sm:$0xff] }
 0x403   :  { %3933 = vmatpush1.bf16.msra.mxu0 %v3441_v51  ;;  %v3487_v51 = vld [vmem:[#allocation2 + $0x190] sm:$0xff] }
 0x404   :  { %4031 = vmatpush1.bf16.msra.mxu1 %v3443_v58  ;;  %3934 = vmatprep.subr.bf16.mxu0 %v3446_v2  ;;  %v3490_v58 = vld [vmem:[#allocation2 + $0x1a8] sm:$0xff]  ;;  %v3492_v2 = vld [vmem:[#allocation2 + $0x1b8] sm:$0xff] }
 0x405   :  { %4032 = vmatprep.subr.bf16.mxu1 %v3448_v6  ;;  %v3489_v6 = vld [vmem:[#allocation2 + $0x1a0] sm:$0xff] }
 0x406   :  { %3824 = vmatmul.mubr.bf16.gmra.mrb[20].mxu0 %v3603_v26 }
 0x407   :  { %3922 = vmatmul.mubr.bf16.gmra.mrb[20].mxu1 %v3603_v26  ;;  %3935 = vmatpush1.bf16.msra.mxu0 %v3445_v12  ;;  %v3491_v26 = vld [vmem:[#allocation2 + $0x1b0] sm:$0xff]  ;;  %v3494_v12 = vld [vmem:[#allocation2 + $0x1c8] sm:$0xff] }
 0x408   :  { %4033 = vmatpush1.bf16.msra.mxu1 %v3447_v14  ;;  %3936 = vmatprep.subr.bf16.mxu0 %v3450_v33  ;;  %v3496_v14 = vld [vmem:[#allocation2 + $0x1d8] sm:$0xff]  ;;  %v3493_v33 = vld [vmem:[#allocation2 + $0x1c0] sm:$0xff] }
 0x409   :  { %4034 = vmatprep.subr.bf16.mxu1 %v3452_v1  ;;  %3962 = vmatprep.mubr.bf16.mxu0 %v3430_v55  ;;  %v3495_v1 = vld [vmem:[#allocation2 + $0x1d0] sm:$0xff] }
 0x40a   :  { %4060 = vmatprep.mubr.bf16.mxu1 %v3430_v55  ;;  %v3498_v55 = vld [vmem:[#allocation2 + $0x1e8] sm:$0xff] }
 0x40b   :  { %3937 = vmatpush1.bf16.msra.mxu0 %v3449_v17  ;;  %v3500_v17 = vld [vmem:[#allocation2 + $0x1f8] sm:$0xff] }
 0x40c   :  { %4035 = vmatpush1.bf16.msra.mxu1 %v3451_v59  ;;  %3938 = vmatprep.subr.bf16.mxu0 %v3454_v45  ;;  %v3497_v59 = vld [vmem:[#allocation2 + $0x1e0] sm:$0xff]  ;;  %v3499_v45 = vld [vmem:[#allocation2 + $0x1f0] sm:$0xff] }
 0x40d   :  { %4036 = vmatprep.subr.bf16.mxu1 %v3456_v7  ;;  %v3502_v7 = vld [vmem:[#allocation2 + $0x208] sm:$0xff] }
 0x40f   :  { %3939 = vmatpush1.bf16.msra.mxu0 %v3453_v44  ;;  %v3504_v44 = vld [vmem:[#allocation2 + $0x218] sm:$0xff] }
 0x410   :  { %4037 = vmatpush1.bf16.msra.mxu1 %v3455_v20  ;;  %3940 = vmatprep.subr.bf16.mxu0 %v3458_v25  ;;  %v3429_v20 = vpack.c.bf16 %v6833_v30, %v6825_v53  ;;  %v3501_v25 = vld [vmem:[#allocation2 + $0x200] sm:$0xff] }
 0x411   :  { %4038 = vmatprep.subr.bf16.mxu1 %v3460_v8  ;;  %v3503_v8 = vld [vmem:[#allocation2 + $0x210] sm:$0xff] }
 0x413   :  { %3941 = vmatpush1.bf16.msra.mxu0 %v3457_v0  ;;  %v3506_v0 = vld [vmem:[#allocation2 + $0x228] sm:$0xff] }
 0x414   :  { %4039 = vmatpush1.bf16.msra.mxu1 %v3459_v27  ;;  %3942 = vmatprep.subr.bf16.mxu0 %v3462_v61  ;;  %v3508_v27 = vld [vmem:[#allocation2 + $0x238] sm:$0xff]  ;;  %v3434_v61 = vpack.c.bf16 %v6853_v18, %v6845_v24 }
 0x415   :  { %4040 = vmatprep.subr.bf16.mxu1 %v3464_v52  ;;  %v3505_v52 = vld [vmem:[#allocation2 + $0x220] sm:$0xff] }
 0x417   :  { %3943 = vmatpush1.bf16.msra.mxu0 %v3461_v9  ;;  %v3507_v9 = vld [vmem:[#allocation2 + $0x230] sm:$0xff] }
 0x418   :  { %4041 = vmatpush1.bf16.msra.mxu1 %v3463_v39  ;;  %3944 = vmatprep.subr.bf16.mxu0 %v3466_v48  ;;  %v3510_v39 = vld [vmem:[#allocation2 + $0x248] sm:$0xff]  ;;  %v3512_v48 = vld [vmem:[#allocation2 + $0x258] sm:$0xff] }
 0x419   :  { %4042 = vmatprep.subr.bf16.mxu1 %v3468_v43  ;;  %v3433_v43 = vpack.c.bf16 %v6849_v28, %v6841_v49 }
 0x41b   :  { %3945 = vmatpush1.bf16.msra.mxu0 %v3465_v36  ;;  %v3509_v36 = vld [vmem:[#allocation2 + $0x240] sm:$0xff] }
 0x41c   :  { %4043 = vmatpush1.bf16.msra.mxu1 %v3467_v21  ;;  %3946 = vmatprep.subr.bf16.mxu0 %v3470_v10  ;;  %v3511_v21 = vld [vmem:[#allocation2 + $0x250] sm:$0xff]  ;;  %v3514_v10 = vld [vmem:[#allocation2 + $0x268] sm:$0xff] }
 0x41d   :  { %4044 = vmatprep.subr.bf16.mxu1 %v3472_v57  ;;  %v3516_v57 = vld [vmem:[#allocation2 + $0x278] sm:$0xff] }
 0x41f   :  { %3947 = vmatpush1.bf16.msra.mxu0 %v3469_v31  ;;  %v3432_v31 = vpack.c.bf16 %v6839_v37, %v6831_v63 }
 0x420   :  { %4045 = vmatpush1.bf16.msra.mxu1 %v3471_v46  ;;  %3948 = vmatprep.subr.bf16.mxu0 %v3474_v54  ;;  %v3513_v46 = vld [vmem:[#allocation2 + $0x260] sm:$0xff]  ;;  %v3515_v54 = vld [vmem:[#allocation2 + $0x270] sm:$0xff] }
 0x421   :  { %4046 = vmatprep.subr.bf16.mxu1 %v3476_v19  ;;  %v3518_v19 = vld [vmem:[#allocation2 + $0x288] sm:$0xff] }
 0x423   :  { %3949 = vmatpush1.bf16.msra.mxu0 %v3473_v50  ;;  %v3520_v50 = vld [vmem:[#allocation2 + $0x298] sm:$0xff] }
 0x424   :  { %4047 = vmatpush1.bf16.msra.mxu1 %v3475_v29  ;;  %3950 = vmatprep.subr.bf16.mxu0 %v3478_v60  ;;  %v3517_v29 = vld [vmem:[#allocation2 + $0x280] sm:$0xff]  ;;  %v3519_v60 = vld [vmem:[#allocation2 + $0x290] sm:$0xff] }
 0x425   :  { %4048 = vmatprep.subr.bf16.mxu1 %v3480_v11  ;;  %v3522_v11 = vld [vmem:[#allocation2 + $0x2a8] sm:$0xff] }
 0x427   :  { %3951 = vmatpush1.bf16.msra.mxu0 %v3477_v40  ;;  %v3524_v40 = vld [vmem:[#allocation2 + $0x2b8] sm:$0xff] }
 0x428   :  { %4049 = vmatpush1.bf16.msra.mxu1 %v3479_v47  ;;  %3952 = vmatprep.subr.bf16.mxu0 %v3482_v5  ;;  %v3521_v47 = vld [vmem:[#allocation2 + $0x2a0] sm:$0xff]  ;;  %v3523_v5 = vld [vmem:[#allocation2 + $0x2b0] sm:$0xff] }
 0x429   :  { %4050 = vmatprep.subr.bf16.mxu1 %v3484_v32  ;;  %v3526_v32 = vld [vmem:[#allocation2 + $0x2c8] sm:$0xff] }
 0x42b   :  { %3953 = vmatpush1.bf16.msra.mxu0 %v3481_v15  ;;  %v3528_v15 = vld [vmem:[#allocation2 + $0x2d8] sm:$0xff] }
 0x42c   :  { %4051 = vmatpush1.bf16.msra.mxu1 %v3483_v56  ;;  %3954 = vmatprep.subr.bf16.mxu0 %v3486_v34  ;;  %v3525_v56 = vld [vmem:[#allocation2 + $0x2c0] sm:$0xff]  ;;  %v3527_v34 = vld [vmem:[#allocation2 + $0x2d0] sm:$0xff] }
 0x42d   :  { %4052 = vmatprep.subr.bf16.mxu1 %v3488_v4  ;;  %v3530_v4 = vld [vmem:[#allocation2 + $0x2e8] sm:$0xff] }
 0x42f   :  { %3955 = vmatpush1.bf16.msra.mxu0 %v3485_v35  ;;  %v3532_v35 = vld [vmem:[#allocation2 + $0x2f8] sm:$0xff] }
 0x430   :  { %4053 = vmatpush1.bf16.msra.mxu1 %v3487_v51  ;;  %3956 = vmatprep.subr.bf16.mxu0 %v3490_v58  ;;  %v3529_v51 = vld [vmem:[#allocation2 + $0x2e0] sm:$0xff]  ;;  %v3531_v58 = vld [vmem:[#allocation2 + $0x2f0] sm:$0xff] }
 0x431   :  { %4054 = vmatprep.subr.bf16.mxu1 %v3492_v2  ;;  %v3534_v2 = vld [vmem:[#allocation2 + $0x308] sm:$0xff] }
 0x433   :  { %3957 = vmatpush1.bf16.msra.mxu0 %v3489_v6  ;;  %v3536_v6 = vld [vmem:[#allocation2 + $0x318] sm:$0xff] }
 0x434   :  { %4055 = vmatpush1.bf16.msra.mxu1 %v3491_v26  ;;  %3958 = vmatprep.subr.bf16.mxu0 %v3494_v12  ;;  %v3533_v26 = vld [vmem:[#allocation2 + $0x300] sm:$0xff]  ;;  %v3535_v12 = vld [vmem:[#allocation2 + $0x310] sm:$0xff] }
 0x435   :  { %4056 = vmatprep.subr.bf16.mxu1 %v3496_v14  ;;  %v3538_v14 = vld [vmem:[#allocation2 + $0x328] sm:$0xff] }
 0x437   :  { %3959 = vmatpush1.bf16.msra.mxu0 %v3493_v33  ;;  %v3540_v33 = vld [vmem:[#allocation2 + $0x338] sm:$0xff] }
 0x438   :  { %4057 = vmatpush1.bf16.msra.mxu1 %v3495_v1  ;;  %3960 = vmatprep.subr.bf16.mxu0 %v3498_v55  ;;  %v3537_v1 = vld [vmem:[#allocation2 + $0x320] sm:$0xff]  ;;  %v3539_v55 = vld [vmem:[#allocation2 + $0x330] sm:$0xff] }
 0x439   :  { %4058 = vmatprep.subr.bf16.mxu1 %v3500_v17  ;;  %v3542_v17 = vld [vmem:[#allocation2 + $0x348] sm:$0xff] }
 0x43b   :  { %3961 = vmatpush1.bf16.msra.mxu0 %v3497_v59  ;;  %v3544_v59 = vld [vmem:[#allocation2 + $0x358] sm:$0xff] }
 0x43c   :  { %4059 = vmatpush1.bf16.msra.mxu1 %v3499_v45  ;;  %3979 = vmatprep.subr.bf16.mxu0 %v3502_v7  ;;  %v3541_v45 = vld [vmem:[#allocation2 + $0x340] sm:$0xff]  ;;  %v3543_v7 = vld [vmem:[#allocation2 + $0x350] sm:$0xff] }
 0x43d   :  { %4077 = vmatprep.subr.bf16.mxu1 %v3504_v44  ;;  %v3546_v44 = vld [vmem:[#allocation2 + $0x368] sm:$0xff] }
 0x43e   :  { %3963 = vmatmul.mubr.bf16.vlgmr.msra.gmra.mrb[16].mxu0 %v3429_v20 }
 0x43f   :  { %4061 = vmatmul.mubr.bf16.vlgmr.msra.gmra.mrb[16].mxu1 %v3429_v20  ;;  %3980 = vmatpush1.bf16.msra.mxu0 %v3501_v25  ;;  %v3548_v20 = vld [vmem:[#allocation2 + $0x378] sm:$0xff]  ;;  %v3545_v25 = vld [vmem:[#allocation2 + $0x360] sm:$0xff] }
 0x440   :  { %4078 = vmatpush1.bf16.msra.mxu1 %v3503_v8  ;;  %3981 = vmatprep.subr.bf16.mxu0 %v3506_v0  ;;  %v3547_v8 = vld [vmem:[#allocation2 + $0x370] sm:$0xff]  ;;  %v3550_v0 = vld [vmem:[#allocation2 + $0x388] sm:$0xff] }
 0x441   :  { %4079 = vmatprep.subr.bf16.mxu1 %v3508_v27  ;;  %3970 = vmatprep.mubr.bf16.mxu0 %v3434_v61  ;;  %v3552_v27 = vld [vmem:[#allocation2 + $0x398] sm:$0xff] }
 0x442   :  { %4068 = vmatprep.mubr.bf16.mxu1 %v3434_v61  ;;  %v3549_v61 = vld [vmem:[#allocation2 + $0x380] sm:$0xff] }
 0x443   :  { %3982 = vmatpush1.bf16.msra.mxu0 %v3505_v52  ;;  %v3551_v52 = vld [vmem:[#allocation2 + $0x390] sm:$0xff] }
 0x444   :  { %4080 = vmatpush1.bf16.msra.mxu1 %v3507_v9  ;;  %3983 = vmatprep.subr.bf16.mxu0 %v3510_v39  ;;  %v3554_v9 = vld [vmem:[#allocation2 + $0x3a8] sm:$0xff]  ;;  %v3556_v39 = vld [vmem:[#allocation2 + $0x3b8] sm:$0xff] }
 0x445   :  { %4081 = vmatprep.subr.bf16.mxu1 %v3512_v48  ;;  %v3553_v48 = vld [vmem:[#allocation2 + $0x3a0] sm:$0xff] }
 0x446   :  { %3971 = vmatmul.mubr.bf16.gmra.mrb[20].mxu0 %v3433_v43 }
 0x447   :  { %4069 = vmatmul.mubr.bf16.gmra.mrb[20].mxu1 %v3433_v43  ;;  %3984 = vmatpush1.bf16.msra.mxu0 %v3509_v36  ;;  %v3555_v43 = vld [vmem:[#allocation2 + $0x3b0] sm:$0xff]  ;;  %v3558_v36 = vld [vmem:[#allocation2 + $0x3c8] sm:$0xff] }
 0x448   :  { %4082 = vmatpush1.bf16.msra.mxu1 %v3511_v21  ;;  %3985 = vmatprep.subr.bf16.mxu0 %v3514_v10  ;;  %v3560_v21 = vld [vmem:[#allocation2 + $0x3d8] sm:$0xff]  ;;  %v3557_v10 = vld [vmem:[#allocation2 + $0x3c0] sm:$0xff] }
 0x449   :  { %4083 = vmatprep.subr.bf16.mxu1 %v3516_v57  ;;  %4011 = vmatprep.mubr.bf16.mxu0 %v3432_v31  ;;  %v3559_v57 = vld [vmem:[#allocation2 + $0x3d0] sm:$0xff] }
 0x44a   :  { %4109 = vmatprep.mubr.bf16.mxu1 %v3432_v31  ;;  %v3562_v31 = vld [vmem:[#allocation2 + $0x3e8] sm:$0xff] }
 0x44b   :  { %3986 = vmatpush1.bf16.msra.mxu0 %v3513_v46  ;;  %v3564_v46 = vld [vmem:[#allocation2 + $0x3f8] sm:$0xff] }
 0x44c   :  { %4084 = vmatpush1.bf16.msra.mxu1 %v3515_v54  ;;  %3987 = vmatprep.subr.bf16.mxu0 %v3518_v19  ;;  %v3561_v54 = vld [vmem:[#allocation2 + $0x3e0] sm:$0xff]  ;;  %v3563_v19 = vld [vmem:[#allocation2 + $0x3f0] sm:$0xff] }
 0x44d   :  { %4085 = vmatprep.subr.bf16.mxu1 %v3520_v50  ;;  %v4168_v50 = vld [vmem:[#allocation2 + $0x808] sm:$0xff] }
 0x44f   :  { %3988 = vmatpush1.bf16.msra.mxu0 %v3517_v29  ;;  %v4170_v29 = vld [vmem:[#allocation2 + $0x818] sm:$0xff] }
 0x450   :  { %4086 = vmatpush1.bf16.msra.mxu1 %v3519_v60  ;;  %3989 = vmatprep.subr.bf16.mxu0 %v3522_v11  ;;  %v3431_v60 = vpack.c.bf16 %v6835_v23, %v6827_v3  ;;  %v4167_v11 = vld [vmem:[#allocation2 + $0x800] sm:$0xff] }
 0x451   :  { %4087 = vmatprep.subr.bf16.mxu1 %v3524_v40  ;;  %v4169_v40 = vld [vmem:[#allocation2 + $0x810] sm:$0xff] }
 0x453   :  { %3990 = vmatpush1.bf16.msra.mxu0 %v3521_v47  ;;  %v4172_v47 = vld [vmem:[#allocation2 + $0x828] sm:$0xff] }
 0x454   :  { %4088 = vmatpush1.bf16.msra.mxu1 %v3523_v5  ;;  %3991 = vmatprep.subr.bf16.mxu0 %v3526_v32  ;;  %v4174_v5 = vld [vmem:[#allocation2 + $0x838] sm:$0xff]  ;;  %v3436_v32 = vpack.c.bf16 %v6855_v42, %v6847_v41 }
 0x455   :  { %4089 = vmatprep.subr.bf16.mxu1 %v3528_v15  ;;  %v4127_v15 = vrot.slane %v6829_v16, 4 }
 0x457   :  { %3992 = vmatpush1.bf16.msra.mxu0 %v3525_v56  ;;  %v4131_v56 = vrot.slane %v6837_v22, 4 }
 0x458   :  { %4090 = vmatpush1.bf16.msra.mxu1 %v3527_v34  ;;  %3993 = vmatprep.subr.bf16.mxu0 %v3530_v4  ;;  %v4135_v34 = vrot.slane %v6845_v24, 4  ;;  %v4171_v4 = vld [vmem:[#allocation2 + $0x820] sm:$0xff] }
 0x459   :  { %4091 = vmatprep.subr.bf16.mxu1 %v3532_v35  ;;  %v4173_v35 = vld [vmem:[#allocation2 + $0x830] sm:$0xff] }
 0x45b   :  { %3994 = vmatpush1.bf16.msra.mxu0 %v3529_v51  ;;  %v4176_v51 = vld [vmem:[#allocation2 + $0x848] sm:$0xff] }
 0x45c   :  { %4092 = vmatpush1.bf16.msra.mxu1 %v3531_v58  ;;  %3995 = vmatprep.subr.bf16.mxu0 %v3534_v2  ;;  %v4178_v58 = vld [vmem:[#allocation2 + $0x858] sm:$0xff]  ;;  %v3435_v2 = vpack.c.bf16 %v6851_v13, %v6843_v62 }
 0x45d   :  { %4093 = vmatprep.subr.bf16.mxu1 %v3536_v6  ;;  %v4147_v6 = vsel %vm427_vm3, %v4131_v56, %v4135_v34 }
 0x45f   :  { %3996 = vmatpush1.bf16.msra.mxu0 %v3533_v26  ;;  %v4151_v26 = vsel %vm427_vm3, %v4127_v15, %v4131_v56  ;;  %v4211_v56 = vld [vmem:[#allocation2 + $0x960] sm:$0xff] }
 0x460   :  { %4094 = vmatpush1.bf16.msra.mxu1 %v3535_v12  ;;  %3997 = vmatprep.subr.bf16.mxu0 %v3538_v14  ;;  %v4175_v12 = vld [vmem:[#allocation2 + $0x840] sm:$0xff]  ;;  %v4177_v14 = vld [vmem:[#allocation2 + $0x850] sm:$0xff] }
 0x461   :  { %4095 = vmatprep.subr.bf16.mxu1 %v3540_v33  ;;  %v4180_v33 = vld [vmem:[#allocation2 + $0x868] sm:$0xff] }
 0x463   :  { %3998 = vmatpush1.bf16.msra.mxu0 %v3537_v1  ;;  %v4182_v1 = vld [vmem:[#allocation2 + $0x878] sm:$0xff] }
 0x464   :  { %4096 = vmatpush1.bf16.msra.mxu1 %v3539_v55  ;;  %3999 = vmatprep.subr.bf16.mxu0 %v3542_v17  ;;  %v4159_v55 = vpack.c.bf16 %v4147_v6, %v4151_v26  ;;  %v4179_v17 = vld [vmem:[#allocation2 + $0x860] sm:$0xff]  ;;  %v4220_v6 = vld [vmem:[#allocation2 + $0x9a8] sm:$0xff]  ;;  %v4222_v26 = vld [vmem:[#allocation2 + $0x9b8] sm:$0xff] }
 0x465   :  { %4097 = vmatprep.subr.bf16.mxu1 %v3544_v59  ;;  %v4181_v59 = vld [vmem:[#allocation2 + $0x870] sm:$0xff] }
 0x467   :  { %4000 = vmatpush1.bf16.msra.mxu0 %v3541_v45  ;;  %v4184_v45 = vld [vmem:[#allocation2 + $0x888] sm:$0xff] }
 0x468   :  { %4098 = vmatpush1.bf16.msra.mxu1 %v3543_v7  ;;  %4001 = vmatprep.subr.bf16.mxu0 %v3546_v44  ;;  %v4186_v7 = vld [vmem:[#allocation2 + $0x898] sm:$0xff]  ;;  %v4183_v44 = vld [vmem:[#allocation2 + $0x880] sm:$0xff] }
 0x469   :  { %4099 = vmatprep.subr.bf16.mxu1 %v3548_v20  ;;  %v4185_v20 = vld [vmem:[#allocation2 + $0x890] sm:$0xff] }
 0x46b   :  { %4002 = vmatpush1.bf16.msra.mxu0 %v3545_v25  ;;  %v4188_v25 = vld [vmem:[#allocation2 + $0x8a8] sm:$0xff] }
 0x46c   :  { %4100 = vmatpush1.bf16.msra.mxu1 %v3547_v8  ;;  %4003 = vmatprep.subr.bf16.mxu0 %v3550_v0  ;;  %v4190_v8 = vld [vmem:[#allocation2 + $0x8b8] sm:$0xff]  ;;  %v4187_v0 = vld [vmem:[#allocation2 + $0x8a0] sm:$0xff] }
 0x46d   :  { %4101 = vmatprep.subr.bf16.mxu1 %v3552_v27  ;;  %v4189_v27 = vld [vmem:[#allocation2 + $0x8b0] sm:$0xff] }
 0x46f   :  { %4004 = vmatpush1.bf16.msra.mxu0 %v3549_v61  ;;  %v4192_v61 = vld [vmem:[#allocation2 + $0x8c8] sm:$0xff] }
 0x470   :  { %4102 = vmatpush1.bf16.msra.mxu1 %v3551_v52  ;;  %4005 = vmatprep.subr.bf16.mxu0 %v3554_v9  ;;  %v4194_v52 = vld [vmem:[#allocation2 + $0x8d8] sm:$0xff]  ;;  %v4191_v9 = vld [vmem:[#allocation2 + $0x8c0] sm:$0xff] }
 0x471   :  { %4103 = vmatprep.subr.bf16.mxu1 %v3556_v39  ;;  %v4193_v39 = vld [vmem:[#allocation2 + $0x8d0] sm:$0xff] }
 0x473   :  { %4006 = vmatpush1.bf16.msra.mxu0 %v3553_v48  ;;  %v4196_v48 = vld [vmem:[#allocation2 + $0x8e8] sm:$0xff] }
 0x474   :  { %4104 = vmatpush1.bf16.msra.mxu1 %v3555_v43  ;;  %4007 = vmatprep.subr.bf16.mxu0 %v3558_v36  ;;  %v4198_v43 = vld [vmem:[#allocation2 + $0x8f8] sm:$0xff]  ;;  %v4195_v36 = vld [vmem:[#allocation2 + $0x8e0] sm:$0xff] }
 0x475   :  { %4105 = vmatprep.subr.bf16.mxu1 %v3560_v21  ;;  %v4197_v21 = vld [vmem:[#allocation2 + $0x8f0] sm:$0xff] }
 0x477   :  { %4008 = vmatpush1.bf16.msra.mxu0 %v3557_v10  ;;  %v4200_v10 = vld [vmem:[#allocation2 + $0x908] sm:$0xff] }
 0x478   :  { %4106 = vmatpush1.bf16.msra.mxu1 %v3559_v57  ;;  %4009 = vmatprep.subr.bf16.mxu0 %v3562_v31  ;;  %v4202_v57 = vld [vmem:[#allocation2 + $0x918] sm:$0xff]  ;;  %v4199_v31 = vld [vmem:[#allocation2 + $0x900] sm:$0xff] }
 0x479   :  { %4107 = vmatprep.subr.bf16.mxu1 %v3564_v46  ;;  %v4201_v46 = vld [vmem:[#allocation2 + $0x910] sm:$0xff] }
 0x47b   :  { %4010 = vmatpush1.bf16.msra.mxu0 %v3561_v54  ;;  %v4204_v54 = vld [vmem:[#allocation2 + $0x928] sm:$0xff] }
 0x47c   :  { %4108 = vmatpush1.bf16.msra.mxu1 %v3563_v19  ;;  %4295 = vmatprep.subr.bf16.mxu0 %v4168_v50  ;;  %v4206_v19 = vld [vmem:[#allocation2 + $0x938] sm:$0xff]  ;;  %v4203_v50 = vld [vmem:[#allocation2 + $0x920] sm:$0xff] }
 0x47d   :  { %4393 = vmatprep.subr.bf16.mxu1 %v4170_v29  ;;  %v4205_v29 = vld [vmem:[#allocation2 + $0x930] sm:$0xff] }
 0x47e   :  { %4012 = vmatmul.mubr.bf16.vlgmr.msra.gmra.mrb[16].mxu0 %v3431_v60 }
 0x47f   :  { %4110 = vmatmul.mubr.bf16.vlgmr.msra.gmra.mrb[16].mxu1 %v3431_v60  ;;  %4296 = vmatpush1.bf16.msra.mxu0 %v4167_v11  ;;  %v4208_v60 = vld [vmem:[#allocation2 + $0x948] sm:$0xff]  ;;  %v4210_v11 = vld [vmem:[#allocation2 + $0x958] sm:$0xff] }
 0x480   :  { %4394 = vmatpush1.bf16.msra.mxu1 %v4169_v40  ;;  %4297 = vmatprep.subr.bf16.mxu0 %v4172_v47  ;;  %v4207_v40 = vld [vmem:[#allocation2 + $0x940] sm:$0xff]  ;;  %v4209_v47 = vld [vmem:[#allocation2 + $0x950] sm:$0xff] }
 0x481   :  { %4395 = vmatprep.subr.bf16.mxu1 %v4174_v5  ;;  %4019 = vmatprep.mubr.bf16.mxu0 %v3436_v32  ;;  %v4212_v5 = vld [vmem:[#allocation2 + $0x968] sm:$0xff] }
 0x482   :  { %4117 = vmatprep.mubr.bf16.mxu1 %v3436_v32  ;;  %v4214_v32 = vld [vmem:[#allocation2 + $0x978] sm:$0xff] }
 0x483   :  { %4298 = vmatpush1.bf16.msra.mxu0 %v4171_v4  ;;  %v4213_v4 = vld [vmem:[#allocation2 + $0x970] sm:$0xff] }
 0x484   :  { %4396 = vmatpush1.bf16.msra.mxu1 %v4173_v35  ;;  %4299 = vmatprep.subr.bf16.mxu0 %v4176_v51  ;;  %v4216_v35 = vld [vmem:[#allocation2 + $0x988] sm:$0xff]  ;;  %v4218_v51 = vld [vmem:[#allocation2 + $0x998] sm:$0xff] }
 0x485   :  { %4397 = vmatprep.subr.bf16.mxu1 %v4178_v58  ;;  %v4215_v58 = vld [vmem:[#allocation2 + $0x980] sm:$0xff] }
 0x486   :  { %4020 = vmatmul.mubr.bf16.gmra.mrb[20].mxu0 %v3435_v2 }
 0x487   :  { %4118 = vmatmul.mubr.bf16.gmra.mrb[20].mxu1 %v3435_v2  ;;  %4300 = vmatpush1.bf16.msra.mxu0 %v4175_v12  ;;  %v4217_v2 = vld [vmem:[#allocation2 + $0x990] sm:$0xff]  ;;  %v4219_v12 = vld [vmem:[#allocation2 + $0x9a0] sm:$0xff] }
 0x488   :  { %4398 = vmatpush1.bf16.msra.mxu1 %v4177_v14  ;;  %4301 = vmatprep.subr.bf16.mxu0 %v4180_v33  ;;  %v4221_v14 = vld [vmem:[#allocation2 + $0x9b0] sm:$0xff]  ;;  %v4224_v33 = vld [vmem:[#allocation2 + $0x9c8] sm:$0xff] }
 0x489   :  { %4399 = vmatprep.subr.bf16.mxu1 %v4182_v1  ;;  %4327 = vmatprep.mubr.bf16.mxu0 %v4159_v55  ;;  %v4226_v1 = vld [vmem:[#allocation2 + $0x9d8] sm:$0xff] }
 0x48a   :  { %4425 = vmatprep.mubr.bf16.mxu1 %v4159_v55  ;;  %v4126_v55 = vrot.slane %v6825_v53, 4 }
 0x48b   :  { %4302 = vmatpush1.bf16.msra.mxu0 %v4179_v17  ;;  %v4130_v17 = vrot.slane %v6833_v30, 4 }
 0x48c   :  { %4400 = vmatpush1.bf16.msra.mxu1 %v4181_v59  ;;  %4303 = vmatprep.subr.bf16.mxu0 %v4184_v45  ;;  %v4134_v59 = vrot.slane %v6841_v49, 4  ;;  %v4223_v45 = vld [vmem:[#allocation2 + $0x9c0] sm:$0xff] }
 0x48d   :  { %4401 = vmatprep.subr.bf16.mxu1 %v4186_v7  ;;  %v4225_v7 = vld [vmem:[#allocation2 + $0x9d0] sm:$0xff] }
 0x48f   :  { %4304 = vmatpush1.bf16.msra.mxu0 %v4183_v44  ;;  %v4228_v44 = vld [vmem:[#allocation2 + $0x9e8] sm:$0xff] }
 0x490   :  { %4402 = vmatpush1.bf16.msra.mxu1 %v4185_v20  ;;  %4305 = vmatprep.subr.bf16.mxu0 %v4188_v25  ;;  %v4230_v20 = vld [vmem:[#allocation2 + $0x9f8] sm:$0xff]  ;;  %v4139_v25 = vrot.slane %v6853_v18, 4 }
 0x491   :  { %4403 = vmatprep.subr.bf16.mxu1 %v4190_v8  ;;  %v4146_v8 = vsel %vm427_vm3, %v4130_v17, %v4134_v59 }
 0x493   :  { %4306 = vmatpush1.bf16.msra.mxu0 %v4187_v0  ;;  %v4150_v0 = vsel %vm427_vm3, %v4126_v55, %v4130_v17  ;;  %v4251_v17 = vld [vmem:[#allocation2 + $0xaa0] sm:$0xff] }
 0x494   :  { %4404 = vmatpush1.bf16.msra.mxu1 %v4189_v27  ;;  %4307 = vmatprep.subr.bf16.mxu0 %v4192_v61  ;;  %v4227_v27 = vld [vmem:[#allocation2 + $0x9e0] sm:$0xff]  ;;  %v4229_v61 = vld [vmem:[#allocation2 + $0x9f0] sm:$0xff] }
 0x495   :  { %4405 = vmatprep.subr.bf16.mxu1 %v4194_v52  ;;  %v4232_v52 = vld [vmem:[#allocation2 + $0xa08] sm:$0xff] }
 0x497   :  { %4308 = vmatpush1.bf16.msra.mxu0 %v4191_v9  ;;  %v4234_v9 = vld [vmem:[#allocation2 + $0xa18] sm:$0xff] }
 0x498   :  { %4406 = vmatpush1.bf16.msra.mxu1 %v4193_v39  ;;  %4309 = vmatprep.subr.bf16.mxu0 %v4196_v48  ;;  %v4158_v39 = vpack.c.bf16 %v4146_v8, %v4150_v0  ;;  %v4143_v48 = vsel %vm427_vm3, %v4135_v34, %v4139_v25  ;;  %v4129_v34 = vrot.slane %v6831_v63, 4  ;;  %v4262_v8 = vld [vmem:[#allocation2 + $0xaf8] sm:$0xff]  ;;  %v4259_v0 = vld [vmem:[#allocation2 + $0xae0] sm:$0xff] }
 0x499   :  { %4407 = vmatprep.subr.bf16.mxu1 %v4198_v43  ;;  %v4155_v43 = vsel %vm427_vm3, %v4139_v25, %v4127_v15  ;;  %v4260_v25 = vld [vmem:[#allocation2 + $0xae8] sm:$0xff] }
 0x49b   :  { %4310 = vmatpush1.bf16.msra.mxu0 %v4195_v36  ;;  %v4138_v36 = vrot.slane %v6849_v28, 4 }
 0x49c   :  { %4408 = vmatpush1.bf16.msra.mxu1 %v4197_v21  ;;  %4311 = vmatprep.subr.bf16.mxu0 %v4200_v10  ;;  %v4231_v21 = vld [vmem:[#allocation2 + $0xa00] sm:$0xff]  ;;  %v4233_v10 = vld [vmem:[#allocation2 + $0xa10] sm:$0xff] }
 0x49d   :  { %4409 = vmatprep.subr.bf16.mxu1 %v4202_v57  ;;  %v4236_v57 = vld [vmem:[#allocation2 + $0xa28] sm:$0xff]  ;;  %v4142_v15 = vsel %vm427_vm3, %v4134_v59, %v4138_v36  ;;  %v4253_v59 = vld [vmem:[#allocation2 + $0xab0] sm:$0xff] }
 0x49f   :  { %4312 = vmatpush1.bf16.msra.mxu0 %v4199_v31  ;;  %v4238_v31 = vld [vmem:[#allocation2 + $0xa38] sm:$0xff] }
 0x4a0   :  { %4410 = vmatpush1.bf16.msra.mxu1 %v4201_v46  ;;  %4313 = vmatprep.subr.bf16.mxu0 %v4204_v54  ;;  %v4163_v46 = vpack.c.bf16 %v4155_v43, %v4143_v48  ;;  %v4133_v54 = vrot.slane %v6839_v37, 4  ;;  %v4268_v48 = vld [vmem:[#allocation2 + $0xb28] sm:$0xff]  ;;  %v4270_v43 = vld [vmem:[#allocation2 + $0xb38] sm:$0xff] }
 0x4a1   :  { %4411 = vmatprep.subr.bf16.mxu1 %v4206_v19  ;;  %v4137_v19 = vrot.slane %v6847_v41, 4 }
 0x4a3   :  { %4314 = vmatpush1.bf16.msra.mxu0 %v4203_v50  ;;  %v4154_v50 = vsel %vm427_vm3, %v4138_v36, %v4126_v55  ;;  %v4254_v55 = vld [vmem:[#allocation2 + $0xab8] sm:$0xff]  ;;  %v4267_v36 = vld [vmem:[#allocation2 + $0xb20] sm:$0xff] }
 0x4a4   :  { %4412 = vmatpush1.bf16.msra.mxu1 %v4205_v29  ;;  %4315 = vmatprep.subr.bf16.mxu0 %v4208_v60  ;;  %v4235_v29 = vld [vmem:[#allocation2 + $0xa20] sm:$0xff]  ;;  %v4237_v60 = vld [vmem:[#allocation2 + $0xa30] sm:$0xff] }
 0x4a5   :  { %4413 = vmatprep.subr.bf16.mxu1 %v4210_v11  ;;  %v4240_v11 = vld [vmem:[#allocation2 + $0xa48] sm:$0xff] }
 0x4a7   :  { %4316 = vmatpush1.bf16.msra.mxu0 %v4207_v40  ;;  %v4242_v40 = vld [vmem:[#allocation2 + $0xa58] sm:$0xff] }
 0x4a8   :  { %4414 = vmatpush1.bf16.msra.mxu1 %v4209_v47  ;;  %4317 = vmatprep.subr.bf16.mxu0 %v4212_v5  ;;  %v4162_v47 = vpack.c.bf16 %v4154_v50, %v4142_v15  ;;  %v4149_v5 = vsel %vm427_vm3, %v4133_v54, %v4137_v19  ;;  %v4278_v15 = vld [vmem:[#allocation2 + $0xb78] sm:$0xff]  ;;  %v4275_v50 = vld [vmem:[#allocation2 + $0xb60] sm:$0xff] }
 0x4a9   :  { %4415 = vmatprep.subr.bf16.mxu1 %v4214_v32  ;;  %v4153_v32 = vsel %vm427_vm3, %v4129_v34, %v4133_v54  ;;  %v4276_v54 = vld [vmem:[#allocation2 + $0xb68] sm:$0xff] }
 0x4ab   :  { %4318 = vmatpush1.bf16.msra.mxu0 %v4211_v56  ;;  %v4239_v56 = vld [vmem:[#allocation2 + $0xa40] sm:$0xff] }
 0x4ac   :  { %4416 = vmatpush1.bf16.msra.mxu1 %v4213_v4  ;;  %4319 = vmatprep.subr.bf16.mxu0 %v4216_v35  ;;  %v4241_v4 = vld [vmem:[#allocation2 + $0xa50] sm:$0xff]  ;;  %v4244_v35 = vld [vmem:[#allocation2 + $0xa68] sm:$0xff] }
 0x4ad   :  { %4417 = vmatprep.subr.bf16.mxu1 %v4218_v51  ;;  %v4246_v51 = vld [vmem:[#allocation2 + $0xa78] sm:$0xff] }
 0x4af   :  { %4320 = vmatpush1.bf16.msra.mxu0 %v4215_v58  ;;  %v4161_v58 = vpack.c.bf16 %v4149_v5, %v4153_v32  ;;  %v4284_v5 = vld [vmem:[#allocation2 + $0xba8] sm:$0xff]  ;;  %v4286_v32 = vld [vmem:[#allocation2 + $0xbb8] sm:$0xff] }
 0x4b0   :  { %4418 = vmatpush1.bf16.msra.mxu1 %v4217_v2  ;;  %4321 = vmatprep.subr.bf16.mxu0 %v4220_v6  ;;  %v4243_v2 = vld [vmem:[#allocation2 + $0xa60] sm:$0xff]  ;;  %v4245_v6 = vld [vmem:[#allocation2 + $0xa70] sm:$0xff] }
 0x4b1   :  { %4419 = vmatprep.subr.bf16.mxu1 %v4222_v26  ;;  %v4248_v26 = vld [vmem:[#allocation2 + $0xa88] sm:$0xff] }
 0x4b3   :  { %4322 = vmatpush1.bf16.msra.mxu0 %v4219_v12  ;;  %v4250_v12 = vld [vmem:[#allocation2 + $0xa98] sm:$0xff] }
 0x4b4   :  { %4420 = vmatpush1.bf16.msra.mxu1 %v4221_v14  ;;  %4323 = vmatprep.subr.bf16.mxu0 %v4224_v33  ;;  %v4247_v14 = vld [vmem:[#allocation2 + $0xa80] sm:$0xff]  ;;  %v4249_v33 = vld [vmem:[#allocation2 + $0xa90] sm:$0xff] }
 0x4b5   :  { %4421 = vmatprep.subr.bf16.mxu1 %v4226_v1  ;;  %v4252_v1 = vld [vmem:[#allocation2 + $0xaa8] sm:$0xff] }
 0x4b7   :  { %4324 = vmatpush1.bf16.msra.mxu0 %v4223_v45  ;;  %v4256_v45 = vld [vmem:[#allocation2 + $0xac8] sm:$0xff] }
 0x4b8   :  { %4422 = vmatpush1.bf16.msra.mxu1 %v4225_v7  ;;  %4325 = vmatprep.subr.bf16.mxu0 %v4228_v44  ;;  %v4258_v7 = vld [vmem:[#allocation2 + $0xad8] sm:$0xff]  ;;  %v4255_v44 = vld [vmem:[#allocation2 + $0xac0] sm:$0xff] }
 0x4b9   :  { %4423 = vmatprep.subr.bf16.mxu1 %v4230_v20  ;;  %v4257_v20 = vld [vmem:[#allocation2 + $0xad0] sm:$0xff] }
 0x4bb   :  { %4326 = vmatpush1.bf16.msra.mxu0 %v4227_v27  ;;  %v4261_v27 = vld [vmem:[#allocation2 + $0xaf0] sm:$0xff] }
 0x4bc   :  { %4424 = vmatpush1.bf16.msra.mxu1 %v4229_v61  ;;  %4344 = vmatprep.subr.bf16.mxu0 %v4232_v52  ;;  %v4264_v61 = vld [vmem:[#allocation2 + $0xb08] sm:$0xff]  ;;  %v4266_v52 = vld [vmem:[#allocation2 + $0xb18] sm:$0xff] }
 0x4bd   :  { %4442 = vmatprep.subr.bf16.mxu1 %v4234_v9  ;;  %v4263_v9 = vld [vmem:[#allocation2 + $0xb00] sm:$0xff] }
 0x4be   :  { %4328 = vmatmul.mubr.bf16.vlgmr.msra.gmra.mrb[16].mxu0 %v4158_v39 }
 0x4bf   :  { %4426 = vmatmul.mubr.bf16.vlgmr.msra.gmra.mrb[16].mxu1 %v4158_v39  ;;  %4345 = vmatpush1.bf16.msra.mxu0 %v4231_v21  ;;  %v4265_v39 = vld [vmem:[#allocation2 + $0xb10] sm:$0xff] }
 0x4c0   :  { %4443 = vmatpush1.bf16.msra.mxu1 %v4233_v10  ;;  %4346 = vmatprep.subr.bf16.mxu0 %v4236_v57  ;;  %v4269_v21 = vld [vmem:[#allocation2 + $0xb30] sm:$0xff]  ;;  %v4272_v10 = vld [vmem:[#allocation2 + $0xb48] sm:$0xff]  ;;  %v4274_v57 = vld [vmem:[#allocation2 + $0xb58] sm:$0xff] }
 0x4c1   :  { %4444 = vmatprep.subr.bf16.mxu1 %v4238_v31  ;;  %4335 = vmatprep.mubr.bf16.mxu0 %v4163_v46  ;;  %v4271_v31 = vld [vmem:[#allocation2 + $0xb40] sm:$0xff] }
 0x4c2   :  { %4433 = vmatprep.mubr.bf16.mxu1 %v4163_v46  ;;  %v4273_v46 = vld [vmem:[#allocation2 + $0xb50] sm:$0xff] }
 0x4c3   :  { %4347 = vmatpush1.bf16.msra.mxu0 %v4235_v29  ;;  %v4277_v29 = vld [vmem:[#allocation2 + $0xb70] sm:$0xff] }
 0x4c4   :  { %4445 = vmatpush1.bf16.msra.mxu1 %v4237_v60  ;;  %4348 = vmatprep.subr.bf16.mxu0 %v4240_v11  ;;  %v4280_v60 = vld [vmem:[#allocation2 + $0xb88] sm:$0xff]  ;;  %v4282_v11 = vld [vmem:[#allocation2 + $0xb98] sm:$0xff] }
 0x4c5   :  { %4446 = vmatprep.subr.bf16.mxu1 %v4242_v40  ;;  %v4279_v40 = vld [vmem:[#allocation2 + $0xb80] sm:$0xff] }
 0x4c6   :  { %4336 = vmatmul.mubr.bf16.gmra.mrb[20].mxu0 %v4162_v47 }
 0x4c7   :  { %4434 = vmatmul.mubr.bf16.gmra.mrb[20].mxu1 %v4162_v47  ;;  %4349 = vmatpush1.bf16.msra.mxu0 %v4239_v56  ;;  %v4281_v47 = vld [vmem:[#allocation2 + $0xb90] sm:$0xff]  ;;  %v4283_v56 = vld [vmem:[#allocation2 + $0xba0] sm:$0xff] }
 0x4c8   :  { %4447 = vmatpush1.bf16.msra.mxu1 %v4241_v4  ;;  %4350 = vmatprep.subr.bf16.mxu0 %v4244_v35  ;;  %v4285_v4 = vld [vmem:[#allocation2 + $0xbb0] sm:$0xff]  ;;  %v4288_v35 = vld [vmem:[#allocation2 + $0xbc8] sm:$0xff] }
 0x4c9   :  { %4448 = vmatprep.subr.bf16.mxu1 %v4246_v51  ;;  %4376 = vmatprep.mubr.bf16.mxu0 %v4161_v58  ;;  %v4290_v51 = vld [vmem:[#allocation2 + $0xbd8] sm:$0xff] }
 0x4ca   :  { %4474 = vmatprep.mubr.bf16.mxu1 %v4161_v58  ;;  %v4128_v58 = vrot.slane %v6827_v3, 4 }
 0x4cb   :  { %4351 = vmatpush1.bf16.msra.mxu0 %v4243_v2  ;;  %v4132_v2 = vrot.slane %v6835_v23, 4 }
 0x4cc   :  { %4449 = vmatpush1.bf16.msra.mxu1 %v4245_v6  ;;  %4352 = vmatprep.subr.bf16.mxu0 %v4248_v26  ;;  %v4136_v6 = vrot.slane %v6843_v62, 4  ;;  %v4287_v26 = vld [vmem:[#allocation2 + $0xbc0] sm:$0xff] }
 0x4cd   :  { %4450 = vmatprep.subr.bf16.mxu1 %v4250_v12  ;;  %v4289_v12 = vld [vmem:[#allocation2 + $0xbd0] sm:$0xff] }
 0x4cf   :  { %4353 = vmatpush1.bf16.msra.mxu0 %v4247_v14  ;;  %v4292_v14 = vld [vmem:[#allocation2 + $0xbe8] sm:$0xff] }
 0x4d0   :  { %4451 = vmatpush1.bf16.msra.mxu1 %v4249_v33  ;;  %4354 = vmatprep.subr.bf16.mxu0 %v4252_v1  ;;  %v4294_v33 = vld [vmem:[#allocation2 + $0xbf8] sm:$0xff]  ;;  %v4141_v1 = vrot.slane %v6855_v42, 4 }
 0x4d1   :  { %4452 = vmatprep.subr.bf16.mxu1 %v4254_v55  ;;  %v4148_v55 = vsel %vm427_vm3, %v4132_v2, %v4136_v6 }
 0x4d3   :  { %4355 = vmatpush1.bf16.msra.mxu0 %v4251_v17  ;;  %v4152_v17 = vsel %vm427_vm3, %v4128_v58, %v4132_v2  ;;  %v4563_v2 = vld [vmem:[#allocation2 + $0xcb0] sm:$0xff] }
 0x4d4   :  { %4453 = vmatpush1.bf16.msra.mxu1 %v4253_v59  ;;  %4356 = vmatprep.subr.bf16.mxu0 %v4256_v45  ;;  %v4291_v59 = vld [vmem:[#allocation2 + $0xbe0] sm:$0xff]  ;;  %v4293_v45 = vld [vmem:[#allocation2 + $0xbf0] sm:$0xff] }
 0x4d5   :  { %4454 = vmatprep.subr.bf16.mxu1 %v4258_v7  ;;  %v4542_v7 = vld [vmem:[#allocation2 + $0xc08] sm:$0xff] }
 0x4d7   :  { %4357 = vmatpush1.bf16.msra.mxu0 %v4255_v44  ;;  %v4544_v44 = vld [vmem:[#allocation2 + $0xc18] sm:$0xff] }
 0x4d8   :  { %4455 = vmatpush1.bf16.msra.mxu1 %v4257_v20  ;;  %4358 = vmatprep.subr.bf16.mxu0 %v4260_v25  ;;  %v4160_v20 = vpack.c.bf16 %v4148_v55, %v4152_v17  ;;  %v4145_v25 = vsel %vm427_vm3, %v4137_v19, %v4141_v1  ;;  %v4500_v19 = vrot.slane %v6829_v16, 6  ;;  %v4569_v55 = vld [vmem:[#allocation2 + $0xce0] sm:$0xff]  ;;  %v4571_v17 = vld [vmem:[#allocation2 + $0xcf0] sm:$0xff]  ;;  %v4506_v16 = vrot.slane %v6839_v37, 6 }
 0x4d9   :  { %4456 = vmatprep.subr.bf16.mxu1 %v4262_v8  ;;  %v4157_v8 = vsel %vm427_vm3, %v4141_v1, %v4129_v34  ;;  %v4572_v1 = vld [vmem:[#allocation2 + $0xcf8] sm:$0xff] }
 0x4db   :  { %4359 = vmatpush1.bf16.msra.mxu0 %v4259_v0  ;;  %v4140_v0 = vrot.slane %v6851_v13, 4 }
 0x4dc   :  { %4457 = vmatpush1.bf16.msra.mxu1 %v4261_v27  ;;  %4360 = vmatprep.subr.bf16.mxu0 %v4264_v61  ;;  %v4541_v27 = vld [vmem:[#allocation2 + $0xc00] sm:$0xff]  ;;  %v4543_v61 = vld [vmem:[#allocation2 + $0xc10] sm:$0xff] }
 0x4dd   :  { %4458 = vmatprep.subr.bf16.mxu1 %v4266_v52  ;;  %v4546_v52 = vld [vmem:[#allocation2 + $0xc28] sm:$0xff]  ;;  %v4144_v34 = vsel %vm427_vm3, %v4136_v6, %v4140_v0 }
 0x4de   :  { %v4566_v6 = vld [vmem:[#allocation2 + $0xcc8] sm:$0xff] }
 0x4df   :  { %4361 = vmatpush1.bf16.msra.mxu0 %v4263_v9  ;;  %v4548_v9 = vld [vmem:[#allocation2 + $0xc38] sm:$0xff] }
 0x4e0   :  { %4459 = vmatpush1.bf16.msra.mxu1 %v4265_v39  ;;  %4362 = vmatprep.subr.bf16.mxu0 %v4268_v48  ;;  %v4165_v39 = vpack.c.bf16 %v4157_v8, %v4145_v25  ;;  %v4504_v48 = vrot.slane %v6837_v22, 6  ;;  %v4580_v25 = vld [vmem:[#allocation2 + $0xd38] sm:$0xff]  ;;  %v4577_v8 = vld [vmem:[#allocation2 + $0xd20] sm:$0xff] }
 0x4e1   :  { %4460 = vmatprep.subr.bf16.mxu1 %v4270_v43  ;;  %v4508_v43 = vrot.slane %v6845_v24, 6  ;;  %v4502_v24 = vrot.slane %v6831_v63, 6 }
 0x4e3   :  { %4363 = vmatpush1.bf16.msra.mxu0 %v4267_v36  ;;  %v4156_v36 = vsel %vm427_vm3, %v4140_v0, %v4128_v58  ;;  %v4561_v58 = vld [vmem:[#allocation2 + $0xca0] sm:$0xff]  ;;  %v4579_v0 = vld [vmem:[#allocation2 + $0xd30] sm:$0xff] }
 0x4e4   :  { %4461 = vmatpush1.bf16.msra.mxu1 %v4269_v21  ;;  %4364 = vmatprep.subr.bf16.mxu0 %v4272_v10  ;;  %v4545_v21 = vld [vmem:[#allocation2 + $0xc20] sm:$0xff]  ;;  %v4547_v10 = vld [vmem:[#allocation2 + $0xc30] sm:$0xff]  ;;  %v4164_v22 = vpack.c.bf16 %v4156_v36, %v4144_v34 }
 0x4e5   :  { %4462 = vmatprep.subr.bf16.mxu1 %v4274_v57  ;;  %v4550_v57 = vld [vmem:[#allocation2 + $0xc48] sm:$0xff]  ;;  %v4585_v34 = vld [vmem:[#allocation2 + $0xd60] sm:$0xff]  ;;  %v4587_v36 = vld [vmem:[#allocation2 + $0xd70] sm:$0xff] }
 0x4e7   :  { %4365 = vmatpush1.bf16.msra.mxu0 %v4271_v31  ;;  %v4552_v31 = vld [vmem:[#allocation2 + $0xc58] sm:$0xff] }
 0x4e8   :  { %4463 = vmatpush1.bf16.msra.mxu1 %v4273_v46  ;;  %4366 = vmatprep.subr.bf16.mxu0 %v4276_v54  ;;  %v4521_v46 = vsel %vm4515_vm4, %v4504_v48, %v4508_v43  ;;  %v4525_v54 = vsel %vm4515_vm4, %v4500_v19, %v4504_v48  ;;  %v4588_v48 = vld [vmem:[#allocation2 + $0xd78] sm:$0xff] }
 0x4e9   :  { %4464 = vmatprep.subr.bf16.mxu1 %v4278_v15  ;;  %v4549_v15 = vld [vmem:[#allocation2 + $0xc40] sm:$0xff] }
 0x4eb   :  { %4367 = vmatpush1.bf16.msra.mxu0 %v4275_v50  ;;  %v4551_v50 = vld [vmem:[#allocation2 + $0xc50] sm:$0xff] }
 0x4ec   :  { %4465 = vmatpush1.bf16.msra.mxu1 %v4277_v29  ;;  %4368 = vmatprep.subr.bf16.mxu0 %v4280_v60  ;;  %v4554_v29 = vld [vmem:[#allocation2 + $0xc68] sm:$0xff]  ;;  %v4556_v60 = vld [vmem:[#allocation2 + $0xc78] sm:$0xff] }
 0x4ed   :  { %4466 = vmatprep.subr.bf16.mxu1 %v4282_v11  ;;  %v4533_v11 = vpack.c.bf16 %v4521_v46, %v4525_v54  ;;  %v4596_v46 = vld [vmem:[#allocation2 + $0xdb8] sm:$0xff]  ;;  %v4593_v54 = vld [vmem:[#allocation2 + $0xda0] sm:$0xff] }
 0x4ef   :  { %4369 = vmatpush1.bf16.msra.mxu0 %v4279_v40  ;;  %v4553_v40 = vld [vmem:[#allocation2 + $0xc60] sm:$0xff] }
 0x4f0   :  { %4467 = vmatpush1.bf16.msra.mxu1 %v4281_v47  ;;  %4370 = vmatprep.subr.bf16.mxu0 %v4284_v5  ;;  %v4555_v47 = vld [vmem:[#allocation2 + $0xc70] sm:$0xff]  ;;  %v4558_v5 = vld [vmem:[#allocation2 + $0xc88] sm:$0xff] }
 0x4f1   :  { %4468 = vmatprep.subr.bf16.mxu1 %v4286_v32  ;;  %v4560_v32 = vld [vmem:[#allocation2 + $0xc98] sm:$0xff] }
 0x4f3   :  { %4371 = vmatpush1.bf16.msra.mxu0 %v4283_v56  ;;  %v4557_v56 = vld [vmem:[#allocation2 + $0xc80] sm:$0xff] }
 0x4f4   :  { %4469 = vmatpush1.bf16.msra.mxu1 %v4285_v4  ;;  %4372 = vmatprep.subr.bf16.mxu0 %v4288_v35  ;;  %v4559_v4 = vld [vmem:[#allocation2 + $0xc90] sm:$0xff]  ;;  %v4562_v35 = vld [vmem:[#allocation2 + $0xca8] sm:$0xff] }
 0x4f5   :  { %4470 = vmatprep.subr.bf16.mxu1 %v4290_v51  ;;  %v4564_v51 = vld [vmem:[#allocation2 + $0xcb8] sm:$0xff] }
 0x4f7   :  { %4373 = vmatpush1.bf16.msra.mxu0 %v4287_v26  ;;  %v4568_v26 = vld [vmem:[#allocation2 + $0xcd8] sm:$0xff] }
 0x4f8   :  { %4471 = vmatpush1.bf16.msra.mxu1 %v4289_v12  ;;  %4374 = vmatprep.subr.bf16.mxu0 %v4292_v14  ;;  %v4565_v12 = vld [vmem:[#allocation2 + $0xcc0] sm:$0xff]  ;;  %v4567_v14 = vld [vmem:[#allocation2 + $0xcd0] sm:$0xff] }
 0x4f9   :  { %4472 = vmatprep.subr.bf16.mxu1 %v4294_v33  ;;  %v4570_v33 = vld [vmem:[#allocation2 + $0xce8] sm:$0xff] }
 0x4fb   :  { %4375 = vmatpush1.bf16.msra.mxu0 %v4291_v59  ;;  %v4574_v59 = vld [vmem:[#allocation2 + $0xd08] sm:$0xff] }
 0x4fc   :  { %4473 = vmatpush1.bf16.msra.mxu1 %v4293_v45  ;;  %4669 = vmatprep.subr.bf16.mxu0 %v4542_v7  ;;  %v4576_v45 = vld [vmem:[#allocation2 + $0xd18] sm:$0xff]  ;;  %v4573_v7 = vld [vmem:[#allocation2 + $0xd00] sm:$0xff] }
 0x4fd   :  { %4767 = vmatprep.subr.bf16.mxu1 %v4544_v44  ;;  %v4575_v44 = vld [vmem:[#allocation2 + $0xd10] sm:$0xff] }
 0x4fe   :  { %4377 = vmatmul.mubr.bf16.vlgmr.msra.gmra.mrb[16].mxu0 %v4160_v20 }
 0x4ff   :  { %4475 = vmatmul.mubr.bf16.vlgmr.msra.gmra.mrb[16].mxu1 %v4160_v20  ;;  %4670 = vmatpush1.bf16.msra.mxu0 %v4541_v27  ;;  %v4578_v20 = vld [vmem:[#allocation2 + $0xd28] sm:$0xff] }
 0x500   :  { %4768 = vmatpush1.bf16.msra.mxu1 %v4543_v61  ;;  %4671 = vmatprep.subr.bf16.mxu0 %v4546_v52  ;;  %v4582_v27 = vld [vmem:[#allocation2 + $0xd48] sm:$0xff]  ;;  %v4584_v61 = vld [vmem:[#allocation2 + $0xd58] sm:$0xff]  ;;  %v4581_v52 = vld [vmem:[#allocation2 + $0xd40] sm:$0xff] }
 0x501   :  { %4769 = vmatprep.subr.bf16.mxu1 %v4548_v9  ;;  %4384 = vmatprep.mubr.bf16.mxu0 %v4165_v39  ;;  %v4583_v9 = vld [vmem:[#allocation2 + $0xd50] sm:$0xff] }
 0x502   :  { %4482 = vmatprep.mubr.bf16.mxu1 %v4165_v39  ;;  %v4586_v39 = vld [vmem:[#allocation2 + $0xd68] sm:$0xff] }
 0x503   :  { %4672 = vmatpush1.bf16.msra.mxu0 %v4545_v21  ;;  %v4590_v21 = vld [vmem:[#allocation2 + $0xd88] sm:$0xff] }
 0x504   :  { %4770 = vmatpush1.bf16.msra.mxu1 %v4547_v10  ;;  %4673 = vmatprep.subr.bf16.mxu0 %v4550_v57  ;;  %v4592_v10 = vld [vmem:[#allocation2 + $0xd98] sm:$0xff]  ;;  %v4589_v57 = vld [vmem:[#allocation2 + $0xd80] sm:$0xff] }
 0x505   :  { %4771 = vmatprep.subr.bf16.mxu1 %v4552_v31  ;;  %v4591_v31 = vld [vmem:[#allocation2 + $0xd90] sm:$0xff] }
 0x506   :  { %4385 = vmatmul.mubr.bf16.gmra.mrb[20].mxu0 %v4164_v22 }
 0x507   :  { %4483 = vmatmul.mubr.bf16.gmra.mrb[20].mxu1 %v4164_v22  ;;  %4674 = vmatpush1.bf16.msra.mxu0 %v4549_v15  ;;  %v4594_v22 = vld [vmem:[#allocation2 + $0xda8] sm:$0xff]  ;;  %v4595_v15 = vld [vmem:[#allocation2 + $0xdb0] sm:$0xff] }
 0x508   :  { %4772 = vmatpush1.bf16.msra.mxu1 %v4551_v50  ;;  %4675 = vmatprep.subr.bf16.mxu0 %v4554_v29  ;;  %v4598_v50 = vld [vmem:[#allocation2 + $0xdc8] sm:$0xff]  ;;  %v4600_v29 = vld [vmem:[#allocation2 + $0xdd8] sm:$0xff] }
 0x509   :  { %4773 = vmatprep.subr.bf16.mxu1 %v4556_v60  ;;  %4701 = vmatprep.mubr.bf16.mxu0 %v4533_v11  ;;  %v4499_v60 = vrot.slane %v6825_v53, 6 }
 0x50a   :  { %4799 = vmatprep.mubr.bf16.mxu1 %v4533_v11  ;;  %v4503_v11 = vrot.slane %v6833_v30, 6  ;;  %v4601_v30 = vld [vmem:[#allocation2 + $0xde0] sm:$0xff] }
 0x50b   :  { %4676 = vmatpush1.bf16.msra.mxu0 %v4553_v40  ;;  %v4507_v40 = vrot.slane %v6841_v49, 6  ;;  %v4603_v49 = vld [vmem:[#allocation2 + $0xdf0] sm:$0xff] }
 0x50c   :  { %4774 = vmatpush1.bf16.msra.mxu1 %v4555_v47  ;;  %4677 = vmatprep.subr.bf16.mxu0 %v4558_v5  ;;  %v4597_v47 = vld [vmem:[#allocation2 + $0xdc0] sm:$0xff]  ;;  %v4599_v5 = vld [vmem:[#allocation2 + $0xdd0] sm:$0xff]  ;;  %v4524_v53 = vsel %vm4515_vm4, %v4499_v60, %v4503_v11 }
 0x50d   :  { %4775 = vmatprep.subr.bf16.mxu1 %v4560_v32  ;;  %v4602_v32 = vld [vmem:[#allocation2 + $0xde8] sm:$0xff] }
 0x50f   :  { %4678 = vmatpush1.bf16.msra.mxu0 %v4557_v56  ;;  %v4604_v56 = vld [vmem:[#allocation2 + $0xdf8] sm:$0xff] }
 0x510   :  { %4776 = vmatpush1.bf16.msra.mxu1 %v4559_v4  ;;  %4679 = vmatprep.subr.bf16.mxu0 %v4562_v35  ;;  %v4512_v4 = vrot.slane %v6853_v18, 6  ;;  %v4520_v35 = vsel %vm4515_vm4, %v4503_v11, %v4507_v40  ;;  %v4635_v11 = vld [vmem:[#allocation2 + $0xef0] sm:$0xff] }
 0x511   :  { %4777 = vmatprep.subr.bf16.mxu1 %v4564_v51  ;;  %v4606_v51 = vld [vmem:[#allocation2 + $0xe08] sm:$0xff] }
 0x512   :  { %v4517_v18 = vsel %vm4515_vm4, %v4508_v43, %v4512_v4  ;;  %v4510_v43 = vrot.slane %v6847_v41, 6 }
 0x513   :  { %4680 = vmatpush1.bf16.msra.mxu0 %v4561_v58  ;;  %v4608_v58 = vld [vmem:[#allocation2 + $0xe18] sm:$0xff] }
 0x514   :  { %4778 = vmatpush1.bf16.msra.mxu1 %v4563_v2  ;;  %4681 = vmatprep.subr.bf16.mxu0 %v4566_v6  ;;  %v4532_v2 = vpack.c.bf16 %v4520_v35, %v4524_v53  ;;  %v4529_v6 = vsel %vm4515_vm4, %v4512_v4, %v4500_v19  ;;  %v4523_v37 = vsel %vm4515_vm4, %v4506_v16, %v4510_v43  ;;  %v4644_v4 = vld [vmem:[#allocation2 + $0xf38] sm:$0xff]  ;;  %v4641_v35 = vld [vmem:[#allocation2 + $0xf20] sm:$0xff]  ;;  %v4643_v53 = vld [vmem:[#allocation2 + $0xf30] sm:$0xff] }
 0x515   :  { %4779 = vmatprep.subr.bf16.mxu1 %v4568_v26  ;;  %v4511_v26 = vrot.slane %v6849_v28, 6 }
 0x517   :  { %4682 = vmatpush1.bf16.msra.mxu0 %v4565_v12  ;;  %v4605_v12 = vld [vmem:[#allocation2 + $0xe00] sm:$0xff]  ;;  %v4516_v28 = vsel %vm4515_vm4, %v4507_v40, %v4511_v26  ;;  %v4528_v19 = vsel %vm4515_vm4, %v4511_v26, %v4499_v60  ;;  %v4638_v40 = vld [vmem:[#allocation2 + $0xf08] sm:$0xff]  ;;  %v4651_v26 = vld [vmem:[#allocation2 + $0xf70] sm:$0xff] }
 0x518   :  { %4780 = vmatpush1.bf16.msra.mxu1 %v4567_v14  ;;  %4683 = vmatprep.subr.bf16.mxu0 %v4570_v33  ;;  %v4607_v14 = vld [vmem:[#allocation2 + $0xe10] sm:$0xff]  ;;  %v4610_v33 = vld [vmem:[#allocation2 + $0xe28] sm:$0xff]  ;;  %v4633_v60 = vld [vmem:[#allocation2 + $0xee0] sm:$0xff] }
 0x519   :  { %4781 = vmatprep.subr.bf16.mxu1 %v4572_v1  ;;  %v4612_v1 = vld [vmem:[#allocation2 + $0xe38] sm:$0xff] }
 0x51b   :  { %4684 = vmatpush1.bf16.msra.mxu0 %v4569_v55  ;;  %v4537_v55 = vpack.c.bf16 %v4529_v6, %v4517_v18  ;;  %v4652_v18 = vld [vmem:[#allocation2 + $0xf78] sm:$0xff]  ;;  %v4649_v6 = vld [vmem:[#allocation2 + $0xf60] sm:$0xff] }
 0x51c   :  { %4782 = vmatpush1.bf16.msra.mxu1 %v4571_v17  ;;  %4685 = vmatprep.subr.bf16.mxu0 %v4574_v59  ;;  %v4609_v17 = vld [vmem:[#allocation2 + $0xe20] sm:$0xff]  ;;  %v4611_v59 = vld [vmem:[#allocation2 + $0xe30] sm:$0xff] }
 0x51d   :  { %4783 = vmatprep.subr.bf16.mxu1 %v4576_v45  ;;  %v4614_v45 = vld [vmem:[#allocation2 + $0xe48] sm:$0xff] }
 0x51f   :  { %4686 = vmatpush1.bf16.msra.mxu0 %v4573_v7  ;;  %v4616_v7 = vld [vmem:[#allocation2 + $0xe58] sm:$0xff] }
 0x520   :  { %4784 = vmatpush1.bf16.msra.mxu1 %v4575_v44  ;;  %4687 = vmatprep.subr.bf16.mxu0 %v4578_v20  ;;  %v4536_v44 = vpack.c.bf16 %v4528_v19, %v4516_v28  ;;  %v4527_v20 = vsel %vm4515_vm4, %v4502_v24, %v4506_v16  ;;  %v4660_v16 = vld [vmem:[#allocation2 + $0xfb8] sm:$0xff]  ;;  %v4657_v28 = vld [vmem:[#allocation2 + $0xfa0] sm:$0xff]  ;;  %v4659_v19 = vld [vmem:[#allocation2 + $0xfb0] sm:$0xff] }
 0x521   :  { %4785 = vmatprep.subr.bf16.mxu1 %v4580_v25  ;;  %v4613_v25 = vld [vmem:[#allocation2 + $0xe40] sm:$0xff] }
 0x523   :  { %4688 = vmatpush1.bf16.msra.mxu0 %v4577_v8  ;;  %v4615_v8 = vld [vmem:[#allocation2 + $0xe50] sm:$0xff] }
 0x524   :  { %4786 = vmatpush1.bf16.msra.mxu1 %v4579_v0  ;;  %4689 = vmatprep.subr.bf16.mxu0 %v4582_v27  ;;  %v4618_v0 = vld [vmem:[#allocation2 + $0xe68] sm:$0xff]  ;;  %v4620_v27 = vld [vmem:[#allocation2 + $0xe78] sm:$0xff] }
 0x525   :  { %4787 = vmatprep.subr.bf16.mxu1 %v4584_v61  ;;  %v4535_v61 = vpack.c.bf16 %v4523_v37, %v4527_v20  ;;  %v4661_v37 = vld [vmem:[#allocation2 + $0xfc0] sm:$0xff]  ;;  %v4663_v20 = vld [vmem:[#allocation2 + $0xfd0] sm:$0xff] }
 0x527   :  { %4690 = vmatpush1.bf16.msra.mxu0 %v4581_v52  ;;  %v4617_v52 = vld [vmem:[#allocation2 + $0xe60] sm:$0xff] }
 0x528   :  { %4788 = vmatpush1.bf16.msra.mxu1 %v4583_v9  ;;  %4691 = vmatprep.subr.bf16.mxu0 %v4586_v39  ;;  %v4619_v9 = vld [vmem:[#allocation2 + $0xe70] sm:$0xff]  ;;  %v4622_v39 = vld [vmem:[#allocation2 + $0xe88] sm:$0xff] }
 0x529   :  { %4789 = vmatprep.subr.bf16.mxu1 %v4588_v48  ;;  %v4624_v48 = vld [vmem:[#allocation2 + $0xe98] sm:$0xff] }
 0x52b   :  { %4692 = vmatpush1.bf16.msra.mxu0 %v4585_v34  ;;  %v4621_v34 = vld [vmem:[#allocation2 + $0xe80] sm:$0xff] }
 0x52c   :  { %4790 = vmatpush1.bf16.msra.mxu1 %v4587_v36  ;;  %4693 = vmatprep.subr.bf16.mxu0 %v4590_v21  ;;  %v4623_v36 = vld [vmem:[#allocation2 + $0xe90] sm:$0xff]  ;;  %v4626_v21 = vld [vmem:[#allocation2 + $0xea8] sm:$0xff] }
 0x52d   :  { %4791 = vmatprep.subr.bf16.mxu1 %v4592_v10  ;;  %v4628_v10 = vld [vmem:[#allocation2 + $0xeb8] sm:$0xff] }
 0x52f   :  { %4694 = vmatpush1.bf16.msra.mxu0 %v4589_v57  ;;  %v4625_v57 = vld [vmem:[#allocation2 + $0xea0] sm:$0xff] }
 0x530   :  { %4792 = vmatpush1.bf16.msra.mxu1 %v4591_v31  ;;  %4695 = vmatprep.subr.bf16.mxu0 %v4594_v22  ;;  %v4627_v31 = vld [vmem:[#allocation2 + $0xeb0] sm:$0xff]  ;;  %v4630_v22 = vld [vmem:[#allocation2 + $0xec8] sm:$0xff] }
 0x531   :  { %4793 = vmatprep.subr.bf16.mxu1 %v4596_v46  ;;  %v4632_v46 = vld [vmem:[#allocation2 + $0xed8] sm:$0xff] }
 0x533   :  { %4696 = vmatpush1.bf16.msra.mxu0 %v4593_v54  ;;  %v4629_v54 = vld [vmem:[#allocation2 + $0xec0] sm:$0xff] }
 0x534   :  { %4794 = vmatpush1.bf16.msra.mxu1 %v4595_v15  ;;  %4697 = vmatprep.subr.bf16.mxu0 %v4598_v50  ;;  %v4631_v15 = vld [vmem:[#allocation2 + $0xed0] sm:$0xff]  ;;  %v4634_v50 = vld [vmem:[#allocation2 + $0xee8] sm:$0xff] }
 0x535   :  { %4795 = vmatprep.subr.bf16.mxu1 %v4600_v29  ;;  %v4636_v29 = vld [vmem:[#allocation2 + $0xef8] sm:$0xff] }
 0x537   :  { %4698 = vmatpush1.bf16.msra.mxu0 %v4597_v47  ;;  %v4640_v47 = vld [vmem:[#allocation2 + $0xf18] sm:$0xff] }
 0x538   :  { %4796 = vmatpush1.bf16.msra.mxu1 %v4599_v5  ;;  %4699 = vmatprep.subr.bf16.mxu0 %v4602_v32  ;;  %v4637_v5 = vld [vmem:[#allocation2 + $0xf00] sm:$0xff]  ;;  %v4639_v32 = vld [vmem:[#allocation2 + $0xf10] sm:$0xff] }
 0x539   :  { %4797 = vmatprep.subr.bf16.mxu1 %v4604_v56  ;;  %v4642_v56 = vld [vmem:[#allocation2 + $0xf28] sm:$0xff] }
 0x53b   :  { %4700 = vmatpush1.bf16.msra.mxu0 %v4601_v30  ;;  %v4646_v30 = vld [vmem:[#allocation2 + $0xf48] sm:$0xff] }
 0x53c   :  { %4798 = vmatpush1.bf16.msra.mxu1 %v4603_v49  ;;  %4718 = vmatprep.subr.bf16.mxu0 %v4606_v51  ;;  %v4648_v49 = vld [vmem:[#allocation2 + $0xf58] sm:$0xff]  ;;  %v4645_v51 = vld [vmem:[#allocation2 + $0xf40] sm:$0xff] }
 0x53d   :  { %4816 = vmatprep.subr.bf16.mxu1 %v4608_v58  ;;  %v4647_v58 = vld [vmem:[#allocation2 + $0xf50] sm:$0xff] }
 0x53e   :  { %4702 = vmatmul.mubr.bf16.vlgmr.msra.gmra.mrb[16].mxu0 %v4532_v2 }
 0x53f   :  { %4800 = vmatmul.mubr.bf16.vlgmr.msra.gmra.mrb[16].mxu1 %v4532_v2  ;;  %4719 = vmatpush1.bf16.msra.mxu0 %v4605_v12  ;;  %v4650_v2 = vld [vmem:[#allocation2 + $0xf68] sm:$0xff] }
 0x540   :  { %4817 = vmatpush1.bf16.msra.mxu1 %v4607_v14  ;;  %4720 = vmatprep.subr.bf16.mxu0 %v4610_v33  ;;  %v4654_v12 = vld [vmem:[#allocation2 + $0xf88] sm:$0xff]  ;;  %v4656_v14 = vld [vmem:[#allocation2 + $0xf98] sm:$0xff]  ;;  %v4653_v33 = vld [vmem:[#allocation2 + $0xf80] sm:$0xff] }
 0x541   :  { %4818 = vmatprep.subr.bf16.mxu1 %v4612_v1  ;;  %4709 = vmatprep.mubr.bf16.mxu0 %v4537_v55  ;;  %v4655_v1 = vld [vmem:[#allocation2 + $0xf90] sm:$0xff] }
 0x542   :  { %4807 = vmatprep.mubr.bf16.mxu1 %v4537_v55  ;;  %v4658_v55 = vld [vmem:[#allocation2 + $0xfa8] sm:$0xff] }
 0x543   :  { %4721 = vmatpush1.bf16.msra.mxu0 %v4609_v17  ;;  %v4662_v17 = vld [vmem:[#allocation2 + $0xfc8] sm:$0xff] }
 0x544   :  { %4819 = vmatpush1.bf16.msra.mxu1 %v4611_v59  ;;  %4722 = vmatprep.subr.bf16.mxu0 %v4614_v45  ;;  %v4664_v59 = vld [vmem:[#allocation2 + $0xfd8] sm:$0xff]  ;;  %v4501_v45 = vrot.slane %v6827_v3, 6 }
 0x545   :  { %4820 = vmatprep.subr.bf16.mxu1 %v4616_v7  ;;  %v4505_v7 = vrot.slane %v6835_v23, 6  ;;  %v4665_v23 = vld [vmem:[#allocation2 + $0xfe0] sm:$0xff] }
 0x546   :  { %4710 = vmatmul.mubr.bf16.gmra.mrb[20].mxu0 %v4536_v44 }
 0x547   :  { %4808 = vmatmul.mubr.bf16.gmra.mrb[20].mxu1 %v4536_v44  ;;  %4723 = vmatpush1.bf16.msra.mxu0 %v4613_v25  ;;  %v4509_v44 = vrot.slane %v6843_v62, 6  ;;  %v4514_v25 = vrot.slane %v6855_v42, 6  ;;  %v4526_v3 = vsel %vm4515_vm4, %v4501_v45, %v4505_v7  ;;  %v4667_v62 = vld [vmem:[#allocation2 + $0xff0] sm:$0xff] }
 0x548   :  { %4821 = vmatpush1.bf16.msra.mxu1 %v4615_v8  ;;  %4724 = vmatprep.subr.bf16.mxu0 %v4618_v0  ;;  %v4666_v8 = vld [vmem:[#allocation2 + $0xfe8] sm:$0xff]  ;;  %v4668_v0 = vld [vmem:[#allocation2 + $0xff8] sm:$0xff] }
 0x549   :  { %4822 = vmatprep.subr.bf16.mxu1 %v4620_v27  ;;  %4750 = vmatprep.mubr.bf16.mxu0 %v4535_v61  ;;  %v4522_v27 = vsel %vm4515_vm4, %v4505_v7, %v4509_v44  ;;  %v4531_v42 = vsel %vm4515_vm4, %v4514_v25, %v4502_v24 }
 0x54a   :  { %4848 = vmatprep.mubr.bf16.mxu1 %v4535_v61  ;;  %v4519_v61 = vsel %vm4515_vm4, %v4510_v43, %v4514_v25 }
 0x54b   :  { %4725 = vmatpush1.bf16.msra.mxu0 %v4617_v52  ;;  %v4534_v52 = vpack.c.bf16 %v4522_v27, %v4526_v3 }
 0x54c   :  { %4823 = vmatpush1.bf16.msra.mxu1 %v4619_v9  ;;  %4726 = vmatprep.subr.bf16.mxu0 %v4622_v39  ;;  %v4539_v9 = vpack.c.bf16 %v4531_v42, %v4519_v61  ;;  %v4513_v39 = vrot.slane %v6851_v13, 6  ;;  %v5373_v42 = vld [vmem:[#allocation4] ss:$0 sm:$0xff] }
 0x54d   :  { %4824 = vmatprep.subr.bf16.mxu1 %v4624_v48 }
 0x54e   :  { %v4518_v41 = vsel %vm4515_vm4, %v4509_v44, %v4513_v39  ;;  %v4530_v43 = vsel %vm4515_vm4, %v4513_v39, %v4501_v45 }
 0x54f   :  { %4727 = vmatpush1.bf16.msra.mxu0 %v4621_v34  ;;  %v4538_v63 = vpack.c.bf16 %v4530_v43, %v4518_v41 }
 0x550   :  { %4825 = vmatpush1.bf16.msra.mxu1 %v4623_v36  ;;  %4728 = vmatprep.subr.bf16.mxu0 %v4626_v21 }
 0x551   :  { %4826 = vmatprep.subr.bf16.mxu1 %v4628_v10 }
 0x553   :  { %4729 = vmatpush1.bf16.msra.mxu0 %v4625_v57 }
 0x554   :  { %4827 = vmatpush1.bf16.msra.mxu1 %v4627_v31  ;;  %4730 = vmatprep.subr.bf16.mxu0 %v4630_v22  ;;  %v4894_v31 = vsub.s32 0, %v6456_v38  ;;  %v4902_v22 = vsub.s32 2, %v6456_v38 }
 0x555   :  { %4828 = vmatprep.subr.bf16.mxu1 %v4632_v46  ;;  %v4890_v46 = vld [vmem:[#allocation9] sm:$0xf] }
 0x557   :  { %4731 = vmatpush1.bf16.msra.mxu0 %v4629_v54  ;;  %v4898_v54 = vsub.s32 1, %v6456_v38 }
 0x558   :  { %4829 = vmatpush1.bf16.msra.mxu1 %v4631_v15  ;;  %4732 = vmatprep.subr.bf16.mxu0 %v4634_v50  ;;  %v4906_v15 = vsub.s32 3, %v6456_v38 }
 0x559   :  { %4830 = vmatprep.subr.bf16.mxu1 %v4636_v29  ;;  %v4895_v29 = vrot.slane %v4890_v46, %v4894_v31 }
 0x55b   :  { %4733 = vmatpush1.bf16.msra.mxu0 %v4633_v60 }
 0x55c   :  { %4831 = vmatpush1.bf16.msra.mxu1 %v4635_v11  ;;  %4734 = vmatprep.subr.bf16.mxu0 %v4638_v40  ;;  %v4903_v11 = vrot.slane %v4890_v46, %v4902_v22 }
 0x55d   :  { %4832 = vmatprep.subr.bf16.mxu1 %v4640_v47 }
 0x55f   :  { %4735 = vmatpush1.bf16.msra.mxu0 %v4637_v5 }
 0x560   :  { %4833 = vmatpush1.bf16.msra.mxu1 %v4639_v32  ;;  %4736 = vmatprep.subr.bf16.mxu0 %v4642_v56  ;;  %v4899_v32 = vrot.slane %v4890_v46, %v4898_v54 }
 0x561   :  { %4834 = vmatprep.subr.bf16.mxu1 %v4644_v4  ;;  %v4907_v4 = vrot.slane %v4890_v46, %v4906_v15 }
 0x563   :  { %4737 = vmatpush1.bf16.msra.mxu0 %v4641_v35 }
 0x564   :  { %4835 = vmatpush1.bf16.msra.mxu1 %v4643_v53  ;;  %4738 = vmatprep.subr.bf16.mxu0 %v4646_v30 }
 0x565   :  { %4836 = vmatprep.subr.bf16.mxu1 %v4648_v49 }
 0x567   :  { %4739 = vmatpush1.bf16.msra.mxu0 %v4645_v51 }
 0x568   :  { %4837 = vmatpush1.bf16.msra.mxu1 %v4647_v58  ;;  %4740 = vmatprep.subr.bf16.mxu0 %v4650_v2 }
 0x569   :  { %4838 = vmatprep.subr.bf16.mxu1 %v4652_v18 }
 0x56b   :  { %4741 = vmatpush1.bf16.msra.mxu0 %v4649_v6 }
 0x56c   :  { %4839 = vmatpush1.bf16.msra.mxu1 %v4651_v26  ;;  %4742 = vmatprep.subr.bf16.mxu0 %v4654_v12 }
 0x56d   :  { %4840 = vmatprep.subr.bf16.mxu1 %v4656_v14 }
 0x56f   :  { %4743 = vmatpush1.bf16.msra.mxu0 %v4653_v33 }
 0x570   :  { %4841 = vmatpush1.bf16.msra.mxu1 %v4655_v1  ;;  %4744 = vmatprep.subr.bf16.mxu0 %v4658_v55  ;;  %v4920_v1 = vld [vmem:[#allocation10] sm:$0xf] }
 0x571   :  { %4842 = vmatprep.subr.bf16.mxu1 %v4660_v16  ;;  %v4925_v55 = vrot.slane %v4920_v1, %v4894_v31  ;;  %v4929_v16 = vrot.slane %v4920_v1, %v4898_v54 }
 0x573   :  { %4745 = vmatpush1.bf16.msra.mxu0 %v4657_v28  ;;  %v4933_v28 = vrot.slane %v4920_v1, %v4902_v22 }
 0x574   :  { %4843 = vmatpush1.bf16.msra.mxu1 %v4659_v19  ;;  %4746 = vmatprep.subr.bf16.mxu0 %v4662_v17 }
 0x575   :  { %4844 = vmatprep.subr.bf16.mxu1 %v4664_v59  ;;  %v4937_v59 = vrot.slane %v4920_v1, %v4906_v15 }
 0x577   :  { %4747 = vmatpush1.bf16.msra.mxu0 %v4661_v37 }
 0x578   :  { %4845 = vmatpush1.bf16.msra.mxu1 %v4663_v20  ;;  %4748 = vmatprep.subr.bf16.mxu0 %v4666_v8 }
 0x579   :  { %4846 = vmatprep.subr.bf16.mxu1 %v4668_v0 }
 0x57b   :  { %4749 = vmatpush1.bf16.msra.mxu0 %v4665_v23 }
 0x57c   :  { %4847 = vmatpush1.bf16.msra.mxu1 %v4667_v62 }
 0x57e   :  { %4751 = vmatmul.mubr.bf16.vlgmr.msra.gmra.mrb[16].mxu0 %v4534_v52 }
 0x57f   :  { %4849 = vmatmul.mubr.bf16.vlgmr.msra.gmra.mrb[16].mxu1 %v4534_v52  ;;  %4758 = vmatprep.mubr.bf16.mxu0 %v4539_v9 }
 0x580   :  { %4856 = vmatprep.mubr.bf16.mxu1 %v4539_v9 }
 0x586   :  { %4759 = vmatmul.mubr.bf16.gmra.mrb[20].mxu0 %v4538_v63 }
 0x587   :  { %4857 = vmatmul.mubr.bf16.gmra.mrb[20].mxu1 %v4538_v63 }
 0x651   :  { %v4752_v24 = vpop.f32.mrb[16].mxu0 }
 0x652   :  { %v4850_v48 = vpop.f32.mrb[16].mxu1  ;;  %v4754_v34 = vpop.f32.mrb[17].mxu0 }
 0x653   :  { %v4852_v36 = vpop.f32.mrb[17].mxu1  ;;  %v4756_v21 = vpop.f32.mrb[18].mxu0 }
 0x654   :  { %v4854_v10 = vpop.f32.mrb[18].mxu1  ;;  %v4757_v13 = vpop.f32.mrb[19].mxu0 }
 0x655   :  { %v4855_v57 = vpop.f32.mrb[19].mxu1 }
 0x659   :  { %v4760_v50 = vpop.f32.mrb[20].mxu0 }
 0x65a   :  { %v4858_v60 = vpop.f32.mrb[20].mxu1  ;;  %v4877_v40 = vrot.slane %v4760_v50, 7  ;;  %v4762_v5 = vpop.f32.mrb[21].mxu0 }
 0x65b   :  { %v4879_v47 = vrot.slane %v4858_v60, 7  ;;  %v4860_v56 = vpop.f32.mrb[21].mxu1  ;;  %v4878_v35 = vrot.slane %v4762_v5, 7  ;;  %v4764_v30 = vpop.f32.mrb[22].mxu0 }
 0x65c   :  { %v4880_v53 = vrot.slane %v4860_v56, 7  ;;  %v4862_v49 = vpop.f32.mrb[22].mxu1  ;;  %v4886_v51 = vsel %vm4885_vm5, %v4752_v24, %v4877_v40  ;;  %v4765_v38 = vpop.f32.mrb[23].mxu0 }
 0x65d   :  { %v4888_v58 = vsel %vm4885_vm5, %v4850_v48, %v4879_v47  ;;  %v4863_v2 = vpop.f32.mrb[23].mxu1  ;;  %v4912_v18 = vadd.f32 %v4895_v29, %v4886_v51  ;;  %v4887_v26 = vsel %vm4885_vm5, %v4754_v34, %v4878_v35 }
 0x65e   :  { %v4914_v6 = vadd.f32 %v4903_v11, %v4888_v58  ;;  %v4889_v12 = vsel %vm4885_vm5, %v4852_v36, %v4880_v53  ;;  %v4913_v14 = vadd.f32 %v4899_v32, %v4887_v26 }
 0x65f   :  { %v4915_v33 = vadd.f32 %v4907_v4, %v4889_v12  ;;  %6207 = vtanh.f32 %v4912_v18 }
 0x660   :  { %6209 = vtanh.f32 %v4914_v6 }
 0x661   :  { %6211 = vtanh.f32 %v4913_v14 }
 0x662   :  { %6213 = vtanh.f32 %v4915_v33 }
 0x669   :  { %v6208_v19 = vpop.eup %6207 }
 0x66a   :  { %v6210_v17 = vpop.eup %6209  ;;  %v4942_v45 = vmul.f32 %v6208_v19, %v4925_v55 }
 0x66b   :  { %v6212_v7 = vpop.eup %6211  ;;  %v4944_v20 = vmul.f32 %v6210_v17, %v4933_v28 }
 0x66c   :  { %v6214_v44 = vpop.eup %6213  ;;  %v4943_v37 = vmul.f32 %v6212_v7, %v4929_v16  ;;  %v4947_v25 = vsel %vm4946_vm6, %v4942_v45, 0.0 }
 0x66d   :  { %v4945_v8 = vmul.f32 %v6214_v44, %v4937_v59  ;;  %v4950_v3 = vsel %vm4946_vm6, %v4944_v20, 0.0 }
 0x66e   :  { %v4948_v0 = vsel %vm4946_vm6, %v4943_v37, 0.0 }
 0x66f   :  { %v4949_v27 = vadd.f32 %v4948_v0, %v4947_v25  ;;  %v4952_v62 = vsel %vm4946_vm6, %v4945_v8, 0.0 }
 0x671   :  { %v4951_v23 = vadd.f32 %v4950_v3, %v4949_v27 }
 0x673   :  { %v4953_v61 = vadd.f32 %v4952_v62, %v4951_v23 }
 0x675   :  { %4954 = vadd.xlane.f32.xlu0 %v4953_v61 }
 0x702   :  { %v4955_v52 = vpop.xlane.xlu0 %4954 }
 0x703   :  { %v4963_v9 = vadd.f32 %v5373_v42, %v4955_v52 }
 0x705   :  { %4965 = vst.msk [vmem:[%s7080_s7] sm:$0x3] %vm4964_vm7, %v4963_v9 }
 0x706   :  { %4970 = vsyncpa [#allocation6], 1 }
 0x707   :  { %4971 = vsyncpa [#allocation8], 1 }
 0x708   :  { %4972 = vsyncpa [#allocation11], 1 }
 0x709   :  { %4973 = vsyncmov [#allocation3] }
 0x70c   :  { %s4974_s22 = vpop.sfrf %4973 }
 0x70d   :  { %p5374_p4 = scmp.ne.s32.totalorder %s4974_s22, 0 }
 0x70f   :  { %4978 = shalt.err (%p5374_p4)  }

</bundles_post_ra>
